<compile_context>
chip_gen: v7x
topology: tpu7x:2x2x1
jax: 0.10.0
libtpu: 0.0.40
codegen_flags: <defaults>
</compile_context>

<pallas_src>
import jax
import jax.numpy as jnp
from jax.experimental import pallas as pl
from jax.experimental.pallas import tpu as pltpu


def _sigmoid_eup(z):
    # sigmoid(z) == 0.5 * (tanh(z / 2) + 1): one EUP op instead of exp + divide on the chain.
    return 0.5 * jnp.tanh(0.5 * z) + 0.5


def _make_kernel(num_layers):
    def kernel(lenslane_ref, xproj_ref, w0h_ref, *rest):
        if num_layers > 1:
            (wlx_ref, wlh_ref, bl_ref,
             w1_ref, b1_ref, w2_ref, b2_ref, out_ref) = rest
        else:
            w1_ref, b1_ref, w2_ref, b2_ref, out_ref = rest
            wlx_ref = wlh_ref = bl_ref = None

        dh = w0h_ref.shape[0]            # 128-lane-padded, device-blocked state width
        batch = xproj_ref.shape[1]
        nsteps = xproj_ref.shape[0]      # static trip count -> fully unrolled recurrence
        lens_lane = lenslane_ref[...]    # (B, DH) int32: per-(device, sequence) lengths per lane

        def step(t, carry):
            hs, cs = carry               # tuples of (B, DH), device-blocked + lane padding
            valid = t < lens_lane        # freeze state past each sequence's end (pack_padded)

            # Layer 0: x-projection + bias are hoisted; only the recurrent h-matmul is chained.
            gates = xproj_ref[t] + jnp.dot(hs[0], w0h_ref[...],
                                           preferred_element_type=jnp.float32)

            new_hs, new_cs = [], []
            inp = None
            for l in range(num_layers):
                if l > 0:
                    # Two dots, no per-step concat: hs[l] is ready from the previous timestep so
                    # its matmul can issue before `inp` (this timestep's lower layer) exists.
                    gates = (jnp.dot(hs[l], wlh_ref[l - 1],
                                     preferred_element_type=jnp.float32)
                             + jnp.dot(inp, wlx_ref[l - 1],
                                       preferred_element_type=jnp.float32)
                             + bl_ref[l - 1])
                # Gate groups [i | f | o | g], each exactly DH lanes: whole-vreg slices only.
                sig = _sigmoid_eup(gates[:, :3 * dh])
                g_g = jnp.tanh(gates[:, 3 * dh:])
                i_g = sig[:, :dh]
                f_g = sig[:, dh:2 * dh]
                o_g = sig[:, 2 * dh:]
                c_new = f_g * cs[l] + i_g * g_g
                h_new = o_g * jnp.tanh(c_new)
                h_upd = jnp.where(valid, h_new, hs[l])
                c_upd = jnp.where(valid, c_new, cs[l])
                new_hs.append(h_upd)
                new_cs.append(c_upd)
                inp = h_upd
            return tuple(new_hs), tuple(new_cs)

        zeros = jnp.zeros((batch, dh), jnp.float32)
        init = (tuple(zeros for _ in range(num_layers)),
                tuple(zeros for _ in range(num_layers)))
        # Static unrolled trip count: padded steps are correctness-masked by `valid`.
        # TODO(synk): for production T >> typical max(lens), switch back to a dynamic SMEM
        #             max(lens) bound and/or a time-chunk grid axis.
        hs, _cs = jax.lax.fori_loop(0, nsteps, step, init, unroll=True)

        # Top-layer hidden at the last valid step; device-blocked layout == torch.cat over
        # devices (padding lanes are identically zero, and w1's padding rows are zero).
        feat = hs[-1]                                                       # (B, DH)
        hid = jnp.dot(feat, w1_ref[...], preferred_element_type=jnp.float32) + b1_ref[...]
        # TODO(synk): nn.Dropout is identity at inference; training-mode random mask not done.
        out_ref[...] = (jnp.dot(hid, w2_ref[...], preferred_element_type=jnp.float32)
                        + b2_ref[...])
    return kernel


# ----------------------------- wrapper-side weight packing ---------------------------------- #

_GMAP = (0, 1, 3, 2)   # target gate-slot order (i, f, o, g) <- PyTorch gate index (i, f, g, o)


def _pack_state_weight(w, H, DH):
    """w: (ndev, H, 4H) per-device state weights (PyTorch gate order i,f,g,o).
    Returns (DH, 4*DH) block-diagonal weight, columns regrouped [i | f | o | g], each group
    DH lanes wide and device-blocked; padding rows/cols are zero."""
    ndev = w.shape[0]
    out = jnp.zeros((DH, 4 * DH), w.dtype)
    for d in range(ndev):
        for s, g in enumerate(_GMAP):
            out = out.at[d * H:(d + 1) * H,
                         s * DH + d * H: s * DH + (d + 1) * H].set(w[d, :, g * H:(g + 1) * H])
    return out


def _pack_input_weight(w, H, DH):
    """w: (ndev, F, 4H) per-device raw-feature weights -> (ndev*F, 4*DH) block matrix."""
    ndev, F, _ = w.shape
    out = jnp.zeros((ndev * F, 4 * DH), w.dtype)
    for d in range(ndev):
        for s, g in enumerate(_GMAP):
            out = out.at[d * F:(d + 1) * F,
                         s * DH + d * H: s * DH + (d + 1) * H].set(w[d, :, g * H:(g + 1) * H])
    return out


def _pack_bias(b, H, DH):
    """b: (ndev, 4H) combined b_ih + b_hh -> (1, 4*DH) regrouped, padding lanes zero."""
    ndev = b.shape[0]
    out = jnp.zeros((1, 4 * DH), b.dtype)
    for d in range(ndev):
        for s, g in enumerate(_GMAP):
            out = out.at[0, s * DH + d * H: s * DH + (d + 1) * H].set(b[d, g * H:(g + 1) * H])
    return out


def init_params(key, hidden_dim, class_size, num_layers, ndev=3, input_size=3):
    """Natural (PyTorch-like) per-device parameters; layer 0 only uses the first `input_size`
    rows of w_ih.  Biases are stored pre-summed (b_ih + b_hh)."""
    H = hidden_dim
    ks = jax.random.split(key, 7)
    w_ih = 0.2 * jax.random.normal(ks[0], (ndev, num_layers, H, 4 * H), jnp.float32)
    w_hh = 0.2 * jax.random.normal(ks[1], (ndev, num_layers, H, 4 * H), jnp.float32)
    b = 0.1 * jax.random.normal(ks[2], (ndev, num_layers, 4 * H), jnp.float32)
    w1 = 0.1 * jax.random.normal(ks[3], (ndev * H, 512), jnp.float32)
    b1 = 0.05 * jax.random.normal(ks[4], (512,), jnp.float32)
    w2 = 0.1 * jax.random.normal(ks[5], (512, class_size), jnp.float32)
    b2 = 0.05 * jax.random.normal(ks[6], (class_size,), jnp.float32)
    return dict(w_ih=w_ih, w_hh=w_hh, b=b, w1=w1, b1=b1, w2=w2, b2=b2)


@jax.jit
def imunet_forward(x_padded, lens, params):
    """x_padded: (NDEV, T, B, F) f32 (pad_sequence-style zeros), lens: (NDEV, B) int32."""
    ndev, T, B, F = x_padded.shape
    L = params['w_hh'].shape[1]
    H = params['w_hh'].shape[2]
    C = params['w2'].shape[1]

    DH = ((ndev * H + 127) // 128) * 128      # 128-lane-padded, device-blocked state width
    B_pad = ((B + 7) // 8) * 8                # sublane-padded batch
    C_pad = ((C + 127) // 128) * 128          # lane-dense output store

    # Raw features, time-major, devices concatenated along the feature axis; batch padded.
    x = jnp.transpose(x_padded, (1, 2, 0, 3)).reshape(T, B, ndev * F)
    x = jnp.pad(x, ((0, 0), (0, B_pad - B), (0, 0)))

    # Hoisted layer-0 input projection + layer-0 bias (zero recurrent dependence): one matmul
    # for all timesteps instead of T tiny M=B pushes inside the serial loop.
    w0x = _pack_input_weight(params['w_ih'][:, 0, :F, :], H, DH)          # (ndev*F, 4*DH)
    b0 = _pack_bias(params['b'][:, 0], H, DH)                             # (1, 4*DH)
    xproj = (x.reshape(T * B_pad, ndev * F) @ w0x + b0).reshape(T, B_pad, 4 * DH)

    w0h = _pack_state_weight(params['w_hh'][:, 0], H, DH)                 # (DH, 4*DH)

    # Per-lane sequence lengths (device-blocked); padded batch rows / padding lanes get 0.
    lens_lane = jnp.zeros((B_pad, DH), jnp.int32)
    lens_lane = lens_lane.at[:B, :ndev * H].set(
        jnp.repeat(lens.astype(jnp.int32).T, H, axis=1))

    # MLP head, padded to the state / output lane layouts (padding rows/cols are zero).
    w1 = jnp.zeros((DH, params['w1'].shape[1]), jnp.float32).at[:ndev * H].set(params['w1'])
    b1 = params['b1'].reshape(1, -1)
    w2 = jnp.zeros((params['w2'].shape[0], C_pad), jnp.float32).at[:, :C].set(params['w2'])
    b2 = jnp.zeros((1, C_pad), jnp.float32).at[0, :C].set(params['b2'])

    args = [lens_lane, xproj, w0h]
    if L > 1:
        wlx = jnp.stack([_pack_state_weight(params['w_ih'][:, l], H, DH)
                         for l in range(1, L)])                            # (L-1, DH, 4*DH)
        wlh = jnp.stack([_pack_state_weight(params['w_hh'][:, l], H, DH)
                         for l in range(1, L)])                            # (L-1, DH, 4*DH)
        bl = jnp.stack([_pack_bias(params['b'][:, l], H, DH)
                        for l in range(1, L)])                             # (L-1, 1, 4*DH)
        args += [wlx, wlh, bl]
    args += [w1, b1, w2, b2]

    vmem = pl.BlockSpec(memory_space=pltpu.MemorySpace.VMEM)
    out = pl.pallas_call(
        _make_kernel(L),
        out_shape=jax.ShapeDtypeStruct((B_pad, C_pad), jnp.float32),
        in_specs=[vmem] * len(args),
        out_specs=vmem,
    )(*args)
    return out[:B, :C]


# ------------------------------------ pure-JAX reference ------------------------------------ #

def reference_forward(x_padded, lens, p):
    """Pure-JAX reference matching the PyTorch forward semantics (per-device stacked LSTM)."""
    ndev, T, B, F = x_padded.shape
    L, H = p['w_hh'].shape[1], p['w_hh'].shape[2]

    def sigmoid(z):
        return 1.0 / (1.0 + jnp.exp(-z))

    feats = []
    for d in range(ndev):
        hs = [jnp.zeros((B, H), jnp.float32) for _ in range(L)]
        cs = [jnp.zeros((B, H), jnp.float32) for _ in range(L)]
        for t in range(T):
            valid = (t < lens[d])[:, None]
            inp = x_padded[d, t]                                           # (B, F)
            for l in range(L):
                w_ih = p['w_ih'][d, l][:F] if l == 0 else p['w_ih'][d, l]
                gates = inp @ w_ih + hs[l] @ p['w_hh'][d, l] + p['b'][d, l]
                i_g = sigmoid(gates[:, :H])
                f_g = sigmoid(gates[:, H:2 * H])
                g_g = jnp.tanh(gates[:, 2 * H:3 * H])
                o_g = sigmoid(gates[:, 3 * H:])
                c_new = f_g * cs[l] + i_g * g_g
                h_new = o_g * jnp.tanh(c_new)
                hs[l] = jnp.where(valid, h_new, hs[l])
                cs[l] = jnp.where(valid, c_new, cs[l])
                inp = hs[l]
        feats.append(hs[-1])
    feat = jnp.concatenate(feats, axis=1)
    hid = feat @ p['w1'] + p['b1']
    return hid @ p['w2'] + p['b2']


if __name__ == "__main__":
    B, T, H, L, C = 2, 8, 32, 2, 10        # batch, max seq len, hidden_dim, num_layers, classes
    NDEV = 3                               # accl, laccl, gyro
    key = jax.random.PRNGKey(0)
    kx, kp = jax.random.split(key)
    params = init_params(kp, hidden_dim=H, class_size=C, num_layers=L, ndev=NDEV)

    # per-device variable sequence lengths
    lens = jnp.array([[8, 5], [6, 8], [7, 4]], dtype=jnp.int32)            # (NDEV, B)
    x_raw = jax.random.normal(kx, (NDEV, T, B, 3), jnp.float32)
    valid = (jnp.arange(T)[None, :, None] < lens[:, None, :])              # (NDEV, T, B)
    x_padded = x_raw * valid[..., None].astype(jnp.float32)                # pad_sequence zeros

    out = jax.block_until_ready(imunet_forward(x_padded, lens, params))
    assert out.shape == (B, C)

    ref = reference_forward(x_padded, lens, params)
    err = float(jnp.max(jnp.abs(out - ref)))
    assert err < 5e-2, f"kernel/reference mismatch: max abs err {err}"

    print("KERNEL_OK")
</pallas_src>

<mosaic_0001>
module attributes {stable_mosaic.version = 11 : i64} {
  func.func @kernel(%arg0: memref<8x128xi32, #tpu.memory_space<vmem>>, %arg1: memref<8x8x512xf32, #tpu.memory_space<vmem>>, %arg2: memref<128x512xf32, #tpu.memory_space<vmem>>, %arg3: memref<1x128x512xf32, #tpu.memory_space<vmem>>, %arg4: memref<1x128x512xf32, #tpu.memory_space<vmem>>, %arg5: memref<1x1x512xf32, #tpu.memory_space<vmem>>, %arg6: memref<128x512xf32, #tpu.memory_space<vmem>>, %arg7: memref<1x512xf32, #tpu.memory_space<vmem>>, %arg8: memref<512x128xf32, #tpu.memory_space<vmem>>, %arg9: memref<1x128xf32, #tpu.memory_space<vmem>>, %arg10: memref<8x128xf32, #tpu.memory_space<vmem>>) attributes {dimension_semantics = [], scalar_prefetch = 0 : i64, scratch_operands = 0 : i64, tpu.core_type = #tpu.core_type<tc>} {
    %c0 = arith.constant 0 : index
    %c0_0 = arith.constant 0 : index
    %0 = vector.load %arg0[%c0, %c0_0] : memref<8x128xi32, #tpu.memory_space<vmem>>, vector<8x128xi32>
    %cst = arith.constant 0.000000e+00 : f32
    %1 = vector.broadcast %cst : f32 to vector<8x128xf32>
    %c0_i32 = arith.constant 0 : i32
    %2 = vector.broadcast %c0_i32 : i32 to vector<8x128xi32>
    %3 = arith.cmpi slt, %2, %0 : vector<8x128xi32>
    %4 = arith.index_cast %c0_i32 : i32 to index
    %c0_1 = arith.constant 0 : index
    %c0_2 = arith.constant 0 : index
    %5 = vector.load %arg1[%4, %c0_1, %c0_2] : memref<8x8x512xf32, #tpu.memory_space<vmem>>, vector<1x8x512xf32>
    %6 = vector.shape_cast %5 : vector<1x8x512xf32> to vector<8x512xf32>
    %c0_3 = arith.constant 0 : index
    %c0_4 = arith.constant 0 : index
    %7 = vector.load %arg2[%c0_3, %c0_4] : memref<128x512xf32, #tpu.memory_space<vmem>>, vector<128x512xf32>
    %cst_5 = arith.constant dense<0.000000e+00> : vector<8x512xf32>
    %8 = tpu.matmul %1, %7, %cst_5 {dimension_numbers = #tpu.dot_dimension_numbers<[1], [0], [0], [1], [0, 0, 1, 1], [], []>} : vector<8x128xf32>, vector<128x512xf32>, vector<8x512xf32> -> vector<8x512xf32>
    %9 = arith.addf %6, %8 : vector<8x512xf32>
    %10 = vector.extract_strided_slice %9 {offsets = [0, 0], sizes = [8, 384], strides = [1, 1]} : vector<8x512xf32> to vector<8x384xf32>
    %cst_6 = arith.constant 5.000000e-01 : f32
    %11 = vector.broadcast %cst_6 : f32 to vector<8x384xf32>
    %12 = arith.mulf %11, %10 : vector<8x384xf32>
    %13 = math.tanh %12 : vector<8x384xf32>
    %cst_7 = arith.constant 5.000000e-01 : f32
    %14 = vector.broadcast %cst_7 : f32 to vector<8x384xf32>
    %15 = arith.mulf %14, %13 : vector<8x384xf32>
    %cst_8 = arith.constant 5.000000e-01 : f32
    %16 = vector.broadcast %cst_8 : f32 to vector<8x384xf32>
    %17 = arith.addf %15, %16 : vector<8x384xf32>
    %18 = vector.extract_strided_slice %9 {offsets = [0, 384], sizes = [8, 128], strides = [1, 1]} : vector<8x512xf32> to vector<8x128xf32>
    %19 = math.tanh %18 : vector<8x128xf32>
    %20 = vector.extract_strided_slice %17 {offsets = [0, 0], sizes = [8, 128], strides = [1, 1]} : vector<8x384xf32> to vector<8x128xf32>
    %21 = vector.extract_strided_slice %17 {offsets = [0, 128], sizes = [8, 128], strides = [1, 1]} : vector<8x384xf32> to vector<8x128xf32>
    %22 = vector.extract_strided_slice %17 {offsets = [0, 256], sizes = [8, 128], strides = [1, 1]} : vector<8x384xf32> to vector<8x128xf32>
    %23 = arith.mulf %21, %1 : vector<8x128xf32>
    %24 = arith.mulf %20, %19 : vector<8x128xf32>
    %25 = arith.addf %23, %24 : vector<8x128xf32>
    %26 = math.tanh %25 : vector<8x128xf32>
    %27 = arith.mulf %22, %26 : vector<8x128xf32>
    %28 = arith.select %3, %27, %1 : vector<8x128xi1>, vector<8x128xf32>
    %29 = arith.select %3, %25, %1 : vector<8x128xi1>, vector<8x128xf32>
    %c0_9 = arith.constant 0 : index
    %c0_10 = arith.constant 0 : index
    %c0_11 = arith.constant 0 : index
    %30 = vector.load %arg4[%c0_9, %c0_10, %c0_11] : memref<1x128x512xf32, #tpu.memory_space<vmem>>, vector<1x128x512xf32>
    %31 = vector.shape_cast %30 : vector<1x128x512xf32> to vector<128x512xf32>
    %cst_12 = arith.constant dense<0.000000e+00> : vector<8x512xf32>
    %32 = tpu.matmul %1, %31, %cst_12 {dimension_numbers = #tpu.dot_dimension_numbers<[1], [0], [0], [1], [0, 0, 1, 1], [], []>} : vector<8x128xf32>, vector<128x512xf32>, vector<8x512xf32> -> vector<8x512xf32>
    %c0_13 = arith.constant 0 : index
    %c0_14 = arith.constant 0 : index
    %c0_15 = arith.constant 0 : index
    %33 = vector.load %arg3[%c0_13, %c0_14, %c0_15] : memref<1x128x512xf32, #tpu.memory_space<vmem>>, vector<1x128x512xf32>
    %34 = vector.shape_cast %33 : vector<1x128x512xf32> to vector<128x512xf32>
    %cst_16 = arith.constant dense<0.000000e+00> : vector<8x512xf32>
    %35 = tpu.matmul %28, %34, %cst_16 {dimension_numbers = #tpu.dot_dimension_numbers<[1], [0], [0], [1], [0, 0, 1, 1], [], []>} : vector<8x128xf32>, vector<128x512xf32>, vector<8x512xf32> -> vector<8x512xf32>
    %36 = arith.addf %32, %35 : vector<8x512xf32>
    %c0_17 = arith.constant 0 : index
    %c0_18 = arith.constant 0 : index
    %c0_19 = arith.constant 0 : index
    %37 = vector.load %arg5[%c0_17, %c0_18, %c0_19] : memref<1x1x512xf32, #tpu.memory_space<vmem>>, vector<1x1x512xf32>
    %38 = vector.shape_cast %37 : vector<1x1x512xf32> to vector<1x512xf32>
    %39 = vector.broadcast %38 : vector<1x512xf32> to vector<8x512xf32>
    %40 = arith.addf %36, %39 : vector<8x512xf32>
    %41 = vector.extract_strided_slice %40 {offsets = [0, 0], sizes = [8, 384], strides = [1, 1]} : vector<8x512xf32> to vector<8x384xf32>
    %cst_20 = arith.constant 5.000000e-01 : f32
    %42 = vector.broadcast %cst_20 : f32 to vector<8x384xf32>
    %43 = arith.mulf %42, %41 : vector<8x384xf32>
    %44 = math.tanh %43 : vector<8x384xf32>
    %cst_21 = arith.constant 5.000000e-01 : f32
    %45 = vector.broadcast %cst_21 : f32 to vector<8x384xf32>
    %46 = arith.mulf %45, %44 : vector<8x384xf32>
    %cst_22 = arith.constant 5.000000e-01 : f32
    %47 = vector.broadcast %cst_22 : f32 to vector<8x384xf32>
    %48 = arith.addf %46, %47 : vector<8x384xf32>
    %49 = vector.extract_strided_slice %40 {offsets = [0, 384], sizes = [8, 128], strides = [1, 1]} : vector<8x512xf32> to vector<8x128xf32>
    %50 = math.tanh %49 : vector<8x128xf32>
    %51 = vector.extract_strided_slice %48 {offsets = [0, 0], sizes = [8, 128], strides = [1, 1]} : vector<8x384xf32> to vector<8x128xf32>
    %52 = vector.extract_strided_slice %48 {offsets = [0, 128], sizes = [8, 128], strides = [1, 1]} : vector<8x384xf32> to vector<8x128xf32>
    %53 = vector.extract_strided_slice %48 {offsets = [0, 256], sizes = [8, 128], strides = [1, 1]} : vector<8x384xf32> to vector<8x128xf32>
    %54 = arith.mulf %52, %1 : vector<8x128xf32>
    %55 = arith.mulf %51, %50 : vector<8x128xf32>
    %56 = arith.addf %54, %55 : vector<8x128xf32>
    %57 = math.tanh %56 : vector<8x128xf32>
    %58 = arith.mulf %53, %57 : vector<8x128xf32>
    %59 = arith.select %3, %58, %1 : vector<8x128xi1>, vector<8x128xf32>
    %60 = arith.select %3, %56, %1 : vector<8x128xi1>, vector<8x128xf32>
    %c1_i32 = arith.constant 1 : i32
    %61 = vector.broadcast %c1_i32 : i32 to vector<8x128xi32>
    %62 = arith.cmpi slt, %61, %0 : vector<8x128xi32>
    %63 = arith.index_cast %c1_i32 : i32 to index
    %c0_23 = arith.constant 0 : index
    %c0_24 = arith.constant 0 : index
    %64 = vector.load %arg1[%63, %c0_23, %c0_24] : memref<8x8x512xf32, #tpu.memory_space<vmem>>, vector<1x8x512xf32>
    %65 = vector.shape_cast %64 : vector<1x8x512xf32> to vector<8x512xf32>
    %c0_25 = arith.constant 0 : index
    %c0_26 = arith.constant 0 : index
    %66 = vector.load %arg2[%c0_25, %c0_26] : memref<128x512xf32, #tpu.memory_space<vmem>>, vector<128x512xf32>
    %cst_27 = arith.constant dense<0.000000e+00> : vector<8x512xf32>
    %67 = tpu.matmul %28, %66, %cst_27 {dimension_numbers = #tpu.dot_dimension_numbers<[1], [0], [0], [1], [0, 0, 1, 1], [], []>} : vector<8x128xf32>, vector<128x512xf32>, vector<8x512xf32> -> vector<8x512xf32>
    %68 = arith.addf %65, %67 : vector<8x512xf32>
    %69 = vector.extract_strided_slice %68 {offsets = [0, 0], sizes = [8, 384], strides = [1, 1]} : vector<8x512xf32> to vector<8x384xf32>
    %cst_28 = arith.constant 5.000000e-01 : f32
    %70 = vector.broadcast %cst_28 : f32 to vector<8x384xf32>
    %71 = arith.mulf %70, %69 : vector<8x384xf32>
    %72 = math.tanh %71 : vector<8x384xf32>
    %cst_29 = arith.constant 5.000000e-01 : f32
    %73 = vector.broadcast %cst_29 : f32 to vector<8x384xf32>
    %74 = arith.mulf %73, %72 : vector<8x384xf32>
    %cst_30 = arith.constant 5.000000e-01 : f32
    %75 = vector.broadcast %cst_30 : f32 to vector<8x384xf32>
    %76 = arith.addf %74, %75 : vector<8x384xf32>
    %77 = vector.extract_strided_slice %68 {offsets = [0, 384], sizes = [8, 128], strides = [1, 1]} : vector<8x512xf32> to vector<8x128xf32>
    %78 = math.tanh %77 : vector<8x128xf32>
    %79 = vector.extract_strided_slice %76 {offsets = [0, 0], sizes = [8, 128], strides = [1, 1]} : vector<8x384xf32> to vector<8x128xf32>
    %80 = vector.extract_strided_slice %76 {offsets = [0, 128], sizes = [8, 128], strides = [1, 1]} : vector<8x384xf32> to vector<8x128xf32>
    %81 = vector.extract_strided_slice %76 {offsets = [0, 256], sizes = [8, 128], strides = [1, 1]} : vector<8x384xf32> to vector<8x128xf32>
    %82 = arith.mulf %80, %29 : vector<8x128xf32>
    %83 = arith.mulf %79, %78 : vector<8x128xf32>
    %84 = arith.addf %82, %83 : vector<8x128xf32>
    %85 = math.tanh %84 : vector<8x128xf32>
    %86 = arith.mulf %81, %85 : vector<8x128xf32>
    %87 = arith.select %62, %86, %28 : vector<8x128xi1>, vector<8x128xf32>
    %88 = arith.select %62, %84, %29 : vector<8x128xi1>, vector<8x128xf32>
    %c0_31 = arith.constant 0 : index
    %c0_32 = arith.constant 0 : index
    %c0_33 = arith.constant 0 : index
    %89 = vector.load %arg4[%c0_31, %c0_32, %c0_33] : memref<1x128x512xf32, #tpu.memory_space<vmem>>, vector<1x128x512xf32>
    %90 = vector.shape_cast %89 : vector<1x128x512xf32> to vector<128x512xf32>
    %cst_34 = arith.constant dense<0.000000e+00> : vector<8x512xf32>
    %91 = tpu.matmul %59, %90, %cst_34 {dimension_numbers = #tpu.dot_dimension_numbers<[1], [0], [0], [1], [0, 0, 1, 1], [], []>} : vector<8x128xf32>, vector<128x512xf32>, vector<8x512xf32> -> vector<8x512xf32>
    %c0_35 = arith.constant 0 : index
    %c0_36 = arith.constant 0 : index
    %c0_37 = arith.constant 0 : index
    %92 = vector.load %arg3[%c0_35, %c0_36, %c0_37] : memref<1x128x512xf32, #tpu.memory_space<vmem>>, vector<1x128x512xf32>
    %93 = vector.shape_cast %92 : vector<1x128x512xf32> to vector<128x512xf32>
    %cst_38 = arith.constant dense<0.000000e+00> : vector<8x512xf32>
    %94 = tpu.matmul %87, %93, %cst_38 {dimension_numbers = #tpu.dot_dimension_numbers<[1], [0], [0], [1], [0, 0, 1, 1], [], []>} : vector<8x128xf32>, vector<128x512xf32>, vector<8x512xf32> -> vector<8x512xf32>
    %95 = arith.addf %91, %94 : vector<8x512xf32>
    %c0_39 = arith.constant 0 : index
    %c0_40 = arith.constant 0 : index
    %c0_41 = arith.constant 0 : index
    %96 = vector.load %arg5[%c0_39, %c0_40, %c0_41] : memref<1x1x512xf32, #tpu.memory_space<vmem>>, vector<1x1x512xf32>
    %97 = vector.shape_cast %96 : vector<1x1x512xf32> to vector<1x512xf32>
    %98 = vector.broadcast %97 : vector<1x512xf32> to vector<8x512xf32>
    %99 = arith.addf %95, %98 : vector<8x512xf32>
    %100 = vector.extract_strided_slice %99 {offsets = [0, 0], sizes = [8, 384], strides = [1, 1]} : vector<8x512xf32> to vector<8x384xf32>
    %cst_42 = arith.constant 5.000000e-01 : f32
    %101 = vector.broadcast %cst_42 : f32 to vector<8x384xf32>
    %102 = arith.mulf %101, %100 : vector<8x384xf32>
    %103 = math.tanh %102 : vector<8x384xf32>
    %cst_43 = arith.constant 5.000000e-01 : f32
    %104 = vector.broadcast %cst_43 : f32 to vector<8x384xf32>
    %105 = arith.mulf %104, %103 : vector<8x384xf32>
    %cst_44 = arith.constant 5.000000e-01 : f32
    %106 = vector.broadcast %cst_44 : f32 to vector<8x384xf32>
    %107 = arith.addf %105, %106 : vector<8x384xf32>
    %108 = vector.extract_strided_slice %99 {offsets = [0, 384], sizes = [8, 128], strides = [1, 1]} : vector<8x512xf32> to vector<8x128xf32>
    %109 = math.tanh %108 : vector<8x128xf32>
    %110 = vector.extract_strided_slice %107 {offsets = [0, 0], sizes = [8, 128], strides = [1, 1]} : vector<8x384xf32> to vector<8x128xf32>
    %111 = vector.extract_strided_slice %107 {offsets = [0, 128], sizes = [8, 128], strides = [1, 1]} : vector<8x384xf32> to vector<8x128xf32>
    %112 = vector.extract_strided_slice %107 {offsets = [0, 256], sizes = [8, 128], strides = [1, 1]} : vector<8x384xf32> to vector<8x128xf32>
    %113 = arith.mulf %111, %60 : vector<8x128xf32>
    %114 = arith.mulf %110, %109 : vector<8x128xf32>
    %115 = arith.addf %113, %114 : vector<8x128xf32>
    %116 = math.tanh %115 : vector<8x128xf32>
    %117 = arith.mulf %112, %116 : vector<8x128xf32>
    %118 = arith.select %62, %117, %59 : vector<8x128xi1>, vector<8x128xf32>
    %119 = arith.select %62, %115, %60 : vector<8x128xi1>, vector<8x128xf32>
    %c2_i32 = arith.constant 2 : i32
    %120 = vector.broadcast %c2_i32 : i32 to vector<8x128xi32>
    %121 = arith.cmpi slt, %120, %0 : vector<8x128xi32>
    %122 = arith.index_cast %c2_i32 : i32 to index
    %c0_45 = arith.constant 0 : index
    %c0_46 = arith.constant 0 : index
    %123 = vector.load %arg1[%122, %c0_45, %c0_46] : memref<8x8x512xf32, #tpu.memory_space<vmem>>, vector<1x8x512xf32>
    %124 = vector.shape_cast %123 : vector<1x8x512xf32> to vector<8x512xf32>
    %c0_47 = arith.constant 0 : index
    %c0_48 = arith.constant 0 : index
    %125 = vector.load %arg2[%c0_47, %c0_48] : memref<128x512xf32, #tpu.memory_space<vmem>>, vector<128x512xf32>
    %cst_49 = arith.constant dense<0.000000e+00> : vector<8x512xf32>
    %126 = tpu.matmul %87, %125, %cst_49 {dimension_numbers = #tpu.dot_dimension_numbers<[1], [0], [0], [1], [0, 0, 1, 1], [], []>} : vector<8x128xf32>, vector<128x512xf32>, vector<8x512xf32> -> vector<8x512xf32>
    %127 = arith.addf %124, %126 : vector<8x512xf32>
    %128 = vector.extract_strided_slice %127 {offsets = [0, 0], sizes = [8, 384], strides = [1, 1]} : vector<8x512xf32> to vector<8x384xf32>
    %cst_50 = arith.constant 5.000000e-01 : f32
    %129 = vector.broadcast %cst_50 : f32 to vector<8x384xf32>
    %130 = arith.mulf %129, %128 : vector<8x384xf32>
    %131 = math.tanh %130 : vector<8x384xf32>
    %cst_51 = arith.constant 5.000000e-01 : f32
    %132 = vector.broadcast %cst_51 : f32 to vector<8x384xf32>
    %133 = arith.mulf %132, %131 : vector<8x384xf32>
    %cst_52 = arith.constant 5.000000e-01 : f32
    %134 = vector.broadcast %cst_52 : f32 to vector<8x384xf32>
    %135 = arith.addf %133, %134 : vector<8x384xf32>
    %136 = vector.extract_strided_slice %127 {offsets = [0, 384], sizes = [8, 128], strides = [1, 1]} : vector<8x512xf32> to vector<8x128xf32>
    %137 = math.tanh %136 : vector<8x128xf32>
    %138 = vector.extract_strided_slice %135 {offsets = [0, 0], sizes = [8, 128], strides = [1, 1]} : vector<8x384xf32> to vector<8x128xf32>
    %139 = vector.extract_strided_slice %135 {offsets = [0, 128], sizes = [8, 128], strides = [1, 1]} : vector<8x384xf32> to vector<8x128xf32>
    %140 = vector.extract_strided_slice %135 {offsets = [0, 256], sizes = [8, 128], strides = [1, 1]} : vector<8x384xf32> to vector<8x128xf32>
    %141 = arith.mulf %139, %88 : vector<8x128xf32>
    %142 = arith.mulf %138, %137 : vector<8x128xf32>
    %143 = arith.addf %141, %142 : vector<8x128xf32>
    %144 = math.tanh %143 : vector<8x128xf32>
    %145 = arith.mulf %140, %144 : vector<8x128xf32>
    %146 = arith.select %121, %145, %87 : vector<8x128xi1>, vector<8x128xf32>
    %147 = arith.select %121, %143, %88 : vector<8x128xi1>, vector<8x128xf32>
    %c0_53 = arith.constant 0 : index
    %c0_54 = arith.constant 0 : index
    %c0_55 = arith.constant 0 : index
    %148 = vector.load %arg4[%c0_53, %c0_54, %c0_55] : memref<1x128x512xf32, #tpu.memory_space<vmem>>, vector<1x128x512xf32>
    %149 = vector.shape_cast %148 : vector<1x128x512xf32> to vector<128x512xf32>
    %cst_56 = arith.constant dense<0.000000e+00> : vector<8x512xf32>
    %150 = tpu.matmul %118, %149, %cst_56 {dimension_numbers = #tpu.dot_dimension_numbers<[1], [0], [0], [1], [0, 0, 1, 1], [], []>} : vector<8x128xf32>, vector<128x512xf32>, vector<8x512xf32> -> vector<8x512xf32>
    %c0_57 = arith.constant 0 : index
    %c0_58 = arith.constant 0 : index
    %c0_59 = arith.constant 0 : index
    %151 = vector.load %arg3[%c0_57, %c0_58, %c0_59] : memref<1x128x512xf32, #tpu.memory_space<vmem>>, vector<1x128x512xf32>
    %152 = vector.shape_cast %151 : vector<1x128x512xf32> to vector<128x512xf32>
    %cst_60 = arith.constant dense<0.000000e+00> : vector<8x512xf32>
    %153 = tpu.matmul %146, %152, %cst_60 {dimension_numbers = #tpu.dot_dimension_numbers<[1], [0], [0], [1], [0, 0, 1, 1], [], []>} : vector<8x128xf32>, vector<128x512xf32>, vector<8x512xf32> -> vector<8x512xf32>
    %154 = arith.addf %150, %153 : vector<8x512xf32>
    %c0_61 = arith.constant 0 : index
    %c0_62 = arith.constant 0 : index
    %c0_63 = arith.constant 0 : index
    %155 = vector.load %arg5[%c0_61, %c0_62, %c0_63] : memref<1x1x512xf32, #tpu.memory_space<vmem>>, vector<1x1x512xf32>
    %156 = vector.shape_cast %155 : vector<1x1x512xf32> to vector<1x512xf32>
    %157 = vector.broadcast %156 : vector<1x512xf32> to vector<8x512xf32>
    %158 = arith.addf %154, %157 : vector<8x512xf32>
    %159 = vector.extract_strided_slice %158 {offsets = [0, 0], sizes = [8, 384], strides = [1, 1]} : vector<8x512xf32> to vector<8x384xf32>
    %cst_64 = arith.constant 5.000000e-01 : f32
    %160 = vector.broadcast %cst_64 : f32 to vector<8x384xf32>
    %161 = arith.mulf %160, %159 : vector<8x384xf32>
    %162 = math.tanh %161 : vector<8x384xf32>
    %cst_65 = arith.constant 5.000000e-01 : f32
    %163 = vector.broadcast %cst_65 : f32 to vector<8x384xf32>
    %164 = arith.mulf %163, %162 : vector<8x384xf32>
    %cst_66 = arith.constant 5.000000e-01 : f32
    %165 = vector.broadcast %cst_66 : f32 to vector<8x384xf32>
    %166 = arith.addf %164, %165 : vector<8x384xf32>
    %167 = vector.extract_strided_slice %158 {offsets = [0, 384], sizes = [8, 128], strides = [1, 1]} : vector<8x512xf32> to vector<8x128xf32>
    %168 = math.tanh %167 : vector<8x128xf32>
    %169 = vector.extract_strided_slice %166 {offsets = [0, 0], sizes = [8, 128], strides = [1, 1]} : vector<8x384xf32> to vector<8x128xf32>
    %170 = vector.extract_strided_slice %166 {offsets = [0, 128], sizes = [8, 128], strides = [1, 1]} : vector<8x384xf32> to vector<8x128xf32>
    %171 = vector.extract_strided_slice %166 {offsets = [0, 256], sizes = [8, 128], strides = [1, 1]} : vector<8x384xf32> to vector<8x128xf32>
    %172 = arith.mulf %170, %119 : vector<8x128xf32>
    %173 = arith.mulf %169, %168 : vector<8x128xf32>
    %174 = arith.addf %172, %173 : vector<8x128xf32>
    %175 = math.tanh %174 : vector<8x128xf32>
    %176 = arith.mulf %171, %175 : vector<8x128xf32>
    %177 = arith.select %121, %176, %118 : vector<8x128xi1>, vector<8x128xf32>
    %178 = arith.select %121, %174, %119 : vector<8x128xi1>, vector<8x128xf32>
    %c3_i32 = arith.constant 3 : i32
    %179 = vector.broadcast %c3_i32 : i32 to vector<8x128xi32>
    %180 = arith.cmpi slt, %179, %0 : vector<8x128xi32>
    %181 = arith.index_cast %c3_i32 : i32 to index
    %c0_67 = arith.constant 0 : index
    %c0_68 = arith.constant 0 : index
    %182 = vector.load %arg1[%181, %c0_67, %c0_68] : memref<8x8x512xf32, #tpu.memory_space<vmem>>, vector<1x8x512xf32>
    %183 = vector.shape_cast %182 : vector<1x8x512xf32> to vector<8x512xf32>
    %c0_69 = arith.constant 0 : index
    %c0_70 = arith.constant 0 : index
    %184 = vector.load %arg2[%c0_69, %c0_70] : memref<128x512xf32, #tpu.memory_space<vmem>>, vector<128x512xf32>
    %cst_71 = arith.constant dense<0.000000e+00> : vector<8x512xf32>
    %185 = tpu.matmul %146, %184, %cst_71 {dimension_numbers = #tpu.dot_dimension_numbers<[1], [0], [0], [1], [0, 0, 1, 1], [], []>} : vector<8x128xf32>, vector<128x512xf32>, vector<8x512xf32> -> vector<8x512xf32>
    %186 = arith.addf %183, %185 : vector<8x512xf32>
    %187 = vector.extract_strided_slice %186 {offsets = [0, 0], sizes = [8, 384], strides = [1, 1]} : vector<8x512xf32> to vector<8x384xf32>
    %cst_72 = arith.constant 5.000000e-01 : f32
    %188 = vector.broadcast %cst_72 : f32 to vector<8x384xf32>
    %189 = arith.mulf %188, %187 : vector<8x384xf32>
    %190 = math.tanh %189 : vector<8x384xf32>
    %cst_73 = arith.constant 5.000000e-01 : f32
    %191 = vector.broadcast %cst_73 : f32 to vector<8x384xf32>
    %192 = arith.mulf %191, %190 : vector<8x384xf32>
    %cst_74 = arith.constant 5.000000e-01 : f32
    %193 = vector.broadcast %cst_74 : f32 to vector<8x384xf32>
    %194 = arith.addf %192, %193 : vector<8x384xf32>
    %195 = vector.extract_strided_slice %186 {offsets = [0, 384], sizes = [8, 128], strides = [1, 1]} : vector<8x512xf32> to vector<8x128xf32>
    %196 = math.tanh %195 : vector<8x128xf32>
    %197 = vector.extract_strided_slice %194 {offsets = [0, 0], sizes = [8, 128], strides = [1, 1]} : vector<8x384xf32> to vector<8x128xf32>
    %198 = vector.extract_strided_slice %194 {offsets = [0, 128], sizes = [8, 128], strides = [1, 1]} : vector<8x384xf32> to vector<8x128xf32>
    %199 = vector.extract_strided_slice %194 {offsets = [0, 256], sizes = [8, 128], strides = [1, 1]} : vector<8x384xf32> to vector<8x128xf32>
    %200 = arith.mulf %198, %147 : vector<8x128xf32>
    %201 = arith.mulf %197, %196 : vector<8x128xf32>
    %202 = arith.addf %200, %201 : vector<8x128xf32>
    %203 = math.tanh %202 : vector<8x128xf32>
    %204 = arith.mulf %199, %203 : vector<8x128xf32>
    %205 = arith.select %180, %204, %146 : vector<8x128xi1>, vector<8x128xf32>
    %206 = arith.select %180, %202, %147 : vector<8x128xi1>, vector<8x128xf32>
    %c0_75 = arith.constant 0 : index
    %c0_76 = arith.constant 0 : index
    %c0_77 = arith.constant 0 : index
    %207 = vector.load %arg4[%c0_75, %c0_76, %c0_77] : memref<1x128x512xf32, #tpu.memory_space<vmem>>, vector<1x128x512xf32>
    %208 = vector.shape_cast %207 : vector<1x128x512xf32> to vector<128x512xf32>
    %cst_78 = arith.constant dense<0.000000e+00> : vector<8x512xf32>
    %209 = tpu.matmul %177, %208, %cst_78 {dimension_numbers = #tpu.dot_dimension_numbers<[1], [0], [0], [1], [0, 0, 1, 1], [], []>} : vector<8x128xf32>, vector<128x512xf32>, vector<8x512xf32> -> vector<8x512xf32>
    %c0_79 = arith.constant 0 : index
    %c0_80 = arith.constant 0 : index
    %c0_81 = arith.constant 0 : index
    %210 = vector.load %arg3[%c0_79, %c0_80, %c0_81] : memref<1x128x512xf32, #tpu.memory_space<vmem>>, vector<1x128x512xf32>
    %211 = vector.shape_cast %210 : vector<1x128x512xf32> to vector<128x512xf32>
    %cst_82 = arith.constant dense<0.000000e+00> : vector<8x512xf32>
    %212 = tpu.matmul %205, %211, %cst_82 {dimension_numbers = #tpu.dot_dimension_numbers<[1], [0], [0], [1], [0, 0, 1, 1], [], []>} : vector<8x128xf32>, vector<128x512xf32>, vector<8x512xf32> -> vector<8x512xf32>
    %213 = arith.addf %209, %212 : vector<8x512xf32>
    %c0_83 = arith.constant 0 : index
    %c0_84 = arith.constant 0 : index
    %c0_85 = arith.constant 0 : index
    %214 = vector.load %arg5[%c0_83, %c0_84, %c0_85] : memref<1x1x512xf32, #tpu.memory_space<vmem>>, vector<1x1x512xf32>
    %215 = vector.shape_cast %214 : vector<1x1x512xf32> to vector<1x512xf32>
    %216 = vector.broadcast %215 : vector<1x512xf32> to vector<8x512xf32>
    %217 = arith.addf %213, %216 : vector<8x512xf32>
    %218 = vector.extract_strided_slice %217 {offsets = [0, 0], sizes = [8, 384], strides = [1, 1]} : vector<8x512xf32> to vector<8x384xf32>
    %cst_86 = arith.constant 5.000000e-01 : f32
    %219 = vector.broadcast %cst_86 : f32 to vector<8x384xf32>
    %220 = arith.mulf %219, %218 : vector<8x384xf32>
    %221 = math.tanh %220 : vector<8x384xf32>
    %cst_87 = arith.constant 5.000000e-01 : f32
    %222 = vector.broadcast %cst_87 : f32 to vector<8x384xf32>
    %223 = arith.mulf %222, %221 : vector<8x384xf32>
    %cst_88 = arith.constant 5.000000e-01 : f32
    %224 = vector.broadcast %cst_88 : f32 to vector<8x384xf32>
    %225 = arith.addf %223, %224 : vector<8x384xf32>
    %226 = vector.extract_strided_slice %217 {offsets = [0, 384], sizes = [8, 128], strides = [1, 1]} : vector<8x512xf32> to vector<8x128xf32>
    %227 = math.tanh %226 : vector<8x128xf32>
    %228 = vector.extract_strided_slice %225 {offsets = [0, 0], sizes = [8, 128], strides = [1, 1]} : vector<8x384xf32> to vector<8x128xf32>
    %229 = vector.extract_strided_slice %225 {offsets = [0, 128], sizes = [8, 128], strides = [1, 1]} : vector<8x384xf32> to vector<8x128xf32>
    %230 = vector.extract_strided_slice %225 {offsets = [0, 256], sizes = [8, 128], strides = [1, 1]} : vector<8x384xf32> to vector<8x128xf32>
    %231 = arith.mulf %229, %178 : vector<8x128xf32>
    %232 = arith.mulf %228, %227 : vector<8x128xf32>
    %233 = arith.addf %231, %232 : vector<8x128xf32>
    %234 = math.tanh %233 : vector<8x128xf32>
    %235 = arith.mulf %230, %234 : vector<8x128xf32>
    %236 = arith.select %180, %235, %177 : vector<8x128xi1>, vector<8x128xf32>
    %237 = arith.select %180, %233, %178 : vector<8x128xi1>, vector<8x128xf32>
    %c4_i32 = arith.constant 4 : i32
    %238 = vector.broadcast %c4_i32 : i32 to vector<8x128xi32>
    %239 = arith.cmpi slt, %238, %0 : vector<8x128xi32>
    %240 = arith.index_cast %c4_i32 : i32 to index
    %c0_89 = arith.constant 0 : index
    %c0_90 = arith.constant 0 : index
    %241 = vector.load %arg1[%240, %c0_89, %c0_90] : memref<8x8x512xf32, #tpu.memory_space<vmem>>, vector<1x8x512xf32>
    %242 = vector.shape_cast %241 : vector<1x8x512xf32> to vector<8x512xf32>
    %c0_91 = arith.constant 0 : index
    %c0_92 = arith.constant 0 : index
    %243 = vector.load %arg2[%c0_91, %c0_92] : memref<128x512xf32, #tpu.memory_space<vmem>>, vector<128x512xf32>
    %cst_93 = arith.constant dense<0.000000e+00> : vector<8x512xf32>
    %244 = tpu.matmul %205, %243, %cst_93 {dimension_numbers = #tpu.dot_dimension_numbers<[1], [0], [0], [1], [0, 0, 1, 1], [], []>} : vector<8x128xf32>, vector<128x512xf32>, vector<8x512xf32> -> vector<8x512xf32>
    %245 = arith.addf %242, %244 : vector<8x512xf32>
    %246 = vector.extract_strided_slice %245 {offsets = [0, 0], sizes = [8, 384], strides = [1, 1]} : vector<8x512xf32> to vector<8x384xf32>
    %cst_94 = arith.constant 5.000000e-01 : f32
    %247 = vector.broadcast %cst_94 : f32 to vector<8x384xf32>
    %248 = arith.mulf %247, %246 : vector<8x384xf32>
    %249 = math.tanh %248 : vector<8x384xf32>
    %cst_95 = arith.constant 5.000000e-01 : f32
    %250 = vector.broadcast %cst_95 : f32 to vector<8x384xf32>
    %251 = arith.mulf %250, %249 : vector<8x384xf32>
    %cst_96 = arith.constant 5.000000e-01 : f32
    %252 = vector.broadcast %cst_96 : f32 to vector<8x384xf32>
    %253 = arith.addf %251, %252 : vector<8x384xf32>
    %254 = vector.extract_strided_slice %245 {offsets = [0, 384], sizes = [8, 128], strides = [1, 1]} : vector<8x512xf32> to vector<8x128xf32>
    %255 = math.tanh %254 : vector<8x128xf32>
    %256 = vector.extract_strided_slice %253 {offsets = [0, 0], sizes = [8, 128], strides = [1, 1]} : vector<8x384xf32> to vector<8x128xf32>
    %257 = vector.extract_strided_slice %253 {offsets = [0, 128], sizes = [8, 128], strides = [1, 1]} : vector<8x384xf32> to vector<8x128xf32>
    %258 = vector.extract_strided_slice %253 {offsets = [0, 256], sizes = [8, 128], strides = [1, 1]} : vector<8x384xf32> to vector<8x128xf32>
    %259 = arith.mulf %257, %206 : vector<8x128xf32>
    %260 = arith.mulf %256, %255 : vector<8x128xf32>
    %261 = arith.addf %259, %260 : vector<8x128xf32>
    %262 = math.tanh %261 : vector<8x128xf32>
    %263 = arith.mulf %258, %262 : vector<8x128xf32>
    %264 = arith.select %239, %263, %205 : vector<8x128xi1>, vector<8x128xf32>
    %265 = arith.select %239, %261, %206 : vector<8x128xi1>, vector<8x128xf32>
    %c0_97 = arith.constant 0 : index
    %c0_98 = arith.constant 0 : index
    %c0_99 = arith.constant 0 : index
    %266 = vector.load %arg4[%c0_97, %c0_98, %c0_99] : memref<1x128x512xf32, #tpu.memory_space<vmem>>, vector<1x128x512xf32>
    %267 = vector.shape_cast %266 : vector<1x128x512xf32> to vector<128x512xf32>
    %cst_100 = arith.constant dense<0.000000e+00> : vector<8x512xf32>
    %268 = tpu.matmul %236, %267, %cst_100 {dimension_numbers = #tpu.dot_dimension_numbers<[1], [0], [0], [1], [0, 0, 1, 1], [], []>} : vector<8x128xf32>, vector<128x512xf32>, vector<8x512xf32> -> vector<8x512xf32>
    %c0_101 = arith.constant 0 : index
    %c0_102 = arith.constant 0 : index
    %c0_103 = arith.constant 0 : index
    %269 = vector.load %arg3[%c0_101, %c0_102, %c0_103] : memref<1x128x512xf32, #tpu.memory_space<vmem>>, vector<1x128x512xf32>
    %270 = vector.shape_cast %269 : vector<1x128x512xf32> to vector<128x512xf32>
    %cst_104 = arith.constant dense<0.000000e+00> : vector<8x512xf32>
    %271 = tpu.matmul %264, %270, %cst_104 {dimension_numbers = #tpu.dot_dimension_numbers<[1], [0], [0], [1], [0, 0, 1, 1], [], []>} : vector<8x128xf32>, vector<128x512xf32>, vector<8x512xf32> -> vector<8x512xf32>
    %272 = arith.addf %268, %271 : vector<8x512xf32>
    %c0_105 = arith.constant 0 : index
    %c0_106 = arith.constant 0 : index
    %c0_107 = arith.constant 0 : index
    %273 = vector.load %arg5[%c0_105, %c0_106, %c0_107] : memref<1x1x512xf32, #tpu.memory_space<vmem>>, vector<1x1x512xf32>
    %274 = vector.shape_cast %273 : vector<1x1x512xf32> to vector<1x512xf32>
    %275 = vector.broadcast %274 : vector<1x512xf32> to vector<8x512xf32>
    %276 = arith.addf %272, %275 : vector<8x512xf32>
    %277 = vector.extract_strided_slice %276 {offsets = [0, 0], sizes = [8, 384], strides = [1, 1]} : vector<8x512xf32> to vector<8x384xf32>
    %cst_108 = arith.constant 5.000000e-01 : f32
    %278 = vector.broadcast %cst_108 : f32 to vector<8x384xf32>
    %279 = arith.mulf %278, %277 : vector<8x384xf32>
    %280 = math.tanh %279 : vector<8x384xf32>
    %cst_109 = arith.constant 5.000000e-01 : f32
    %281 = vector.broadcast %cst_109 : f32 to vector<8x384xf32>
    %282 = arith.mulf %281, %280 : vector<8x384xf32>
    %cst_110 = arith.constant 5.000000e-01 : f32
    %283 = vector.broadcast %cst_110 : f32 to vector<8x384xf32>
    %284 = arith.addf %282, %283 : vector<8x384xf32>
    %285 = vector.extract_strided_slice %276 {offsets = [0, 384], sizes = [8, 128], strides = [1, 1]} : vector<8x512xf32> to vector<8x128xf32>
    %286 = math.tanh %285 : vector<8x128xf32>
    %287 = vector.extract_strided_slice %284 {offsets = [0, 0], sizes = [8, 128], strides = [1, 1]} : vector<8x384xf32> to vector<8x128xf32>
    %288 = vector.extract_strided_slice %284 {offsets = [0, 128], sizes = [8, 128], strides = [1, 1]} : vector<8x384xf32> to vector<8x128xf32>
    %289 = vector.extract_strided_slice %284 {offsets = [0, 256], sizes = [8, 128], strides = [1, 1]} : vector<8x384xf32> to vector<8x128xf32>
    %290 = arith.mulf %288, %237 : vector<8x128xf32>
    %291 = arith.mulf %287, %286 : vector<8x128xf32>
    %292 = arith.addf %290, %291 : vector<8x128xf32>
    %293 = math.tanh %292 : vector<8x128xf32>
    %294 = arith.mulf %289, %293 : vector<8x128xf32>
    %295 = arith.select %239, %294, %236 : vector<8x128xi1>, vector<8x128xf32>
    %296 = arith.select %239, %292, %237 : vector<8x128xi1>, vector<8x128xf32>
    %c5_i32 = arith.constant 5 : i32
    %297 = vector.broadcast %c5_i32 : i32 to vector<8x128xi32>
    %298 = arith.cmpi slt, %297, %0 : vector<8x128xi32>
    %299 = arith.index_cast %c5_i32 : i32 to index
    %c0_111 = arith.constant 0 : index
    %c0_112 = arith.constant 0 : index
    %300 = vector.load %arg1[%299, %c0_111, %c0_112] : memref<8x8x512xf32, #tpu.memory_space<vmem>>, vector<1x8x512xf32>
    %301 = vector.shape_cast %300 : vector<1x8x512xf32> to vector<8x512xf32>
    %c0_113 = arith.constant 0 : index
    %c0_114 = arith.constant 0 : index
    %302 = vector.load %arg2[%c0_113, %c0_114] : memref<128x512xf32, #tpu.memory_space<vmem>>, vector<128x512xf32>
    %cst_115 = arith.constant dense<0.000000e+00> : vector<8x512xf32>
    %303 = tpu.matmul %264, %302, %cst_115 {dimension_numbers = #tpu.dot_dimension_numbers<[1], [0], [0], [1], [0, 0, 1, 1], [], []>} : vector<8x128xf32>, vector<128x512xf32>, vector<8x512xf32> -> vector<8x512xf32>
    %304 = arith.addf %301, %303 : vector<8x512xf32>
    %305 = vector.extract_strided_slice %304 {offsets = [0, 0], sizes = [8, 384], strides = [1, 1]} : vector<8x512xf32> to vector<8x384xf32>
    %cst_116 = arith.constant 5.000000e-01 : f32
    %306 = vector.broadcast %cst_116 : f32 to vector<8x384xf32>
    %307 = arith.mulf %306, %305 : vector<8x384xf32>
    %308 = math.tanh %307 : vector<8x384xf32>
    %cst_117 = arith.constant 5.000000e-01 : f32
    %309 = vector.broadcast %cst_117 : f32 to vector<8x384xf32>
    %310 = arith.mulf %309, %308 : vector<8x384xf32>
    %cst_118 = arith.constant 5.000000e-01 : f32
    %311 = vector.broadcast %cst_118 : f32 to vector<8x384xf32>
    %312 = arith.addf %310, %311 : vector<8x384xf32>
    %313 = vector.extract_strided_slice %304 {offsets = [0, 384], sizes = [8, 128], strides = [1, 1]} : vector<8x512xf32> to vector<8x128xf32>
    %314 = math.tanh %313 : vector<8x128xf32>
    %315 = vector.extract_strided_slice %312 {offsets = [0, 0], sizes = [8, 128], strides = [1, 1]} : vector<8x384xf32> to vector<8x128xf32>
    %316 = vector.extract_strided_slice %312 {offsets = [0, 128], sizes = [8, 128], strides = [1, 1]} : vector<8x384xf32> to vector<8x128xf32>
    %317 = vector.extract_strided_slice %312 {offsets = [0, 256], sizes = [8, 128], strides = [1, 1]} : vector<8x384xf32> to vector<8x128xf32>
    %318 = arith.mulf %316, %265 : vector<8x128xf32>
    %319 = arith.mulf %315, %314 : vector<8x128xf32>
    %320 = arith.addf %318, %319 : vector<8x128xf32>
    %321 = math.tanh %320 : vector<8x128xf32>
    %322 = arith.mulf %317, %321 : vector<8x128xf32>
    %323 = arith.select %298, %322, %264 : vector<8x128xi1>, vector<8x128xf32>
    %324 = arith.select %298, %320, %265 : vector<8x128xi1>, vector<8x128xf32>
    %c0_119 = arith.constant 0 : index
    %c0_120 = arith.constant 0 : index
    %c0_121 = arith.constant 0 : index
    %325 = vector.load %arg4[%c0_119, %c0_120, %c0_121] : memref<1x128x512xf32, #tpu.memory_space<vmem>>, vector<1x128x512xf32>
    %326 = vector.shape_cast %325 : vector<1x128x512xf32> to vector<128x512xf32>
    %cst_122 = arith.constant dense<0.000000e+00> : vector<8x512xf32>
    %327 = tpu.matmul %295, %326, %cst_122 {dimension_numbers = #tpu.dot_dimension_numbers<[1], [0], [0], [1], [0, 0, 1, 1], [], []>} : vector<8x128xf32>, vector<128x512xf32>, vector<8x512xf32> -> vector<8x512xf32>
    %c0_123 = arith.constant 0 : index
    %c0_124 = arith.constant 0 : index
    %c0_125 = arith.constant 0 : index
    %328 = vector.load %arg3[%c0_123, %c0_124, %c0_125] : memref<1x128x512xf32, #tpu.memory_space<vmem>>, vector<1x128x512xf32>
    %329 = vector.shape_cast %328 : vector<1x128x512xf32> to vector<128x512xf32>
    %cst_126 = arith.constant dense<0.000000e+00> : vector<8x512xf32>
    %330 = tpu.matmul %323, %329, %cst_126 {dimension_numbers = #tpu.dot_dimension_numbers<[1], [0], [0], [1], [0, 0, 1, 1], [], []>} : vector<8x128xf32>, vector<128x512xf32>, vector<8x512xf32> -> vector<8x512xf32>
    %331 = arith.addf %327, %330 : vector<8x512xf32>
    %c0_127 = arith.constant 0 : index
    %c0_128 = arith.constant 0 : index
    %c0_129 = arith.constant 0 : index
    %332 = vector.load %arg5[%c0_127, %c0_128, %c0_129] : memref<1x1x512xf32, #tpu.memory_space<vmem>>, vector<1x1x512xf32>
    %333 = vector.shape_cast %332 : vector<1x1x512xf32> to vector<1x512xf32>
    %334 = vector.broadcast %333 : vector<1x512xf32> to vector<8x512xf32>
    %335 = arith.addf %331, %334 : vector<8x512xf32>
    %336 = vector.extract_strided_slice %335 {offsets = [0, 0], sizes = [8, 384], strides = [1, 1]} : vector<8x512xf32> to vector<8x384xf32>
    %cst_130 = arith.constant 5.000000e-01 : f32
    %337 = vector.broadcast %cst_130 : f32 to vector<8x384xf32>
    %338 = arith.mulf %337, %336 : vector<8x384xf32>
    %339 = math.tanh %338 : vector<8x384xf32>
    %cst_131 = arith.constant 5.000000e-01 : f32
    %340 = vector.broadcast %cst_131 : f32 to vector<8x384xf32>
    %341 = arith.mulf %340, %339 : vector<8x384xf32>
    %cst_132 = arith.constant 5.000000e-01 : f32
    %342 = vector.broadcast %cst_132 : f32 to vector<8x384xf32>
    %343 = arith.addf %341, %342 : vector<8x384xf32>
    %344 = vector.extract_strided_slice %335 {offsets = [0, 384], sizes = [8, 128], strides = [1, 1]} : vector<8x512xf32> to vector<8x128xf32>
    %345 = math.tanh %344 : vector<8x128xf32>
    %346 = vector.extract_strided_slice %343 {offsets = [0, 0], sizes = [8, 128], strides = [1, 1]} : vector<8x384xf32> to vector<8x128xf32>
    %347 = vector.extract_strided_slice %343 {offsets = [0, 128], sizes = [8, 128], strides = [1, 1]} : vector<8x384xf32> to vector<8x128xf32>
    %348 = vector.extract_strided_slice %343 {offsets = [0, 256], sizes = [8, 128], strides = [1, 1]} : vector<8x384xf32> to vector<8x128xf32>
    %349 = arith.mulf %347, %296 : vector<8x128xf32>
    %350 = arith.mulf %346, %345 : vector<8x128xf32>
    %351 = arith.addf %349, %350 : vector<8x128xf32>
    %352 = math.tanh %351 : vector<8x128xf32>
    %353 = arith.mulf %348, %352 : vector<8x128xf32>
    %354 = arith.select %298, %353, %295 : vector<8x128xi1>, vector<8x128xf32>
    %355 = arith.select %298, %351, %296 : vector<8x128xi1>, vector<8x128xf32>
    %c6_i32 = arith.constant 6 : i32
    %356 = vector.broadcast %c6_i32 : i32 to vector<8x128xi32>
    %357 = arith.cmpi slt, %356, %0 : vector<8x128xi32>
    %358 = arith.index_cast %c6_i32 : i32 to index
    %c0_133 = arith.constant 0 : index
    %c0_134 = arith.constant 0 : index
    %359 = vector.load %arg1[%358, %c0_133, %c0_134] : memref<8x8x512xf32, #tpu.memory_space<vmem>>, vector<1x8x512xf32>
    %360 = vector.shape_cast %359 : vector<1x8x512xf32> to vector<8x512xf32>
    %c0_135 = arith.constant 0 : index
    %c0_136 = arith.constant 0 : index
    %361 = vector.load %arg2[%c0_135, %c0_136] : memref<128x512xf32, #tpu.memory_space<vmem>>, vector<128x512xf32>
    %cst_137 = arith.constant dense<0.000000e+00> : vector<8x512xf32>
    %362 = tpu.matmul %323, %361, %cst_137 {dimension_numbers = #tpu.dot_dimension_numbers<[1], [0], [0], [1], [0, 0, 1, 1], [], []>} : vector<8x128xf32>, vector<128x512xf32>, vector<8x512xf32> -> vector<8x512xf32>
    %363 = arith.addf %360, %362 : vector<8x512xf32>
    %364 = vector.extract_strided_slice %363 {offsets = [0, 0], sizes = [8, 384], strides = [1, 1]} : vector<8x512xf32> to vector<8x384xf32>
    %cst_138 = arith.constant 5.000000e-01 : f32
    %365 = vector.broadcast %cst_138 : f32 to vector<8x384xf32>
    %366 = arith.mulf %365, %364 : vector<8x384xf32>
    %367 = math.tanh %366 : vector<8x384xf32>
    %cst_139 = arith.constant 5.000000e-01 : f32
    %368 = vector.broadcast %cst_139 : f32 to vector<8x384xf32>
    %369 = arith.mulf %368, %367 : vector<8x384xf32>
    %cst_140 = arith.constant 5.000000e-01 : f32
    %370 = vector.broadcast %cst_140 : f32 to vector<8x384xf32>
    %371 = arith.addf %369, %370 : vector<8x384xf32>
    %372 = vector.extract_strided_slice %363 {offsets = [0, 384], sizes = [8, 128], strides = [1, 1]} : vector<8x512xf32> to vector<8x128xf32>
    %373 = math.tanh %372 : vector<8x128xf32>
    %374 = vector.extract_strided_slice %371 {offsets = [0, 0], sizes = [8, 128], strides = [1, 1]} : vector<8x384xf32> to vector<8x128xf32>
    %375 = vector.extract_strided_slice %371 {offsets = [0, 128], sizes = [8, 128], strides = [1, 1]} : vector<8x384xf32> to vector<8x128xf32>
    %376 = vector.extract_strided_slice %371 {offsets = [0, 256], sizes = [8, 128], strides = [1, 1]} : vector<8x384xf32> to vector<8x128xf32>
    %377 = arith.mulf %375, %324 : vector<8x128xf32>
    %378 = arith.mulf %374, %373 : vector<8x128xf32>
    %379 = arith.addf %377, %378 : vector<8x128xf32>
    %380 = math.tanh %379 : vector<8x128xf32>
    %381 = arith.mulf %376, %380 : vector<8x128xf32>
    %382 = arith.select %357, %381, %323 : vector<8x128xi1>, vector<8x128xf32>
    %383 = arith.select %357, %379, %324 : vector<8x128xi1>, vector<8x128xf32>
    %c0_141 = arith.constant 0 : index
    %c0_142 = arith.constant 0 : index
    %c0_143 = arith.constant 0 : index
    %384 = vector.load %arg4[%c0_141, %c0_142, %c0_143] : memref<1x128x512xf32, #tpu.memory_space<vmem>>, vector<1x128x512xf32>
    %385 = vector.shape_cast %384 : vector<1x128x512xf32> to vector<128x512xf32>
    %cst_144 = arith.constant dense<0.000000e+00> : vector<8x512xf32>
    %386 = tpu.matmul %354, %385, %cst_144 {dimension_numbers = #tpu.dot_dimension_numbers<[1], [0], [0], [1], [0, 0, 1, 1], [], []>} : vector<8x128xf32>, vector<128x512xf32>, vector<8x512xf32> -> vector<8x512xf32>
    %c0_145 = arith.constant 0 : index
    %c0_146 = arith.constant 0 : index
    %c0_147 = arith.constant 0 : index
    %387 = vector.load %arg3[%c0_145, %c0_146, %c0_147] : memref<1x128x512xf32, #tpu.memory_space<vmem>>, vector<1x128x512xf32>
    %388 = vector.shape_cast %387 : vector<1x128x512xf32> to vector<128x512xf32>
    %cst_148 = arith.constant dense<0.000000e+00> : vector<8x512xf32>
    %389 = tpu.matmul %382, %388, %cst_148 {dimension_numbers = #tpu.dot_dimension_numbers<[1], [0], [0], [1], [0, 0, 1, 1], [], []>} : vector<8x128xf32>, vector<128x512xf32>, vector<8x512xf32> -> vector<8x512xf32>
    %390 = arith.addf %386, %389 : vector<8x512xf32>
    %c0_149 = arith.constant 0 : index
    %c0_150 = arith.constant 0 : index
    %c0_151 = arith.constant 0 : index
    %391 = vector.load %arg5[%c0_149, %c0_150, %c0_151] : memref<1x1x512xf32, #tpu.memory_space<vmem>>, vector<1x1x512xf32>
    %392 = vector.shape_cast %391 : vector<1x1x512xf32> to vector<1x512xf32>
    %393 = vector.broadcast %392 : vector<1x512xf32> to vector<8x512xf32>
    %394 = arith.addf %390, %393 : vector<8x512xf32>
    %395 = vector.extract_strided_slice %394 {offsets = [0, 0], sizes = [8, 384], strides = [1, 1]} : vector<8x512xf32> to vector<8x384xf32>
    %cst_152 = arith.constant 5.000000e-01 : f32
    %396 = vector.broadcast %cst_152 : f32 to vector<8x384xf32>
    %397 = arith.mulf %396, %395 : vector<8x384xf32>
    %398 = math.tanh %397 : vector<8x384xf32>
    %cst_153 = arith.constant 5.000000e-01 : f32
    %399 = vector.broadcast %cst_153 : f32 to vector<8x384xf32>
    %400 = arith.mulf %399, %398 : vector<8x384xf32>
    %cst_154 = arith.constant 5.000000e-01 : f32
    %401 = vector.broadcast %cst_154 : f32 to vector<8x384xf32>
    %402 = arith.addf %400, %401 : vector<8x384xf32>
    %403 = vector.extract_strided_slice %394 {offsets = [0, 384], sizes = [8, 128], strides = [1, 1]} : vector<8x512xf32> to vector<8x128xf32>
    %404 = math.tanh %403 : vector<8x128xf32>
    %405 = vector.extract_strided_slice %402 {offsets = [0, 0], sizes = [8, 128], strides = [1, 1]} : vector<8x384xf32> to vector<8x128xf32>
    %406 = vector.extract_strided_slice %402 {offsets = [0, 128], sizes = [8, 128], strides = [1, 1]} : vector<8x384xf32> to vector<8x128xf32>
    %407 = vector.extract_strided_slice %402 {offsets = [0, 256], sizes = [8, 128], strides = [1, 1]} : vector<8x384xf32> to vector<8x128xf32>
    %408 = arith.mulf %406, %355 : vector<8x128xf32>
    %409 = arith.mulf %405, %404 : vector<8x128xf32>
    %410 = arith.addf %408, %409 : vector<8x128xf32>
    %411 = math.tanh %410 : vector<8x128xf32>
    %412 = arith.mulf %407, %411 : vector<8x128xf32>
    %413 = arith.select %357, %412, %354 : vector<8x128xi1>, vector<8x128xf32>
    %414 = arith.select %357, %410, %355 : vector<8x128xi1>, vector<8x128xf32>
    %c7_i32 = arith.constant 7 : i32
    %415 = vector.broadcast %c7_i32 : i32 to vector<8x128xi32>
    %416 = arith.cmpi slt, %415, %0 : vector<8x128xi32>
    %417 = arith.index_cast %c7_i32 : i32 to index
    %c0_155 = arith.constant 0 : index
    %c0_156 = arith.constant 0 : index
    %418 = vector.load %arg1[%417, %c0_155, %c0_156] : memref<8x8x512xf32, #tpu.memory_space<vmem>>, vector<1x8x512xf32>
    %419 = vector.shape_cast %418 : vector<1x8x512xf32> to vector<8x512xf32>
    %c0_157 = arith.constant 0 : index
    %c0_158 = arith.constant 0 : index
    %420 = vector.load %arg2[%c0_157, %c0_158] : memref<128x512xf32, #tpu.memory_space<vmem>>, vector<128x512xf32>
    %cst_159 = arith.constant dense<0.000000e+00> : vector<8x512xf32>
    %421 = tpu.matmul %382, %420, %cst_159 {dimension_numbers = #tpu.dot_dimension_numbers<[1], [0], [0], [1], [0, 0, 1, 1], [], []>} : vector<8x128xf32>, vector<128x512xf32>, vector<8x512xf32> -> vector<8x512xf32>
    %422 = arith.addf %419, %421 : vector<8x512xf32>
    %423 = vector.extract_strided_slice %422 {offsets = [0, 0], sizes = [8, 384], strides = [1, 1]} : vector<8x512xf32> to vector<8x384xf32>
    %cst_160 = arith.constant 5.000000e-01 : f32
    %424 = vector.broadcast %cst_160 : f32 to vector<8x384xf32>
    %425 = arith.mulf %424, %423 : vector<8x384xf32>
    %426 = math.tanh %425 : vector<8x384xf32>
    %cst_161 = arith.constant 5.000000e-01 : f32
    %427 = vector.broadcast %cst_161 : f32 to vector<8x384xf32>
    %428 = arith.mulf %427, %426 : vector<8x384xf32>
    %cst_162 = arith.constant 5.000000e-01 : f32
    %429 = vector.broadcast %cst_162 : f32 to vector<8x384xf32>
    %430 = arith.addf %428, %429 : vector<8x384xf32>
    %431 = vector.extract_strided_slice %422 {offsets = [0, 384], sizes = [8, 128], strides = [1, 1]} : vector<8x512xf32> to vector<8x128xf32>
    %432 = math.tanh %431 : vector<8x128xf32>
    %433 = vector.extract_strided_slice %430 {offsets = [0, 0], sizes = [8, 128], strides = [1, 1]} : vector<8x384xf32> to vector<8x128xf32>
    %434 = vector.extract_strided_slice %430 {offsets = [0, 128], sizes = [8, 128], strides = [1, 1]} : vector<8x384xf32> to vector<8x128xf32>
    %435 = vector.extract_strided_slice %430 {offsets = [0, 256], sizes = [8, 128], strides = [1, 1]} : vector<8x384xf32> to vector<8x128xf32>
    %436 = arith.mulf %434, %383 : vector<8x128xf32>
    %437 = arith.mulf %433, %432 : vector<8x128xf32>
    %438 = arith.addf %436, %437 : vector<8x128xf32>
    %439 = math.tanh %438 : vector<8x128xf32>
    %440 = arith.mulf %435, %439 : vector<8x128xf32>
    %441 = arith.select %416, %440, %382 : vector<8x128xi1>, vector<8x128xf32>
    %442 = arith.select %416, %438, %383 : vector<8x128xi1>, vector<8x128xf32>
    %c0_163 = arith.constant 0 : index
    %c0_164 = arith.constant 0 : index
    %c0_165 = arith.constant 0 : index
    %443 = vector.load %arg4[%c0_163, %c0_164, %c0_165] : memref<1x128x512xf32, #tpu.memory_space<vmem>>, vector<1x128x512xf32>
    %444 = vector.shape_cast %443 : vector<1x128x512xf32> to vector<128x512xf32>
    %cst_166 = arith.constant dense<0.000000e+00> : vector<8x512xf32>
    %445 = tpu.matmul %413, %444, %cst_166 {dimension_numbers = #tpu.dot_dimension_numbers<[1], [0], [0], [1], [0, 0, 1, 1], [], []>} : vector<8x128xf32>, vector<128x512xf32>, vector<8x512xf32> -> vector<8x512xf32>
    %c0_167 = arith.constant 0 : index
    %c0_168 = arith.constant 0 : index
    %c0_169 = arith.constant 0 : index
    %446 = vector.load %arg3[%c0_167, %c0_168, %c0_169] : memref<1x128x512xf32, #tpu.memory_space<vmem>>, vector<1x128x512xf32>
    %447 = vector.shape_cast %446 : vector<1x128x512xf32> to vector<128x512xf32>
    %cst_170 = arith.constant dense<0.000000e+00> : vector<8x512xf32>
    %448 = tpu.matmul %441, %447, %cst_170 {dimension_numbers = #tpu.dot_dimension_numbers<[1], [0], [0], [1], [0, 0, 1, 1], [], []>} : vector<8x128xf32>, vector<128x512xf32>, vector<8x512xf32> -> vector<8x512xf32>
    %449 = arith.addf %445, %448 : vector<8x512xf32>
    %c0_171 = arith.constant 0 : index
    %c0_172 = arith.constant 0 : index
    %c0_173 = arith.constant 0 : index
    %450 = vector.load %arg5[%c0_171, %c0_172, %c0_173] : memref<1x1x512xf32, #tpu.memory_space<vmem>>, vector<1x1x512xf32>
    %451 = vector.shape_cast %450 : vector<1x1x512xf32> to vector<1x512xf32>
    %452 = vector.broadcast %451 : vector<1x512xf32> to vector<8x512xf32>
    %453 = arith.addf %449, %452 : vector<8x512xf32>
    %454 = vector.extract_strided_slice %453 {offsets = [0, 0], sizes = [8, 384], strides = [1, 1]} : vector<8x512xf32> to vector<8x384xf32>
    %cst_174 = arith.constant 5.000000e-01 : f32
    %455 = vector.broadcast %cst_174 : f32 to vector<8x384xf32>
    %456 = arith.mulf %455, %454 : vector<8x384xf32>
    %457 = math.tanh %456 : vector<8x384xf32>
    %cst_175 = arith.constant 5.000000e-01 : f32
    %458 = vector.broadcast %cst_175 : f32 to vector<8x384xf32>
    %459 = arith.mulf %458, %457 : vector<8x384xf32>
    %cst_176 = arith.constant 5.000000e-01 : f32
    %460 = vector.broadcast %cst_176 : f32 to vector<8x384xf32>
    %461 = arith.addf %459, %460 : vector<8x384xf32>
    %462 = vector.extract_strided_slice %453 {offsets = [0, 384], sizes = [8, 128], strides = [1, 1]} : vector<8x512xf32> to vector<8x128xf32>
    %463 = math.tanh %462 : vector<8x128xf32>
    %464 = vector.extract_strided_slice %461 {offsets = [0, 0], sizes = [8, 128], strides = [1, 1]} : vector<8x384xf32> to vector<8x128xf32>
    %465 = vector.extract_strided_slice %461 {offsets = [0, 128], sizes = [8, 128], strides = [1, 1]} : vector<8x384xf32> to vector<8x128xf32>
    %466 = vector.extract_strided_slice %461 {offsets = [0, 256], sizes = [8, 128], strides = [1, 1]} : vector<8x384xf32> to vector<8x128xf32>
    %467 = arith.mulf %465, %414 : vector<8x128xf32>
    %468 = arith.mulf %464, %463 : vector<8x128xf32>
    %469 = arith.addf %467, %468 : vector<8x128xf32>
    %470 = math.tanh %469 : vector<8x128xf32>
    %471 = arith.mulf %466, %470 : vector<8x128xf32>
    %472 = arith.select %416, %471, %413 : vector<8x128xi1>, vector<8x128xf32>
    %473 = arith.select %416, %469, %414 : vector<8x128xi1>, vector<8x128xf32>
    %c8_i32 = arith.constant 8 : i32
    %c0_177 = arith.constant 0 : index
    %c0_178 = arith.constant 0 : index
    %474 = vector.load %arg6[%c0_177, %c0_178] : memref<128x512xf32, #tpu.memory_space<vmem>>, vector<128x512xf32>
    %cst_179 = arith.constant dense<0.000000e+00> : vector<8x512xf32>
    %475 = tpu.matmul %472, %474, %cst_179 {dimension_numbers = #tpu.dot_dimension_numbers<[1], [0], [0], [1], [0, 0, 1, 1], [], []>} : vector<8x128xf32>, vector<128x512xf32>, vector<8x512xf32> -> vector<8x512xf32>
    %c0_180 = arith.constant 0 : index
    %c0_181 = arith.constant 0 : index
    %476 = vector.load %arg7[%c0_180, %c0_181] : memref<1x512xf32, #tpu.memory_space<vmem>>, vector<1x512xf32>
    %477 = vector.broadcast %476 : vector<1x512xf32> to vector<8x512xf32>
    %478 = arith.addf %475, %477 : vector<8x512xf32>
    %c0_182 = arith.constant 0 : index
    %c0_183 = arith.constant 0 : index
    %479 = vector.load %arg8[%c0_182, %c0_183] : memref<512x128xf32, #tpu.memory_space<vmem>>, vector<512x128xf32>
    %cst_184 = arith.constant dense<0.000000e+00> : vector<8x128xf32>
    %480 = tpu.matmul %478, %479, %cst_184 {dimension_numbers = #tpu.dot_dimension_numbers<[1], [0], [0], [1], [0, 0, 1, 1], [], []>} : vector<8x512xf32>, vector<512x128xf32>, vector<8x128xf32> -> vector<8x128xf32>
    %c0_185 = arith.constant 0 : index
    %c0_186 = arith.constant 0 : index
    %481 = vector.load %arg9[%c0_185, %c0_186] : memref<1x128xf32, #tpu.memory_space<vmem>>, vector<1x128xf32>
    %482 = vector.broadcast %481 : vector<1x128xf32> to vector<8x128xf32>
    %483 = arith.addf %480, %482 : vector<8x128xf32>
    %c0_187 = arith.constant 0 : index
    %c0_188 = arith.constant 0 : index
    %484 = vector.load %arg10[%c0_187, %c0_188] : memref<8x128xf32, #tpu.memory_space<vmem>>, vector<8x128xf32>
    tpu.vector_store %arg10[%c0_187, %c0_188], %483 {strides = array<i32>} : memref<8x128xf32, #tpu.memory_space<vmem>>, vector<8x128xf32>,
    return
  }
}

</mosaic_0001>

<bundles_post_ra>
// kernel: imunet_forward.1
= control target key start
LH: loop header
LB: loop body
LE: loop exit
PB: predicated region body
PF: predicated region fallthrough
CT: control target
= control target key end

     0   :  { %v8954_v3 = vmov 0.0   ;;  %s8943_s2 = inlined_call_operand.vmem [shape: f32[128,512], index: 2, kind: input, shape index: {}]   ;;  %s8944_s3 = inlined_call_operand.vmem [shape: f32[1,128,512], index: 3, kind: input, shape index: {}]   ;;  %s8945_s4 = inlined_call_operand.vmem [shape: f32[1,128,512], index: 4, kind: input, shape index: {}]   ;;  %s8946_s1 = inlined_call_operand.vmem [shape: f32[8,8,512], index: 1, kind: input, shape index: {}]   ;;  %s8947_s0 = inlined_call_operand.vmem [shape: s32[8,128], index: 0, kind: input, shape index: {}]   ;;  %s8948_s5 = inlined_call_operand.vmem [shape: f32[1,1,512], index: 5, kind: input, shape index: {}]   ;;  %s8949_s6 = inlined_call_operand.vmem [shape: f32[128,512], index: 6, kind: input, shape index: {}]   ;;  %s8950_s8 = inlined_call_operand.vmem [shape: f32[512,128], index: 8, kind: input, shape index: {}]   ;;  %s8951_s7 = inlined_call_operand.vmem [shape: f32[1,512], index: 7, kind: input, shape index: {}]   ;;  %s8952_s9 = inlined_call_operand.vmem [shape: f32[1,128], index: 9, kind: input, shape index: {}]   ;;  %s8953_s10 = inlined_call_operand.vmem [shape: f32[8,128], index: 10, kind: output, shape index: {}]  }
   0x1   :  { %v42_v0 = vld [vmem:[%s8943_s2 + $0x8] sm:$0xff]  ;;  %v41_v2 = vld [vmem:[%s8943_s2] sm:$0xff]  ;;  %169 = vmatprep.mubr.f32.mxu0 %v8954_v3  ;;  %240 = vmatprep.mubr.f32.mxu1 %v8954_v3  ;;  %v44_v12 = vld [vmem:[%s8943_s2 + $0x18] sm:$0xff] }
   0x2   :  { %v46_v1 = vld [vmem:[%s8943_s2 + $0x28] sm:$0xff]  ;;  %v45_v5 = vld [vmem:[%s8943_s2 + $0x20] sm:$0xff]  ;;  %v48_v13 = vld [vmem:[%s8943_s2 + $0x38] sm:$0xff] }
   0x3   :  { %v6562_v4 = vpack.c.bf16 %v46_v1, %v42_v0  ;;  %v50_v6 = vld [vmem:[%s8943_s2 + $0x48] sm:$0xff]  ;;  %v6573_v8 = vpack.c.bf16 %v45_v5, %v41_v2  ;;  %v49_v10 = vld [vmem:[%s8943_s2 + $0x40] sm:$0xff]  ;;  %v43_v14 = vld [vmem:[%s8943_s2 + $0x10] sm:$0xff]  ;;  %v6599_v17 = vpack.c.bf16 %v48_v13, %v44_v12 }
   0x4   :  { %v54_v7 = vld [vmem:[%s8943_s2 + $0x68] sm:$0xff]  ;;  %v53_v11 = vld [vmem:[%s8943_s2 + $0x60] sm:$0xff]  ;;  %v47_v15 = vld [vmem:[%s8943_s2 + $0x30] sm:$0xff] }
   0x5   :  { %v6575_v9 = vpack.c.bf16 %v54_v7, %v50_v6  ;;  %4637 = vmatprep.subr.bf16.mxu0 %v6562_v4  ;;  %v6597_v16 = vpack.c.bf16 %v53_v11, %v49_v10  ;;  %v6601_v18 = vpack.c.bf16 %v47_v15, %v43_v14  ;;  %v58_v19 = vld [vmem:[%s8943_s2 + $0x88] sm:$0xff]  ;;  %v57_v21 = vld [vmem:[%s8943_s2 + $0x80] sm:$0xff]  ;;  %v52_v24 = vld [vmem:[%s8943_s2 + $0x58] sm:$0xff]  ;;  %4669 = vmatprep.subr.bf16.mxu1 %v6599_v17 }
   0x6   :  { %4639 = vmatpush1.bf16.msra.mxu0 %v6573_v8  ;;  %v62_v20 = vld [vmem:[%s8943_s2 + $0xa8] sm:$0xff]  ;;  %v61_v23 = vld [vmem:[%s8943_s2 + $0xa0] sm:$0xff]  ;;  %v56_v25 = vld [vmem:[%s8943_s2 + $0x78] sm:$0xff] }
   0x7   :  { %4641 = vmatprep.subr.bf16.mxu0 %v6575_v9  ;;  %v6613_v22 = vpack.c.bf16 %v62_v20, %v58_v19  ;;  %v6625_v26 = vpack.c.bf16 %v56_v25, %v52_v24  ;;  %v51_v27 = vld [vmem:[%s8943_s2 + $0x50] sm:$0xff]  ;;  %v66_v29 = vld [vmem:[%s8943_s2 + $0xc8] sm:$0xff]  ;;  %4671 = vmatpush1.bf16.msra.mxu1 %v6601_v18  ;;  %v6643_v32 = vpack.c.bf16 %v61_v23, %v57_v21  ;;  %v60_v33 = vld [vmem:[%s8943_s2 + $0x98] sm:$0xff] }
   0x8   :  { %v55_v28 = vld [vmem:[%s8943_s2 + $0x70] sm:$0xff]  ;;  %v70_v31 = vld [vmem:[%s8943_s2 + $0xe8] sm:$0xff]  ;;  %v64_v34 = vld [vmem:[%s8943_s2 + $0xb8] sm:$0xff] }
   0x9   :  { %9133 = vst [vmem:[#allocation2_spill] sm:$0xff] %v6613_v22  ;;  %v6637_v30 = vpack.c.bf16 %v55_v28, %v51_v27  ;;  %9134 = vst [vmem:[#allocation3_spill] sm:$0xff] %v6643_v32  ;;  %4673 = vmatprep.subr.bf16.mxu1 %v6625_v26  ;;  %v59_v35 = vld [vmem:[%s8943_s2 + $0x90] sm:$0xff]  ;;  %v6656_v36 = vpack.c.bf16 %v70_v31, %v66_v29  ;;  %v65_v37 = vld [vmem:[%s8943_s2 + $0xc0] sm:$0xff]  ;;  %v6664_v39 = vpack.c.bf16 %v64_v34, %v60_v33 }
   0xa   :  { %4643 = vmatpush1.bf16.msra.mxu0 %v6597_v16  ;;  %v69_v38 = vld [vmem:[%s8943_s2 + $0xe0] sm:$0xff]  ;;  %v63_v40 = vld [vmem:[%s8943_s2 + $0xb0] sm:$0xff]  ;;  %v74_v41 = vld [vmem:[%s8943_s2 + $0x108] sm:$0xff] }
   0xb   :  { %4645 = vmatprep.subr.bf16.mxu0 %v6613_v22  ;;  %9135 = vst [vmem:[#allocation4_spill] sm:$0xff] %v6656_v36  ;;  %9136 = vst [vmem:[#allocation5_spill] sm:$0xff] %v6664_v39  ;;  %v78_v42 = vld [vmem:[%s8943_s2 + $0x128] sm:$0xff]  ;;  %v68_v43 = vld [vmem:[%s8943_s2 + $0xd8] sm:$0xff]  ;;  %4675 = vmatpush1.bf16.msra.mxu1 %v6637_v30  ;;  %v6679_v44 = vpack.c.bf16 %v63_v40, %v59_v35  ;;  %v6685_v46 = vpack.c.bf16 %v69_v38, %v65_v37 }
   0xc   :  { %v72_v45 = vld [vmem:[%s8943_s2 + $0xf8] sm:$0xff]  ;;  %4677 = vmatprep.subr.bf16.mxu1 %v6664_v39  ;;  %v73_v47 = vld [vmem:[%s8943_s2 + $0x100] sm:$0xff]  ;;  %v67_v49 = vld [vmem:[%s8943_s2 + $0xd0] sm:$0xff]  ;;  %v6700_v51 = vpack.c.bf16 %v78_v42, %v74_v41 }
   0xd   :  { %9137 = vst [vmem:[#allocation6_spill] sm:$0xff] %v6679_v44  ;;  %9138 = vst [vmem:[#allocation7_spill] sm:$0xff] %v6685_v46  ;;  %v6691_v48 = vpack.c.bf16 %v72_v45, %v68_v43  ;;  %v71_v50 = vld [vmem:[%s8943_s2 + $0xf0] sm:$0xff]  ;;  %v77_v52 = vld [vmem:[%s8943_s2 + $0x120] sm:$0xff] }
   0xe   :  { %4647 = vmatpush1.bf16.msra.mxu0 %v6643_v32  ;;  %9140 = vst [vmem:[#allocation9_spill] sm:$0xff] %v6700_v51  ;;  %v76_v53 = vld [vmem:[%s8943_s2 + $0x118] sm:$0xff]  ;;  %v82_v55 = vld [vmem:[%s8943_s2 + $0x148] sm:$0xff]  ;;  %v6718_v57 = vpack.c.bf16 %v71_v50, %v67_v49  ;;  %v6721_v58 = vpack.c.bf16 %v77_v52, %v73_v47  ;;  %v81_v59 = vld [vmem:[%s8943_s2 + $0x140] sm:$0xff] }
   0xf   :  { %9139 = vst [vmem:[#allocation8_spill] sm:$0xff] %v6691_v48  ;;  %4649 = vmatprep.subr.bf16.mxu0 %v6656_v36  ;;  %v80_v54 = vld [vmem:[%s8943_s2 + $0x138] sm:$0xff]  ;;  %v86_v56 = vld [vmem:[%s8943_s2 + $0x168] sm:$0xff]  ;;  %4679 = vmatpush1.bf16.msra.mxu1 %v6679_v44  ;;  %v75_v61 = vld [vmem:[%s8943_s2 + $0x110] sm:$0xff] }
  0x10   :  { %9141 = vst [vmem:[#allocation10_spill] sm:$0xff] %v6718_v57  ;;  %9142 = vst [vmem:[#allocation11_spill] sm:$0xff] %v6721_v58  ;;  %4681 = vmatprep.subr.bf16.mxu1 %v6691_v48  ;;  %v6727_v60 = vpack.c.bf16 %v80_v54, %v76_v53  ;;  %v79_v62 = vld [vmem:[%s8943_s2 + $0x130] sm:$0xff]  ;;  %v6736_v63 = vpack.c.bf16 %v86_v56, %v82_v55  ;;  %v85_v0 = vld [vmem:[%s8943_s2 + $0x160] sm:$0xff] }
  0x11   :  { %v84_v1 = vld [vmem:[%s8943_s2 + $0x158] sm:$0xff]  ;;  %v90_v5 = vld [vmem:[%s8943_s2 + $0x188] sm:$0xff]  ;;  %v6754_v7 = vpack.c.bf16 %v79_v62, %v75_v61  ;;  %v6757_v10 = vpack.c.bf16 %v85_v0, %v81_v59  ;;  %v89_v11 = vld [vmem:[%s8943_s2 + $0x180] sm:$0xff] }
  0x12   :  { %4651 = vmatpush1.bf16.msra.mxu0 %v6685_v46  ;;  %9143 = vst [vmem:[#allocation12_spill] sm:$0xff] %v6727_v60  ;;  %9144 = vst [vmem:[#allocation13_spill] sm:$0xff] %v6736_v63  ;;  %v88_v2 = vld [vmem:[%s8943_s2 + $0x178] sm:$0xff]  ;;  %v94_v6 = vld [vmem:[%s8943_s2 + $0x1a8] sm:$0xff] }
  0x13   :  { %4653 = vmatprep.subr.bf16.mxu0 %v6700_v51  ;;  %4683 = vmatpush1.bf16.msra.mxu1 %v6718_v57  ;;  %9145 = vst [vmem:[#allocation14_spill] sm:$0xff] %v6754_v7  ;;  %9146 = vst [vmem:[#allocation15_spill] sm:$0xff] %v6757_v10  ;;  %v6763_v12 = vpack.c.bf16 %v88_v2, %v84_v1  ;;  %v83_v13 = vld [vmem:[%s8943_s2 + $0x150] sm:$0xff]  ;;  %v6772_v15 = vpack.c.bf16 %v94_v6, %v90_v5  ;;  %v93_v19 = vld [vmem:[%s8943_s2 + $0x1a0] sm:$0xff] }
  0x14   :  { %4685 = vmatprep.subr.bf16.mxu1 %v6727_v60  ;;  %v87_v14 = vld [vmem:[%s8943_s2 + $0x170] sm:$0xff]  ;;  %v92_v20 = vld [vmem:[%s8943_s2 + $0x198] sm:$0xff]  ;;  %v98_v23 = vld [vmem:[%s8943_s2 + $0x1c8] sm:$0xff]  ;;  %v6793_v27 = vpack.c.bf16 %v93_v19, %v89_v11 }
  0x15   :  { %9147 = vst [vmem:[#allocation16_spill] sm:$0xff] %v6763_v12  ;;  %9148 = vst [vmem:[#allocation17_spill] sm:$0xff] %v6772_v15  ;;  %v96_v21 = vld [vmem:[%s8943_s2 + $0x1b8] sm:$0xff]  ;;  %v102_v24 = vld [vmem:[%s8943_s2 + $0x1e8] sm:$0xff]  ;;  %v6790_v25 = vpack.c.bf16 %v87_v14, %v83_v13 }
  0x16   :  { %4655 = vmatpush1.bf16.msra.mxu0 %v6721_v58  ;;  %9150 = vst [vmem:[#allocation19_spill] sm:$0xff] %v6793_v27  ;;  %v97_v28 = vld [vmem:[%s8943_s2 + $0x1c0] sm:$0xff]  ;;  %v6799_v29 = vpack.c.bf16 %v96_v21, %v92_v20  ;;  %v91_v31 = vld [vmem:[%s8943_s2 + $0x190] sm:$0xff]  ;;  %v6808_v34 = vpack.c.bf16 %v102_v24, %v98_v23  ;;  %v100_v37 = vld [vmem:[%s8943_s2 + $0x1d8] sm:$0xff] }
  0x17   :  { %4657 = vmatprep.subr.bf16.mxu0 %v6736_v63  ;;  %4687 = vmatpush1.bf16.msra.mxu1 %v6754_v7  ;;  %9149 = vst [vmem:[#allocation18_spill] sm:$0xff] %v6790_v25  ;;  %v95_v33 = vld [vmem:[%s8943_s2 + $0x1b0] sm:$0xff]  ;;  %v101_v35 = vld [vmem:[%s8943_s2 + $0x1e0] sm:$0xff]  ;;  %v104_v38 = vld [vmem:[%s8943_s2 + $0x1f8] sm:$0xff] }
  0x18   :  { %4689 = vmatprep.subr.bf16.mxu1 %v6763_v12  ;;  %9151 = vst [vmem:[#allocation20_spill] sm:$0xff] %v6799_v29  ;;  %9152 = vst [vmem:[#allocation21_spill] sm:$0xff] %v6808_v34  ;;  %v6820_v40 = vpack.c.bf16 %v95_v33, %v91_v31  ;;  %v6823_v41 = vpack.c.bf16 %v101_v35, %v97_v28  ;;  %v6826_v42 = vpack.c.bf16 %v104_v38, %v100_v37  ;;  %v99_v43 = vld [vmem:[%s8943_s2 + $0x1d0] sm:$0xff]  ;;  %v336_v49 = vld [vmem:[%s8944_s3 + $0x8] sm:$0xff] }
  0x19   :  { %v103_v45 = vld [vmem:[%s8943_s2 + $0x1f0] sm:$0xff]  ;;  %v340_v50 = vld [vmem:[%s8944_s3 + $0x28] sm:$0xff]  ;;  %v338_v52 = vld [vmem:[%s8944_s3 + $0x18] sm:$0xff] }
  0x1a   :  { %4659 = vmatpush1.bf16.msra.mxu0 %v6757_v10  ;;  %9153 = vst [vmem:[#allocation22_spill] sm:$0xff] %v6820_v40  ;;  %9154 = vst [vmem:[#allocation23_spill] sm:$0xff] %v6823_v41  ;;  %v6836_v47 = vpack.c.bf16 %v103_v45, %v99_v43  ;;  %v6854_v53 = vpack.c.bf16 %v340_v50, %v336_v49  ;;  %v342_v54 = vld [vmem:[%s8944_s3 + $0x38] sm:$0xff]  ;;  %v335_v55 = vld [vmem:[%s8944_s3] sm:$0xff] }
  0x1b   :  { %4661 = vmatprep.subr.bf16.mxu0 %v6772_v15  ;;  %4691 = vmatpush1.bf16.msra.mxu1 %v6790_v25  ;;  %9155 = vst [vmem:[#allocation24_spill] sm:$0xff] %v6826_v42  ;;  %v339_v56 = vld [vmem:[%s8944_s3 + $0x20] sm:$0xff]  ;;  %v6865_v59 = vpack.c.bf16 %v342_v54, %v338_v52  ;;  %v337_v62 = vld [vmem:[%s8944_s3 + $0x10] sm:$0xff]  ;;  %v344_v2 = vld [vmem:[%s8944_s3 + $0x48] sm:$0xff] }
  0x1c   :  { %4693 = vmatprep.subr.bf16.mxu1 %v6799_v29  ;;  %9156 = vst [vmem:[#allocation25_spill] sm:$0xff] %v6836_v47  ;;  %9157 = vst [vmem:[#allocation26_spill] sm:$0xff] %v6854_v53  ;;  %v6867_v61 = vpack.c.bf16 %v339_v56, %v335_v55  ;;  %v341_v0 = vld [vmem:[%s8944_s3 + $0x30] sm:$0xff]  ;;  %v348_v5 = vld [vmem:[%s8944_s3 + $0x68] sm:$0xff] }
  0x1d   :  { %9158 = vst [vmem:[#allocation27_spill] sm:$0xff] %v6865_v59  ;;  %v6876_v1 = vpack.c.bf16 %v341_v0, %v337_v62  ;;  %v346_v6 = vld [vmem:[%s8944_s3 + $0x58] sm:$0xff]  ;;  %v6893_v13 = vpack.c.bf16 %v348_v5, %v344_v2  ;;  %v343_v19 = vld [vmem:[%s8944_s3 + $0x40] sm:$0xff]  ;;  %v345_v21 = vld [vmem:[%s8944_s3 + $0x50] sm:$0xff] }
  0x1e   :  { %4663 = vmatpush1.bf16.msra.mxu0 %v6793_v27  ;;  %9159 = vst [vmem:[#allocation28_spill] sm:$0xff] %v6867_v61  ;;  %v350_v11 = vld [vmem:[%s8944_s3 + $0x78] sm:$0xff]  ;;  %v347_v20 = vld [vmem:[%s8944_s3 + $0x60] sm:$0xff]  ;;  %v349_v24 = vld [vmem:[%s8944_s3 + $0x70] sm:$0xff] }
  0x1f   :  { %4665 = vmatprep.subr.bf16.mxu0 %v6808_v34  ;;  %4695 = vmatpush1.bf16.msra.mxu1 %v6820_v40  ;;  %9160 = vst [vmem:[#allocation29_spill] sm:$0xff] %v6876_v1  ;;  %9161 = vst [vmem:[#allocation30_spill] sm:$0xff] %v6893_v13  ;;  %v6895_v14 = vpack.c.bf16 %v350_v11, %v346_v6  ;;  %v6906_v23 = vpack.c.bf16 %v347_v20, %v343_v19  ;;  %v352_v31 = vld [vmem:[%s8944_s3 + $0x88] sm:$0xff]  ;;  %v354_v35 = vld [vmem:[%s8944_s3 + $0x98] sm:$0xff] }
  0x20   :  { %4697 = vmatprep.subr.bf16.mxu1 %v6826_v42  ;;  %v6913_v28 = vpack.c.bf16 %v349_v24, %v345_v21  ;;  %v356_v33 = vld [vmem:[%s8944_s3 + $0xa8] sm:$0xff]  ;;  %v358_v38 = vld [vmem:[%s8944_s3 + $0xb8] sm:$0xff]  ;;  %v351_v43 = vld [vmem:[%s8944_s3 + $0x80] sm:$0xff] }
  0x21   :  { %9162 = vst [vmem:[#allocation31_spill] sm:$0xff] %v6895_v14  ;;  %9163 = vst [vmem:[#allocation32_spill] sm:$0xff] %v6906_v23  ;;  %v6925_v37 = vpack.c.bf16 %v356_v33, %v352_v31  ;;  %v355_v45 = vld [vmem:[%s8944_s3 + $0xa0] sm:$0xff]  ;;  %v6937_v49 = vpack.c.bf16 %v358_v38, %v354_v35  ;;  %v353_v52 = vld [vmem:[%s8944_s3 + $0x90] sm:$0xff] }
  0x22   :  { %4667 = vmatpush1.bf16.msra.mxu0 %v6823_v41  ;;  %9164 = vst [vmem:[#allocation33_spill] sm:$0xff] %v6913_v28  ;;  %v6939_v50 = vpack.c.bf16 %v355_v45, %v351_v43  ;;  %v357_v54 = vld [vmem:[%s8944_s3 + $0xb0] sm:$0xff]  ;;  %v360_v56 = vld [vmem:[%s8944_s3 + $0xc8] sm:$0xff]  ;;  %v362_v0 = vld [vmem:[%s8944_s3 + $0xd8] sm:$0xff] }
  0x23   :  { %4699 = vmatpush1.bf16.msra.mxu1 %v6836_v47  ;;  %4701 = vmatprep.subr.bf16.mxu0 %v6854_v53  ;;  %9165 = vst [vmem:[#allocation34_spill] sm:$0xff] %v6925_v37  ;;  %9166 = vst [vmem:[#allocation35_spill] sm:$0xff] %v6937_v49  ;;  %v6948_v55 = vpack.c.bf16 %v357_v54, %v353_v52  ;;  %v364_v62 = vld [vmem:[%s8944_s3 + $0xe8] sm:$0xff]  ;;  %v366_v5 = vld [vmem:[%s8944_s3 + $0xf8] sm:$0xff] }
  0x24   :  { %4733 = vmatprep.subr.bf16.mxu1 %v6865_v59  ;;  %9167 = vst [vmem:[#allocation36_spill] sm:$0xff] %v6939_v50  ;;  %v6961_v2 = vpack.c.bf16 %v364_v62, %v360_v56  ;;  %v359_v6 = vld [vmem:[%s8944_s3 + $0xc0] sm:$0xff]  ;;  %v6973_v19 = vpack.c.bf16 %v366_v5, %v362_v0  ;;  %v361_v21 = vld [vmem:[%s8944_s3 + $0xd0] sm:$0xff]  ;;  %v368_v33 = vld [vmem:[%s8944_s3 + $0x108] sm:$0xff] }
  0x25   :  { %170 = vmatmul.mubr.f32.vlgmr.msra.gmra.mrb[0].mxu0 %v8954_v3  ;;  %9168 = vst [vmem:[#allocation37_spill] sm:$0xff] %v6948_v55  ;;  %v363_v11 = vld [vmem:[%s8944_s3 + $0xe0] sm:$0xff]  ;;  %v365_v24 = vld [vmem:[%s8944_s3 + $0xf0] sm:$0xff]  ;;  %v372_v35 = vld [vmem:[%s8944_s3 + $0x128] sm:$0xff] }
  0x26   :  { %463 = vmatprep.mubr.f32.mxu0 %v8954_v3  ;;  %241 = vmatmul.mubr.f32.vlgmr.msra.gmra.mrb[0].mxu1 %v8954_v3  ;;  %9169 = vst [vmem:[#allocation38_spill] sm:$0xff] %v6961_v2  ;;  %9170 = vst [vmem:[#allocation39_spill] sm:$0xff] %v6973_v19  ;;  %v6975_v20 = vpack.c.bf16 %v363_v11, %v359_v6  ;;  %v6984_v31 = vpack.c.bf16 %v365_v24, %v361_v21  ;;  %v370_v38 = vld [vmem:[%s8944_s3 + $0x118] sm:$0xff]  ;;  %v367_v52 = vld [vmem:[%s8944_s3 + $0x100] sm:$0xff] }
  0x27   :  { %534 = vmatprep.mubr.f32.mxu1 %v8954_v3  ;;  %4703 = vmatpush1.bf16.msra.mxu0 %v6867_v61  ;;  %v6997_v43 = vpack.c.bf16 %v372_v35, %v368_v33  ;;  %v374_v45 = vld [vmem:[%s8944_s3 + $0x138] sm:$0xff]  ;;  %v371_v54 = vld [vmem:[%s8944_s3 + $0x120] sm:$0xff]  ;;  %v369_v0 = vld [vmem:[%s8944_s3 + $0x110] sm:$0xff] }
  0x28   :  { %4735 = vmatpush1.bf16.msra.mxu1 %v6876_v1  ;;  %4705 = vmatprep.subr.bf16.mxu0 %v6893_v13  ;;  %9171 = vst [vmem:[#allocation40_spill] sm:$0xff] %v6975_v20  ;;  %9172 = vst [vmem:[#allocation41_spill] sm:$0xff] %v6984_v31  ;;  %v7009_v56 = vpack.c.bf16 %v374_v45, %v370_v38  ;;  %v7011_v62 = vpack.c.bf16 %v371_v54, %v367_v52  ;;  %v373_v5 = vld [vmem:[%s8944_s3 + $0x130] sm:$0xff]  ;;  %v376_v11 = vld [vmem:[%s8944_s3 + $0x148] sm:$0xff] }
  0x29   :  { %4737 = vmatprep.subr.bf16.mxu1 %v6895_v14  ;;  %9173 = vst [vmem:[#allocation42_spill] sm:$0xff] %v6997_v43  ;;  %v7020_v6 = vpack.c.bf16 %v373_v5, %v369_v0  ;;  %v380_v21 = vld [vmem:[%s8944_s3 + $0x168] sm:$0xff]  ;;  %v378_v24 = vld [vmem:[%s8944_s3 + $0x158] sm:$0xff]  ;;  %v375_v38 = vld [vmem:[%s8944_s3 + $0x140] sm:$0xff] }
  0x2a   :  { %9174 = vst [vmem:[#allocation43_spill] sm:$0xff] %v7009_v56  ;;  %9175 = vst [vmem:[#allocation44_spill] sm:$0xff] %v7011_v62  ;;  %v7033_v33 = vpack.c.bf16 %v380_v21, %v376_v11  ;;  %v382_v35 = vld [vmem:[%s8944_s3 + $0x178] sm:$0xff]  ;;  %v379_v45 = vld [vmem:[%s8944_s3 + $0x160] sm:$0xff] }
  0x2b   :  { %4707 = vmatpush1.bf16.msra.mxu0 %v6906_v23  ;;  %9176 = vst [vmem:[#allocation45_spill] sm:$0xff] %v7020_v6  ;;  %v7045_v52 = vpack.c.bf16 %v382_v35, %v378_v24  ;;  %v7047_v54 = vpack.c.bf16 %v379_v45, %v375_v38  ;;  %v377_v0 = vld [vmem:[%s8944_s3 + $0x150] sm:$0xff]  ;;  %v384_v21 = vld [vmem:[%s8944_s3 + $0x188] sm:$0xff]  ;;  %v386_v35 = vld [vmem:[%s8944_s3 + $0x198] sm:$0xff] }
  0x2c   :  { %4739 = vmatpush1.bf16.msra.mxu1 %v6913_v28  ;;  %4709 = vmatprep.subr.bf16.mxu0 %v6925_v37  ;;  %9177 = vst [vmem:[#allocation46_spill] sm:$0xff] %v7033_v33  ;;  %v381_v5 = vld [vmem:[%s8944_s3 + $0x170] sm:$0xff]  ;;  %v388_v24 = vld [vmem:[%s8944_s3 + $0x1a8] sm:$0xff]  ;;  %v390_v45 = vld [vmem:[%s8944_s3 + $0x1b8] sm:$0xff] }
  0x2d   :  { %4741 = vmatprep.subr.bf16.mxu1 %v6937_v49  ;;  %9178 = vst [vmem:[#allocation47_spill] sm:$0xff] %v7045_v52  ;;  %9179 = vst [vmem:[#allocation48_spill] sm:$0xff] %v7047_v54  ;;  %v7056_v11 = vpack.c.bf16 %v381_v5, %v377_v0  ;;  %v7068_v38 = vpack.c.bf16 %v388_v24, %v384_v21  ;;  %v383_v0 = vld [vmem:[%s8944_s3 + $0x180] sm:$0xff]  ;;  %v7080_v3 = vpack.c.bf16 %v390_v45, %v386_v35  ;;  %v385_v21 = vld [vmem:[%s8944_s3 + $0x190] sm:$0xff] }
  0x2e   :  { %v387_v5 = vld [vmem:[%s8944_s3 + $0x1a0] sm:$0xff]  ;;  %v389_v24 = vld [vmem:[%s8944_s3 + $0x1b0] sm:$0xff]  ;;  %v396_v45 = vld [vmem:[%s8944_s3 + $0x1e8] sm:$0xff] }
  0x2f   :  { %4711 = vmatpush1.bf16.msra.mxu0 %v6939_v50  ;;  %9180 = vst [vmem:[#allocation49_spill] sm:$0xff] %v7056_v11  ;;  %9181 = vst [vmem:[#allocation50_spill] sm:$0xff] %v7068_v38  ;;  %v7095_v35 = vpack.c.bf16 %v389_v24, %v385_v21  ;;  %v391_v21 = vld [vmem:[%s8944_s3 + $0x1c0] sm:$0xff] }
  0x30   :  { %4743 = vmatpush1.bf16.msra.mxu1 %v6948_v55  ;;  %4713 = vmatprep.subr.bf16.mxu0 %v6961_v2  ;;  %9182 = vst [vmem:[#allocation51_spill] sm:$0xff] %v7080_v3  ;;  %v395_v24 = vld [vmem:[%s8944_s3 + $0x1e0] sm:$0xff] }
  0x31   :  { %4745 = vmatprep.subr.bf16.mxu1 %v6973_v19  ;;  %9184 = vst [vmem:[#allocation53_spill] sm:$0xff] %v7095_v35 }
  0x33   :  { %4715 = vmatpush1.bf16.msra.mxu0 %v6975_v20 }
  0x34   :  { %4747 = vmatpush1.bf16.msra.mxu1 %v6984_v31  ;;  %4717 = vmatprep.subr.bf16.mxu0 %v6997_v43 }
  0x35   :  { %4749 = vmatprep.subr.bf16.mxu1 %v7009_v56 }
  0x37   :  { %4719 = vmatpush1.bf16.msra.mxu0 %v7011_v62 }
  0x38   :  { %4751 = vmatpush1.bf16.msra.mxu1 %v7020_v6  ;;  %4721 = vmatprep.subr.bf16.mxu0 %v7033_v33  ;;  %v7082_v33 = vpack.c.bf16 %v387_v5, %v383_v0  ;;  %v394_v0 = vld [vmem:[%s8944_s3 + $0x1d8] sm:$0xff] }
  0x39   :  { %4753 = vmatprep.subr.bf16.mxu1 %v7045_v52  ;;  %v392_v52 = vld [vmem:[%s8944_s3 + $0x1c8] sm:$0xff]  ;;  %v398_v5 = vld [vmem:[%s8944_s3 + $0x1f8] sm:$0xff] }
  0x3a   :  { %9183 = vst [vmem:[#allocation52_spill] sm:$0xff] %v7082_v33  ;;  %v278_v6 = vld [vmem:[%s8945_s4 + $0x38] sm:$0xff] }
  0x3b   :  { %4723 = vmatpush1.bf16.msra.mxu0 %v7047_v54  ;;  %v7107_v54 = vpack.c.bf16 %v396_v45, %v392_v52  ;;  %v272_v52 = vld [vmem:[%s8945_s4 + $0x8] sm:$0xff] }
  0x3c   :  { %4755 = vmatpush1.bf16.msra.mxu1 %v7056_v11  ;;  %4725 = vmatprep.subr.bf16.mxu0 %v7068_v38  ;;  %v7109_v11 = vpack.c.bf16 %v398_v5, %v394_v0  ;;  %v393_v38 = vld [vmem:[%s8944_s3 + $0x1d0] sm:$0xff]  ;;  %v276_v45 = vld [vmem:[%s8945_s4 + $0x28] sm:$0xff]  ;;  %v7130_v0 = vpack.c.bf16 %v395_v24, %v391_v21  ;;  %v274_v5 = vld [vmem:[%s8945_s4 + $0x18] sm:$0xff] }
  0x3d   :  { %4757 = vmatprep.subr.bf16.mxu1 %v7080_v3  ;;  %9185 = vst [vmem:[#allocation54_spill] sm:$0xff] %v7107_v54  ;;  %v397_v3 = vld [vmem:[%s8944_s3 + $0x1f0] sm:$0xff]  ;;  %v7142_v56 = vpack.c.bf16 %v276_v45, %v272_v52  ;;  %v7145_v21 = vpack.c.bf16 %v278_v6, %v274_v5  ;;  %v37_v24 = vld [vmem:[%s8946_s1] sm:$0xff]  ;;  %v40_v5 = vld [vmem:[%s8946_s1 + $0x18] sm:$0xff] }
  0x3e   :  { %9186 = vst [vmem:[#allocation55_spill] sm:$0xff] %v7109_v11  ;;  %9187 = vst [vmem:[#allocation56_spill] sm:$0xff] %v7130_v0  ;;  %v7140_v62 = vpack.c.bf16 %v397_v3, %v393_v38  ;;  %v38_v3 = vld [vmem:[%s8946_s1 + $0x8] sm:$0xff] }
  0x3f   :  { %4727 = vmatpush1.bf16.msra.mxu0 %v7082_v33  ;;  %9189 = vst [vmem:[#allocation58_spill] sm:$0xff] %v7142_v56  ;;  %9190 = vst [vmem:[#allocation59_spill] sm:$0xff] %v7145_v21 }
  0x40   :  { %4759 = vmatpush1.bf16.msra.mxu1 %v7095_v35  ;;  %4729 = vmatprep.subr.bf16.mxu0 %v7107_v54  ;;  %9188 = vst [vmem:[#allocation57_spill] sm:$0xff] %v7140_v62  ;;  %v39_v54 = vld [vmem:[%s8946_s1 + $0x10] sm:$0xff] }
  0x41   :  { %4761 = vmatprep.subr.bf16.mxu1 %v7109_v11 }
  0x43   :  { %4731 = vmatpush1.bf16.msra.mxu0 %v7130_v0 }
  0x44   :  { %4763 = vmatpush1.bf16.msra.mxu1 %v7140_v62  ;;  %4765 = vmatprep.subr.bf16.mxu0 %v7142_v56 }
  0x45   :  { %4797 = vmatprep.subr.bf16.mxu1 %v7145_v21 }
  0xf8   :  { %v171_v38 = vpop.f32.mrb[0].mxu0 }
  0xf9   :  { %v247_v52 = vadd.f32 %v171_v38, %v37_v24  ;;  %v173_v6 = vpop.f32.mrb[1].mxu0  ;;  %v242_v56 = vpop.f32.mrb[0].mxu1 }
  0xfa   :  { %v248_v45 = vadd.f32 %v173_v6, %v38_v3  ;;  %v244_v21 = vpop.f32.mrb[1].mxu1  ;;  %v249_v35 = vadd.f32 %v242_v56, %v39_v54  ;;  %v271_v56 = vld [vmem:[%s8945_s4] sm:$0xff] }
  0xfb   :  { %v251_v62 = vmul.f32 0.5, %v247_v52  ;;  %v250_v11 = vadd.f32 %v244_v21, %v40_v5  ;;  %v275_v54 = vld [vmem:[%s8945_s4 + $0x20] sm:$0xff] }
  0xfc   :  { %v252_v0 = vmul.f32 0.5, %v248_v45  ;;  %v253_v24 = vmul.f32 0.5, %v249_v35  ;;  %v286_v35 = vld [vmem:[%s8945_s4 + $0x78] sm:$0xff] }
  0xfd   :  { %6333 = vtanh.f32 %v251_v62 }
  0xfe   :  { %6335 = vtanh.f32 %v252_v0 }
  0xff   :  { %6337 = vtanh.f32 %v250_v11  ;;  %v282_v11 = vld [vmem:[%s8945_s4 + $0x58] sm:$0xff] }
 0x100   :  { %6339 = vtanh.f32 %v253_v24  ;;  %v7193_v24 = vld [vmem:[%s8947_s0] sm:$0xff] }
 0x101   :  { %vm36_vm0 = vcmp.gt.s32.totalorder %v7193_v24, 0  ;;  %vm729_vm1 = vcmp.gt.s32.totalorder %v7193_v24, 1  ;;  %vm1209_vm2 = vcmp.gt.s32.totalorder %v7193_v24, 2  ;;  %v9364_v24 = vld [vmem:[#allocation2_spill] sm:$0xff] }
 0x107   :  { %v6334_v38 = vpop.eup %6333 }
 0x108   :  { %v6336_v3 = vpop.eup %6335  ;;  %v257_v6 = vmul.f32 0.5, %v6334_v38 }
 0x109   :  { %v6338_v33 = vpop.eup %6337  ;;  %v258_v43 = vmul.f32 0.5, %v6336_v3  ;;  %v7195_v3 = vpack.c.bf16 %v275_v54, %v271_v56  ;;  %v281_v56 = vld [vmem:[%s8945_s4 + $0x50] sm:$0xff] }
 0x10a   :  { %v260_v52 = vadd.f32 0.5, %v257_v6  ;;  %v6340_v0 = vpop.eup %6339  ;;  %v285_v54 = vld [vmem:[%s8945_s4 + $0x70] sm:$0xff] }
 0x10b   :  { %v261_v31 = vadd.f32 0.5, %v258_v43  ;;  %v259_v21 = vmul.f32 0.5, %v6340_v0  ;;  %v273_v43 = vld [vmem:[%s8945_s4 + $0x10] sm:$0xff]  ;;  %9192 = vst [vmem:[#allocation61_spill] sm:$0xff] %v7195_v3 }
 0x10c   :  { %v265_v45 = vmul.f32 %v6338_v33, %v260_v52  ;;  %v284_v33 = vld [vmem:[%s8945_s4 + $0x68] sm:$0xff]  ;;  %v279_v52 = vld [vmem:[%s8945_s4 + $0x40] sm:$0xff] }
 0x10d   :  { %v264_v20 = vmul.f32 0.0, %v261_v31  ;;  %v280_v31 = vld [vmem:[%s8945_s4 + $0x48] sm:$0xff]  ;;  %v262_v5 = vadd.f32 0.5, %v259_v21 }
 0x10e   :  { %v7207_v21 = vpack.c.bf16 %v284_v33, %v280_v31  ;;  %v290_v31 = vld [vmem:[%s8945_s4 + $0x98] sm:$0xff] }
 0x10f   :  { %v7163_v62 = vadd.f32 %v265_v45, %v264_v20  ;;  %v277_v20 = vld [vmem:[%s8945_s4 + $0x30] sm:$0xff]  ;;  %v283_v45 = vld [vmem:[%s8945_s4 + $0x60] sm:$0xff]  ;;  %v294_v33 = vld [vmem:[%s8945_s4 + $0xb8] sm:$0xff] }
 0x110   :  { %v7197_v6 = vpack.c.bf16 %v277_v20, %v273_v43  ;;  %9194 = vst [vmem:[#allocation63_spill] sm:$0xff] %v7207_v21  ;;  %v288_v43 = vld [vmem:[%s8945_s4 + $0x88] sm:$0xff] }
 0x111   :  { %9191 = vst [vmem:[#allocation60_spill] sm:$0xff] %v7163_v62  ;;  %6341 = vtanh.f32 %v7163_v62  ;;  %v7209_v62 = vpack.c.bf16 %v286_v35, %v282_v11  ;;  %v292_v20 = vld [vmem:[%s8945_s4 + $0xa8] sm:$0xff]  ;;  %v7238_v11 = vpack.c.bf16 %v283_v45, %v279_v52  ;;  %v7240_v35 = vpack.c.bf16 %v285_v54, %v281_v56  ;;  %v289_v52 = vld [vmem:[%s8945_s4 + $0x90] sm:$0xff] }
 0x112   :  { %9193 = vst [vmem:[#allocation62_spill] sm:$0xff] %v7197_v6  ;;  %v7250_v19 = vpack.c.bf16 %v292_v20, %v288_v43  ;;  %v293_v45 = vld [vmem:[%s8945_s4 + $0xb0] sm:$0xff]  ;;  %v296_v56 = vld [vmem:[%s8945_s4 + $0xc8] sm:$0xff]  ;;  %v298_v43 = vld [vmem:[%s8945_s4 + $0xd8] sm:$0xff] }
 0x113   :  { %9195 = vst [vmem:[#allocation64_spill] sm:$0xff] %v7209_v62  ;;  %9196 = vst [vmem:[#allocation65_spill] sm:$0xff] %v7238_v11  ;;  %v300_v54 = vld [vmem:[%s8945_s4 + $0xe8] sm:$0xff]  ;;  %v302_v20 = vld [vmem:[%s8945_s4 + $0xf8] sm:$0xff] }
 0x114   :  { %9197 = vst [vmem:[#allocation66_spill] sm:$0xff] %v7240_v35  ;;  %9198 = vst [vmem:[#allocation67_spill] sm:$0xff] %v7250_v19  ;;  %v7288_v2 = vpack.c.bf16 %v300_v54, %v296_v56  ;;  %v306_v56 = vld [vmem:[%s8945_s4 + $0x118] sm:$0xff] }
 0x115   :  { %v310_v54 = vld [vmem:[%s8945_s4 + $0x138] sm:$0xff] }
 0x116   :  { %9203 = vst [vmem:[#allocation71_spill] sm:$0xff] %v7288_v2 }
 0x11b   :  { %v6342_v38 = vpop.eup %6341 }
 0x11c   :  { %v7205_v0 = vmul.f32 %v6342_v38, %v262_v5  ;;  %v287_v5 = vld [vmem:[%s8945_s4 + $0x80] sm:$0xff] }
 0x11d   :  { %v291_v38 = vld [vmem:[%s8945_s4 + $0xa0] sm:$0xff] }
 0x11e   :  { %4531 = vmatmul.mubr.msk.f32.vlgmr.msra.gmra.mrb[2].mxu0 %vm36_vm0, %v7205_v0  ;;  %4532 = vmatmul.mubr.msk.f32.vlgmr.msra.gmra.mrb[2].mxu1 %vm36_vm0, %v7205_v0 }
 0x11f   :  { %4767 = vmatpush1.bf16.msra.mxu0 %v7195_v3  ;;  %4799 = vmatpush1.bf16.msra.mxu1 %v7197_v6  ;;  %v7252_v3 = vpack.c.bf16 %v294_v33, %v290_v31  ;;  %v9200_v31 = vmov 0.0   ;;  %v7276_v33 = vpack.c.bf16 %v291_v38, %v287_v5  ;;  %v299_v6 = vld [vmem:[%s8945_s4 + $0xe0] sm:$0xff]  ;;  %v297_v5 = vld [vmem:[%s8945_s4 + $0xd0] sm:$0xff] }
 0x120   :  { %4769 = vmatprep.subr.bf16.mxu0 %v7207_v21  ;;  %4801 = vmatprep.subr.bf16.mxu1 %v7209_v62  ;;  %v7278_v62 = vpack.c.bf16 %v293_v45, %v289_v52  ;;  %v295_v21 = vld [vmem:[%s8945_s4 + $0xc0] sm:$0xff]  ;;  %v301_v38 = vld [vmem:[%s8945_s4 + $0xf0] sm:$0xff]  ;;  %v304_v52 = vld [vmem:[%s8945_s4 + $0x108] sm:$0xff] }
 0x121   :  { %9199 = vst [vmem:[#allocation68_spill] sm:$0xff] %v7252_v3  ;;  %605 = vmatprep.mubr.f32.mxu0 %v9200_v31  ;;  %676 = vmatprep.mubr.f32.mxu1 %v9200_v31  ;;  %9201 = vst [vmem:[#allocation69_spill] sm:$0xff] %v7276_v33  ;;  %v308_v45 = vld [vmem:[%s8945_s4 + $0x128] sm:$0xff] }
 0x122   :  { %9202 = vst [vmem:[#allocation70_spill] sm:$0xff] %v7278_v62 }
 0x123   :  { %4771 = vmatpush1.bf16.msra.mxu0 %v7238_v11  ;;  %4803 = vmatpush1.bf16.msra.mxu1 %v7240_v35  ;;  %v7290_v11 = vpack.c.bf16 %v302_v20, %v298_v43  ;;  %v7312_v43 = vpack.c.bf16 %v299_v6, %v295_v21  ;;  %v7314_v20 = vpack.c.bf16 %v301_v38, %v297_v5  ;;  %v305_v6 = vld [vmem:[%s8945_s4 + $0x110] sm:$0xff]  ;;  %v312_v5 = vld [vmem:[%s8945_s4 + $0x148] sm:$0xff] }
 0x124   :  { %4773 = vmatprep.subr.bf16.mxu0 %v7250_v19  ;;  %4805 = vmatprep.subr.bf16.mxu1 %v7252_v3  ;;  %v303_v3 = vld [vmem:[%s8945_s4 + $0x100] sm:$0xff]  ;;  %v7324_v35 = vpack.c.bf16 %v308_v45, %v304_v52  ;;  %v309_v21 = vld [vmem:[%s8945_s4 + $0x130] sm:$0xff]  ;;  %v316_v38 = vld [vmem:[%s8945_s4 + $0x168] sm:$0xff] }
 0x125   :  { %9204 = vst [vmem:[#allocation72_spill] sm:$0xff] %v7290_v11  ;;  %9205 = vst [vmem:[#allocation73_spill] sm:$0xff] %v7312_v43  ;;  %v307_v19 = vld [vmem:[%s8945_s4 + $0x120] sm:$0xff]  ;;  %v314_v52 = vld [vmem:[%s8945_s4 + $0x158] sm:$0xff] }
 0x126   :  { %9206 = vst [vmem:[#allocation74_spill] sm:$0xff] %v7314_v20  ;;  %9207 = vst [vmem:[#allocation75_spill] sm:$0xff] %v7324_v35  ;;  %v318_v45 = vld [vmem:[%s8945_s4 + $0x178] sm:$0xff] }
 0x127   :  { %4775 = vmatpush1.bf16.msra.mxu0 %v7276_v33  ;;  %4807 = vmatpush1.bf16.msra.mxu1 %v7278_v62  ;;  %v7326_v33 = vpack.c.bf16 %v310_v54, %v306_v56  ;;  %v7348_v56 = vpack.c.bf16 %v307_v19, %v303_v3  ;;  %v7350_v54 = vpack.c.bf16 %v309_v21, %v305_v6  ;;  %v313_v19 = vld [vmem:[%s8945_s4 + $0x150] sm:$0xff]  ;;  %v320_v6 = vld [vmem:[%s8945_s4 + $0x188] sm:$0xff] }
 0x128   :  { %4777 = vmatprep.subr.bf16.mxu0 %v7288_v2  ;;  %4809 = vmatprep.subr.bf16.mxu1 %v7290_v11  ;;  %v311_v11 = vld [vmem:[%s8945_s4 + $0x140] sm:$0xff]  ;;  %v7360_v62 = vpack.c.bf16 %v316_v38, %v312_v5  ;;  %v317_v3 = vld [vmem:[%s8945_s4 + $0x170] sm:$0xff]  ;;  %v324_v21 = vld [vmem:[%s8945_s4 + $0x1a8] sm:$0xff] }
 0x129   :  { %9208 = vst [vmem:[#allocation76_spill] sm:$0xff] %v7326_v33  ;;  %9209 = vst [vmem:[#allocation77_spill] sm:$0xff] %v7348_v56  ;;  %v315_v2 = vld [vmem:[%s8945_s4 + $0x160] sm:$0xff]  ;;  %v322_v5 = vld [vmem:[%s8945_s4 + $0x198] sm:$0xff] }
 0x12a   :  { %9210 = vst [vmem:[#allocation78_spill] sm:$0xff] %v7350_v54  ;;  %9211 = vst [vmem:[#allocation79_spill] sm:$0xff] %v7360_v62  ;;  %v326_v38 = vld [vmem:[%s8945_s4 + $0x1b8] sm:$0xff] }
 0x12b   :  { %4779 = vmatpush1.bf16.msra.mxu0 %v7312_v43  ;;  %4811 = vmatpush1.bf16.msra.mxu1 %v7314_v20  ;;  %v7362_v43 = vpack.c.bf16 %v318_v45, %v314_v52  ;;  %v7384_v52 = vpack.c.bf16 %v315_v2, %v311_v11  ;;  %v7386_v45 = vpack.c.bf16 %v317_v3, %v313_v19  ;;  %v321_v2 = vld [vmem:[%s8945_s4 + $0x190] sm:$0xff]  ;;  %v328_v19 = vld [vmem:[%s8945_s4 + $0x1c8] sm:$0xff] }
 0x12c   :  { %4781 = vmatprep.subr.bf16.mxu0 %v7324_v35  ;;  %4813 = vmatprep.subr.bf16.mxu1 %v7326_v33  ;;  %v319_v33 = vld [vmem:[%s8945_s4 + $0x180] sm:$0xff]  ;;  %v7396_v20 = vpack.c.bf16 %v324_v21, %v320_v6  ;;  %v325_v11 = vld [vmem:[%s8945_s4 + $0x1b0] sm:$0xff]  ;;  %v332_v3 = vld [vmem:[%s8945_s4 + $0x1e8] sm:$0xff] }
 0x12d   :  { %9212 = vst [vmem:[#allocation80_spill] sm:$0xff] %v7362_v43  ;;  %9213 = vst [vmem:[#allocation81_spill] sm:$0xff] %v7386_v45  ;;  %v323_v35 = vld [vmem:[%s8945_s4 + $0x1a0] sm:$0xff]  ;;  %v330_v6 = vld [vmem:[%s8945_s4 + $0x1d8] sm:$0xff] }
 0x12e   :  { %v334_v21 = vld [vmem:[%s8945_s4 + $0x1f8] sm:$0xff] }
 0x12f   :  { %4783 = vmatpush1.bf16.msra.mxu0 %v7348_v56  ;;  %4815 = vmatpush1.bf16.msra.mxu1 %v7350_v54  ;;  %v7398_v56 = vpack.c.bf16 %v326_v38, %v322_v5  ;;  %v7420_v5 = vpack.c.bf16 %v323_v35, %v319_v33  ;;  %v7422_v38 = vpack.c.bf16 %v325_v11, %v321_v2  ;;  %v329_v35 = vld [vmem:[%s8945_s4 + $0x1d0] sm:$0xff] }
 0x130   :  { %4785 = vmatprep.subr.bf16.mxu0 %v7360_v62  ;;  %4817 = vmatprep.subr.bf16.mxu1 %v7362_v43  ;;  %v327_v43 = vld [vmem:[%s8945_s4 + $0x1c0] sm:$0xff]  ;;  %v7429_v62 = vpack.c.bf16 %v332_v3, %v328_v19  ;;  %v7431_v54 = vpack.c.bf16 %v334_v21, %v330_v6  ;;  %v333_v33 = vld [vmem:[%s8945_s4 + $0x1f0] sm:$0xff]  ;;  %v9217_v3 = vld [vmem:[#allocation41_spill] sm:$0xff] }
 0x131   :  { %v7446_v11 = vpack.c.bf16 %v333_v33, %v329_v35  ;;  %v9216_v19 = vld [vmem:[#allocation40_spill] sm:$0xff]  ;;  %v9218_v6 = vld [vmem:[#allocation42_spill] sm:$0xff]  ;;  %v9219_v21 = vld [vmem:[#allocation43_spill] sm:$0xff] }
 0x132   :  { %v9220_v35 = vld [vmem:[#allocation44_spill] sm:$0xff]  ;;  %v9221_v33 = vld [vmem:[#allocation45_spill] sm:$0xff] }
 0x133   :  { %4787 = vmatpush1.bf16.msra.mxu0 %v7384_v52  ;;  %4819 = vmatpush1.bf16.msra.mxu1 %v7386_v45  ;;  %v331_v45 = vld [vmem:[%s8945_s4 + $0x1e0] sm:$0xff] }
 0x134   :  { %4789 = vmatprep.subr.bf16.mxu0 %v7396_v20  ;;  %4821 = vmatprep.subr.bf16.mxu1 %v7398_v56  ;;  %v7444_v2 = vpack.c.bf16 %v331_v45, %v327_v43  ;;  %v9214_v43 = vld [vmem:[#allocation38_spill] sm:$0xff]  ;;  %v9215_v45 = vld [vmem:[#allocation39_spill] sm:$0xff] }
 0x137   :  { %4791 = vmatpush1.bf16.msra.mxu0 %v7420_v5  ;;  %4823 = vmatpush1.bf16.msra.mxu1 %v7422_v38 }
 0x138   :  { %4793 = vmatprep.subr.bf16.mxu0 %v7429_v62  ;;  %4825 = vmatprep.subr.bf16.mxu1 %v7431_v54 }
 0x13b   :  { %4795 = vmatpush1.bf16.msra.mxu0 %v7444_v2  ;;  %4827 = vmatpush1.bf16.msra.mxu1 %v7446_v11 }
 0x13c   :  { %4829 = vmatprep.subr.bf16.mxu0 %v6562_v4  ;;  %4861 = vmatprep.subr.bf16.mxu1 %v6599_v17 }
 0x13e   :  { %606 = vmatmul.mubr.f32.vlgmr.msra.gmra.mrb[2].mxu0 %v9200_v31  ;;  %677 = vmatmul.mubr.f32.vlgmr.msra.gmra.mrb[2].mxu1 %v9200_v31 }
 0x13f   :  { %4831 = vmatpush1.bf16.msra.mxu0 %v6573_v8  ;;  %4863 = vmatpush1.bf16.msra.mxu1 %v6601_v18 }
 0x140   :  { %4833 = vmatprep.subr.bf16.mxu0 %v6575_v9  ;;  %4865 = vmatprep.subr.bf16.mxu1 %v6625_v26 }
 0x141   :  { %799 = vmatprep.mubr.f32.mxu0 %v9200_v31  ;;  %870 = vmatprep.mubr.f32.mxu1 %v9200_v31 }
 0x143   :  { %4835 = vmatpush1.bf16.msra.mxu0 %v6597_v16  ;;  %4867 = vmatpush1.bf16.msra.mxu1 %v6637_v30 }
 0x144   :  { %4837 = vmatprep.subr.bf16.mxu0 %v6613_v22  ;;  %4869 = vmatprep.subr.bf16.mxu1 %v6664_v39 }
 0x147   :  { %4839 = vmatpush1.bf16.msra.mxu0 %v6643_v32  ;;  %4871 = vmatpush1.bf16.msra.mxu1 %v6679_v44 }
 0x148   :  { %4841 = vmatprep.subr.bf16.mxu0 %v6656_v36  ;;  %4873 = vmatprep.subr.bf16.mxu1 %v6691_v48 }
 0x14b   :  { %4843 = vmatpush1.bf16.msra.mxu0 %v6685_v46  ;;  %4875 = vmatpush1.bf16.msra.mxu1 %v6718_v57 }
 0x14c   :  { %4845 = vmatprep.subr.bf16.mxu0 %v6700_v51  ;;  %4877 = vmatprep.subr.bf16.mxu1 %v6727_v60 }
 0x14f   :  { %4847 = vmatpush1.bf16.msra.mxu0 %v6721_v58  ;;  %4879 = vmatpush1.bf16.msra.mxu1 %v6754_v7 }
 0x150   :  { %4849 = vmatprep.subr.bf16.mxu0 %v6736_v63  ;;  %4881 = vmatprep.subr.bf16.mxu1 %v6763_v12 }
 0x153   :  { %4851 = vmatpush1.bf16.msra.mxu0 %v6757_v10  ;;  %4883 = vmatpush1.bf16.msra.mxu1 %v6790_v25 }
 0x154   :  { %4853 = vmatprep.subr.bf16.mxu0 %v6772_v15  ;;  %4885 = vmatprep.subr.bf16.mxu1 %v6799_v29 }
 0x157   :  { %4855 = vmatpush1.bf16.msra.mxu0 %v6793_v27  ;;  %4887 = vmatpush1.bf16.msra.mxu1 %v6820_v40 }
 0x158   :  { %4857 = vmatprep.subr.bf16.mxu0 %v6808_v34  ;;  %4889 = vmatprep.subr.bf16.mxu1 %v6826_v42 }
 0x15b   :  { %4859 = vmatpush1.bf16.msra.mxu0 %v6823_v41  ;;  %4891 = vmatpush1.bf16.msra.mxu1 %v6836_v47 }
 0x15c   :  { %4893 = vmatprep.subr.bf16.mxu0 %v6854_v53  ;;  %4925 = vmatprep.subr.bf16.mxu1 %v6865_v59 }
 0x15e   :  { %4537 = vmatmul.mubr.msk.f32.vlgmr.msra.gmra.mrb[4].mxu0 %vm36_vm0, %v7205_v0  ;;  %4538 = vmatmul.mubr.msk.f32.vlgmr.msra.gmra.mrb[4].mxu1 %vm36_vm0, %v7205_v0 }
 0x15f   :  { %4895 = vmatpush1.bf16.msra.mxu0 %v6867_v61  ;;  %4927 = vmatpush1.bf16.msra.mxu1 %v6876_v1 }
 0x160   :  { %4897 = vmatprep.subr.bf16.mxu0 %v6893_v13  ;;  %4929 = vmatprep.subr.bf16.mxu1 %v6895_v14 }
 0x161   :  { %965 = vmatprep.mubr.f32.mxu0 %v9200_v31  ;;  %1036 = vmatprep.mubr.f32.mxu1 %v9200_v31 }
 0x163   :  { %4899 = vmatpush1.bf16.msra.mxu0 %v6906_v23  ;;  %4931 = vmatpush1.bf16.msra.mxu1 %v6913_v28 }
 0x164   :  { %4901 = vmatprep.subr.bf16.mxu0 %v6925_v37  ;;  %4933 = vmatprep.subr.bf16.mxu1 %v6937_v49  ;;  %v9222_v49 = vld [vmem:[#allocation46_spill] sm:$0xff] }
 0x167   :  { %4903 = vmatpush1.bf16.msra.mxu0 %v6939_v50  ;;  %4935 = vmatpush1.bf16.msra.mxu1 %v6948_v55  ;;  %v9223_v50 = vld [vmem:[#allocation47_spill] sm:$0xff]  ;;  %v9224_v55 = vld [vmem:[#allocation48_spill] sm:$0xff] }
 0x168   :  { %4905 = vmatprep.subr.bf16.mxu0 %v9214_v43  ;;  %4937 = vmatprep.subr.bf16.mxu1 %v9215_v45  ;;  %v9225_v43 = vld [vmem:[#allocation49_spill] sm:$0xff]  ;;  %v9226_v45 = vld [vmem:[#allocation50_spill] sm:$0xff] }
 0x16b   :  { %4907 = vmatpush1.bf16.msra.mxu0 %v9216_v19  ;;  %4939 = vmatpush1.bf16.msra.mxu1 %v9217_v3  ;;  %v9227_v19 = vld [vmem:[#allocation51_spill] sm:$0xff]  ;;  %v9228_v3 = vld [vmem:[#allocation52_spill] sm:$0xff] }
 0x16c   :  { %4909 = vmatprep.subr.bf16.mxu0 %v9218_v6  ;;  %4941 = vmatprep.subr.bf16.mxu1 %v9219_v21  ;;  %v9229_v6 = vld [vmem:[#allocation53_spill] sm:$0xff]  ;;  %v9230_v21 = vld [vmem:[#allocation54_spill] sm:$0xff] }
 0x16f   :  { %4911 = vmatpush1.bf16.msra.mxu0 %v9220_v35  ;;  %4943 = vmatpush1.bf16.msra.mxu1 %v9221_v33  ;;  %v9231_v35 = vld [vmem:[#allocation55_spill] sm:$0xff]  ;;  %v9232_v33 = vld [vmem:[#allocation56_spill] sm:$0xff] }
 0x170   :  { %4913 = vmatprep.subr.bf16.mxu0 %v9222_v49  ;;  %4945 = vmatprep.subr.bf16.mxu1 %v9223_v50  ;;  %v9233_v49 = vld [vmem:[#allocation57_spill] sm:$0xff]  ;;  %v9234_v50 = vld [vmem:[#allocation58_spill] sm:$0xff] }
 0x173   :  { %4915 = vmatpush1.bf16.msra.mxu0 %v9224_v55  ;;  %4947 = vmatpush1.bf16.msra.mxu1 %v9225_v43  ;;  %v9235_v55 = vld [vmem:[#allocation59_spill] sm:$0xff]  ;;  %v685_v43 = vlaneseq }
 0x174   :  { %4917 = vmatprep.subr.bf16.mxu0 %v9226_v45  ;;  %4949 = vmatprep.subr.bf16.mxu1 %v9227_v19 }
 0x175   :  { %v7530_v45 = vshrl.u32 %v685_v43, 7 }
 0x177   :  { %4919 = vmatpush1.bf16.msra.mxu0 %v9228_v3  ;;  %4951 = vmatpush1.bf16.msra.mxu1 %v9229_v6  ;;  %9236 = vst [vmem:[#allocation82_spill] sm:$0xff] %v7530_v45  ;;  %v9055_v19 = vsub.s32 0, %v7530_v45  ;;  %v683_v6 = vld [vmem:[%s8948_s5] sm:$0xf]  ;;  %v9074_v23 = vsub.s32 2, %v7530_v45 }
 0x178   :  { %4921 = vmatprep.subr.bf16.mxu0 %v9230_v21  ;;  %4953 = vmatprep.subr.bf16.mxu1 %v9231_v35  ;;  %v9060_v21 = vsub.s32 1, %v7530_v45 }
 0x179   :  { %v7556_v1 = vrot.slane %v683_v6, %v9074_v23 }
 0x17b   :  { %4923 = vmatpush1.bf16.msra.mxu0 %v9232_v33  ;;  %4955 = vmatpush1.bf16.msra.mxu1 %v9233_v49  ;;  %v7539_v33 = vrot.slane %v683_v6, %v9055_v19  ;;  %v9065_v49 = vsub.s32 3, %v7530_v45  ;;  %9239 = vst [vmem:[#allocation85_spill] sm:$0xff] %v7556_v1  ;;  %v4535_v45 = vld [vmem:[%s8946_s1 + $0x30] sm:$0xff] }
 0x17c   :  { %4957 = vmatprep.subr.bf16.mxu0 %v9234_v50  ;;  %4989 = vmatprep.subr.bf16.mxu1 %v9235_v55  ;;  %v7544_v55 = vrot.slane %v683_v6, %v9060_v21 }
 0x17d   :  { %9237 = vst [vmem:[#allocation83_spill] sm:$0xff] %v7539_v33  ;;  %v7549_v28 = vrot.slane %v683_v6, %v9065_v49 }
 0x17e   :  { %9238 = vst [vmem:[#allocation84_spill] sm:$0xff] %v7544_v55 }
 0x211   :  { %v607_v43 = vpop.f32.mrb[2].mxu0  ;;  %v678_v50 = vpop.f32.mrb[2].mxu1 }
 0x212   :  { %v705_v35 = vadd.f32 %v7539_v33, %v607_v43  ;;  %v609_v3 = vpop.f32.mrb[3].mxu0  ;;  %v680_v37 = vpop.f32.mrb[3].mxu1  ;;  %v707_v43 = vadd.f32 %v7556_v1, %v678_v50 }
 0x213   :  { %v706_v19 = vadd.f32 %v7544_v55, %v609_v3  ;;  %v708_v21 = vadd.f32 %v7549_v28, %v680_v37 }
 0x214   :  { %v709_v14 = vmul.f32 0.5, %v705_v35  ;;  %v711_v33 = vmul.f32 0.5, %v707_v43 }
 0x215   :  { %v710_v13 = vmul.f32 0.5, %v706_v19 }
 0x216   :  { %6343 = vtanh.f32 %v709_v14 }
 0x217   :  { %6345 = vtanh.f32 %v710_v13  ;;  %v4533_v13 = vld [vmem:[%s8946_s1 + $0x20] sm:$0xff] }
 0x218   :  { %6347 = vtanh.f32 %v708_v21 }
 0x219   :  { %6349 = vtanh.f32 %v711_v33 }
 0x220   :  { %v6344_v49 = vpop.eup %6343 }
 0x221   :  { %v715_v61 = vmul.f32 0.5, %v6344_v49  ;;  %v6346_v59 = vpop.eup %6345 }
 0x222   :  { %v716_v3 = vmul.f32 0.5, %v6346_v59  ;;  %v6348_v35 = vpop.eup %6347 }
 0x223   :  { %v718_v53 = vadd.f32 0.5, %v715_v61  ;;  %v6350_v6 = vpop.eup %6349  ;;  %v4534_v61 = vld [vmem:[%s8946_s1 + $0x28] sm:$0xff] }
 0x224   :  { %v719_v19 = vadd.f32 0.5, %v716_v3  ;;  %v717_v50 = vmul.f32 0.5, %v6350_v6 }
 0x225   :  { %v723_v14 = vmul.f32 %v6348_v35, %v718_v53 }
 0x226   :  { %v722_v55 = vmul.f32 0.0, %v719_v19  ;;  %v720_v3 = vadd.f32 0.5, %v717_v50 }
 0x228   :  { %v7559_v37 = vadd.f32 %v723_v14, %v722_v55  ;;  %v4536_v55 = vld [vmem:[%s8946_s1 + $0x38] sm:$0xff] }
 0x22a   :  { %9240 = vst [vmem:[#allocation86_spill] sm:$0xff] %v7559_v37  ;;  %6351 = vtanh.f32 %v7559_v37 }
 0x231   :  { %v801_v49 = vpop.f32.mrb[4].mxu0  ;;  %v872_v59 = vpop.f32.mrb[4].mxu1 }
 0x232   :  { %v877_v21 = vadd.f32 %v4533_v13, %v801_v49  ;;  %v803_v33 = vpop.f32.mrb[5].mxu0  ;;  %v874_v53 = vpop.f32.mrb[5].mxu1  ;;  %v879_v13 = vadd.f32 %v4535_v45, %v872_v59 }
 0x233   :  { %v878_v43 = vadd.f32 %v4534_v61, %v803_v33  ;;  %v880_v6 = vadd.f32 %v4536_v55, %v874_v53  ;;  %v9241_v53 = vld [vmem:[#allocation60_spill] sm:$0xff] }
 0x234   :  { %v881_v35 = vmul.f32 0.5, %v877_v21  ;;  %v6352_v19 = vpop.eup %6351  ;;  %v883_v61 = vmul.f32 0.5, %v879_v13  ;;  %v270_v55 = vsel %vm36_vm0, %v9241_v53, 0.0  ;;  %v9249_v53 = vld [vmem:[#allocation68_spill] sm:$0xff] }
 0x235   :  { %v882_v14 = vmul.f32 0.5, %v878_v43  ;;  %v7571_v23 = vmul.f32 %v6352_v19, %v720_v3 }
 0x236   :  { %6353 = vtanh.f32 %v881_v35 }
 0x237   :  { %6355 = vtanh.f32 %v882_v14 }
 0x238   :  { %6357 = vtanh.f32 %v880_v6 }
 0x239   :  { %6359 = vtanh.f32 %v883_v61 }
 0x240   :  { %v6354_v49 = vpop.eup %6353 }
 0x241   :  { %v887_v33 = vmul.f32 0.5, %v6354_v49  ;;  %v6356_v37 = vpop.eup %6355  ;;  %v9242_v49 = vld [vmem:[#allocation61_spill] sm:$0xff] }
 0x242   :  { %v888_v50 = vmul.f32 0.5, %v6356_v37  ;;  %v6358_v21 = vpop.eup %6357 }
 0x243   :  { %v890_v1 = vadd.f32 0.5, %v887_v33  ;;  %v6360_v59 = vpop.eup %6359  ;;  %v9243_v33 = vld [vmem:[#allocation62_spill] sm:$0xff] }
 0x244   :  { %v891_v43 = vadd.f32 0.5, %v888_v50  ;;  %v889_v14 = vmul.f32 0.5, %v6360_v59  ;;  %v9244_v50 = vld [vmem:[#allocation63_spill] sm:$0xff]  ;;  %v9253_v59 = vld [vmem:[#allocation72_spill] sm:$0xff] }
 0x245   :  { %v895_v35 = vmul.f32 %v6358_v21, %v890_v1  ;;  %v269_v1 = vsel %vm36_vm0, %v7205_v0, 0.0  ;;  %v9245_v21 = vld [vmem:[#allocation64_spill] sm:$0xff]  ;;  %v9246_v0 = vld [vmem:[#allocation65_spill] sm:$0xff] }
 0x246   :  { %v894_v3 = vmul.f32 %v891_v43, %v270_v55  ;;  %v892_v6 = vadd.f32 0.5, %v889_v14  ;;  %v9247_v43 = vld [vmem:[#allocation66_spill] sm:$0xff]  ;;  %v9254_v14 = vld [vmem:[#allocation73_spill] sm:$0xff] }
 0x248   :  { %v896_v19 = vadd.f32 %v895_v35, %v894_v3  ;;  %v9248_v35 = vld [vmem:[#allocation67_spill] sm:$0xff]  ;;  %v9251_v3 = vld [vmem:[#allocation70_spill] sm:$0xff] }
 0x24a   :  { %6361 = vtanh.f32 %v896_v19  ;;  %v7582_v45 = vsel %vm729_vm1, %v896_v19, %v270_v55  ;;  %v9250_v55 = vld [vmem:[#allocation69_spill] sm:$0xff]  ;;  %v9252_v19 = vld [vmem:[#allocation71_spill] sm:$0xff] }
 0x254   :  { %v6362_v37 = vpop.eup %6361 }
 0x255   :  { %v898_v13 = vmul.f32 %v6362_v37, %v892_v6  ;;  %v9255_v6 = vld [vmem:[#allocation74_spill] sm:$0xff]  ;;  %v9256_v37 = vld [vmem:[#allocation75_spill] sm:$0xff] }
 0x257   :  { %v7589_v61 = vsel %vm729_vm1, %v898_v13, %v269_v1  ;;  %v9257_v13 = vld [vmem:[#allocation76_spill] sm:$0xff]  ;;  %v9258_v1 = vld [vmem:[#allocation77_spill] sm:$0xff] }
 0x258   :  { %966 = vmatmul.mubr.f32.vlgmr.msra.gmra.mrb[6].mxu0 %v7589_v61  ;;  %1037 = vmatmul.mubr.f32.vlgmr.msra.gmra.mrb[6].mxu1 %v7589_v61 }
 0x259   :  { %4959 = vmatpush1.bf16.msra.mxu0 %v9242_v49  ;;  %4991 = vmatpush1.bf16.msra.mxu1 %v9243_v33 }
 0x25a   :  { %4961 = vmatprep.subr.bf16.mxu0 %v9244_v50  ;;  %4993 = vmatprep.subr.bf16.mxu1 %v9245_v21 }
 0x25b   :  { %1107 = vmatprep.mubr.f32.mxu0 %v9200_v31  ;;  %1178 = vmatprep.mubr.f32.mxu1 %v9200_v31 }
 0x25d   :  { %4963 = vmatpush1.bf16.msra.mxu0 %v9246_v0  ;;  %4995 = vmatpush1.bf16.msra.mxu1 %v9247_v43 }
 0x25e   :  { %4965 = vmatprep.subr.bf16.mxu0 %v9248_v35  ;;  %4997 = vmatprep.subr.bf16.mxu1 %v9249_v53  ;;  %v9259_v35 = vld [vmem:[#allocation78_spill] sm:$0xff]  ;;  %v9260_v53 = vld [vmem:[#allocation79_spill] sm:$0xff] }
 0x261   :  { %4967 = vmatpush1.bf16.msra.mxu0 %v9250_v55  ;;  %4999 = vmatpush1.bf16.msra.mxu1 %v9251_v3  ;;  %v9261_v55 = vld [vmem:[#allocation80_spill] sm:$0xff] }
 0x262   :  { %4969 = vmatprep.subr.bf16.mxu0 %v9252_v19  ;;  %5001 = vmatprep.subr.bf16.mxu1 %v9253_v59  ;;  %v9262_v19 = vld [vmem:[#allocation81_spill] sm:$0xff] }
 0x265   :  { %4971 = vmatpush1.bf16.msra.mxu0 %v9254_v14  ;;  %5003 = vmatpush1.bf16.msra.mxu1 %v9255_v6 }
 0x266   :  { %4973 = vmatprep.subr.bf16.mxu0 %v9256_v37  ;;  %5005 = vmatprep.subr.bf16.mxu1 %v9257_v13 }
 0x269   :  { %4975 = vmatpush1.bf16.msra.mxu0 %v9258_v1  ;;  %5007 = vmatpush1.bf16.msra.mxu1 %v9259_v35 }
 0x26a   :  { %4977 = vmatprep.subr.bf16.mxu0 %v9260_v53  ;;  %5009 = vmatprep.subr.bf16.mxu1 %v9261_v55 }
 0x26d   :  { %4979 = vmatpush1.bf16.msra.mxu0 %v7384_v52  ;;  %5011 = vmatpush1.bf16.msra.mxu1 %v9262_v19 }
 0x26e   :  { %4981 = vmatprep.subr.bf16.mxu0 %v7396_v20  ;;  %5013 = vmatprep.subr.bf16.mxu1 %v7398_v56 }
 0x271   :  { %4983 = vmatpush1.bf16.msra.mxu0 %v7420_v5  ;;  %5015 = vmatpush1.bf16.msra.mxu1 %v7422_v38 }
 0x272   :  { %4985 = vmatprep.subr.bf16.mxu0 %v7429_v62  ;;  %5017 = vmatprep.subr.bf16.mxu1 %v7431_v54 }
 0x275   :  { %4987 = vmatpush1.bf16.msra.mxu0 %v7444_v2  ;;  %5019 = vmatpush1.bf16.msra.mxu1 %v7446_v11 }
 0x276   :  { %5021 = vmatprep.subr.bf16.mxu0 %v6562_v4  ;;  %5053 = vmatprep.subr.bf16.mxu1 %v6599_v17 }
 0x278   :  { %4539 = vmatmul.mubr.msk.f32.vlgmr.msra.gmra.mrb[6].mxu0 %vm36_vm0, %v7571_v23  ;;  %4540 = vmatmul.mubr.msk.f32.vlgmr.msra.gmra.mrb[6].mxu1 %vm36_vm0, %v7571_v23 }
 0x279   :  { %5023 = vmatpush1.bf16.msra.mxu0 %v6573_v8  ;;  %5055 = vmatpush1.bf16.msra.mxu1 %v6601_v18 }
 0x27a   :  { %5025 = vmatprep.subr.bf16.mxu0 %v6575_v9  ;;  %5057 = vmatprep.subr.bf16.mxu1 %v6625_v26 }
 0x27b   :  { %1279 = vmatprep.mubr.f32.mxu0 %v9200_v31  ;;  %1350 = vmatprep.mubr.f32.mxu1 %v9200_v31 }
 0x27d   :  { %5027 = vmatpush1.bf16.msra.mxu0 %v6597_v16  ;;  %5059 = vmatpush1.bf16.msra.mxu1 %v6637_v30 }
 0x27e   :  { %5029 = vmatprep.subr.bf16.mxu0 %v6613_v22  ;;  %5061 = vmatprep.subr.bf16.mxu1 %v6664_v39 }
 0x281   :  { %5031 = vmatpush1.bf16.msra.mxu0 %v6643_v32  ;;  %5063 = vmatpush1.bf16.msra.mxu1 %v6679_v44 }
 0x282   :  { %5033 = vmatprep.subr.bf16.mxu0 %v6656_v36  ;;  %5065 = vmatprep.subr.bf16.mxu1 %v6691_v48 }
 0x285   :  { %5035 = vmatpush1.bf16.msra.mxu0 %v6685_v46  ;;  %5067 = vmatpush1.bf16.msra.mxu1 %v6718_v57 }
 0x286   :  { %5037 = vmatprep.subr.bf16.mxu0 %v6700_v51  ;;  %5069 = vmatprep.subr.bf16.mxu1 %v6727_v60 }
 0x289   :  { %5039 = vmatpush1.bf16.msra.mxu0 %v6721_v58  ;;  %5071 = vmatpush1.bf16.msra.mxu1 %v6754_v7  ;;  %v9298_v58 = vld [vmem:[#allocation84_spill] sm:$0xff] }
 0x28a   :  { %5041 = vmatprep.subr.bf16.mxu0 %v6736_v63  ;;  %5073 = vmatprep.subr.bf16.mxu1 %v6763_v12  ;;  %v9263_v12 = vld [vmem:[#allocation26_spill] sm:$0xff]  ;;  %v9297_v63 = vld [vmem:[#allocation83_spill] sm:$0xff] }
 0x28d   :  { %5043 = vmatpush1.bf16.msra.mxu0 %v6757_v10  ;;  %5075 = vmatpush1.bf16.msra.mxu1 %v6790_v25  ;;  %v9264_v10 = vld [vmem:[#allocation27_spill] sm:$0xff]  ;;  %v9279_v25 = vld [vmem:[#allocation42_spill] sm:$0xff] }
 0x28e   :  { %5045 = vmatprep.subr.bf16.mxu0 %v6772_v15  ;;  %5077 = vmatprep.subr.bf16.mxu1 %v6799_v29  ;;  %v9265_v29 = vld [vmem:[#allocation28_spill] sm:$0xff]  ;;  %v9278_v15 = vld [vmem:[#allocation41_spill] sm:$0xff] }
 0x291   :  { %5047 = vmatpush1.bf16.msra.mxu0 %v6793_v27  ;;  %5079 = vmatpush1.bf16.msra.mxu1 %v6820_v40  ;;  %v9266_v27 = vld [vmem:[#allocation29_spill] sm:$0xff]  ;;  %v9267_v40 = vld [vmem:[#allocation30_spill] sm:$0xff] }
 0x292   :  { %5049 = vmatprep.subr.bf16.mxu0 %v6808_v34  ;;  %5081 = vmatprep.subr.bf16.mxu1 %v6826_v42  ;;  %v9268_v34 = vld [vmem:[#allocation31_spill] sm:$0xff]  ;;  %v9273_v42 = vld [vmem:[#allocation36_spill] sm:$0xff] }
 0x295   :  { %5051 = vmatpush1.bf16.msra.mxu0 %v6823_v41  ;;  %5083 = vmatpush1.bf16.msra.mxu1 %v6836_v47  ;;  %v9269_v47 = vld [vmem:[#allocation32_spill] sm:$0xff]  ;;  %v9272_v41 = vld [vmem:[#allocation35_spill] sm:$0xff] }
 0x296   :  { %5085 = vmatprep.subr.bf16.mxu0 %v9263_v12  ;;  %5117 = vmatprep.subr.bf16.mxu1 %v9264_v10  ;;  %v9270_v12 = vld [vmem:[#allocation33_spill] sm:$0xff]  ;;  %v9271_v10 = vld [vmem:[#allocation34_spill] sm:$0xff] }
 0x298   :  { %1280 = vmatmul.mubr.f32.vlgmr.msra.gmra.mrb[8].mxu0 %v7589_v61  ;;  %1351 = vmatmul.mubr.f32.vlgmr.msra.gmra.mrb[8].mxu1 %v7589_v61 }
 0x299   :  { %5087 = vmatpush1.bf16.msra.mxu0 %v9265_v29  ;;  %5119 = vmatpush1.bf16.msra.mxu1 %v9266_v27  ;;  %v9274_v29 = vld [vmem:[#allocation37_spill] sm:$0xff]  ;;  %v9275_v27 = vld [vmem:[#allocation38_spill] sm:$0xff] }
 0x29a   :  { %5089 = vmatprep.subr.bf16.mxu0 %v9267_v40  ;;  %5121 = vmatprep.subr.bf16.mxu1 %v9268_v34  ;;  %v9276_v40 = vld [vmem:[#allocation39_spill] sm:$0xff]  ;;  %v9277_v34 = vld [vmem:[#allocation40_spill] sm:$0xff] }
 0x29b   :  { %1445 = vmatprep.mubr.f32.mxu0 %v9200_v31  ;;  %1516 = vmatprep.mubr.f32.mxu1 %v9200_v31 }
 0x29d   :  { %5091 = vmatpush1.bf16.msra.mxu0 %v9269_v47  ;;  %5123 = vmatpush1.bf16.msra.mxu1 %v9270_v12  ;;  %v9280_v47 = vld [vmem:[#allocation43_spill] sm:$0xff]  ;;  %v9281_v12 = vld [vmem:[#allocation44_spill] sm:$0xff] }
 0x29e   :  { %5093 = vmatprep.subr.bf16.mxu0 %v9271_v10  ;;  %5125 = vmatprep.subr.bf16.mxu1 %v9272_v41  ;;  %v9282_v10 = vld [vmem:[#allocation45_spill] sm:$0xff]  ;;  %v9283_v41 = vld [vmem:[#allocation46_spill] sm:$0xff] }
 0x2a1   :  { %5095 = vmatpush1.bf16.msra.mxu0 %v9273_v42  ;;  %5127 = vmatpush1.bf16.msra.mxu1 %v9274_v29  ;;  %v9284_v42 = vld [vmem:[#allocation47_spill] sm:$0xff]  ;;  %v9285_v29 = vld [vmem:[#allocation48_spill] sm:$0xff] }
 0x2a2   :  { %5097 = vmatprep.subr.bf16.mxu0 %v9275_v27  ;;  %5129 = vmatprep.subr.bf16.mxu1 %v9276_v40  ;;  %v9286_v27 = vld [vmem:[#allocation49_spill] sm:$0xff]  ;;  %v9287_v40 = vld [vmem:[#allocation50_spill] sm:$0xff] }
 0x2a5   :  { %5099 = vmatpush1.bf16.msra.mxu0 %v9277_v34  ;;  %5131 = vmatpush1.bf16.msra.mxu1 %v9278_v15  ;;  %v9288_v34 = vld [vmem:[#allocation51_spill] sm:$0xff]  ;;  %v9289_v15 = vld [vmem:[#allocation52_spill] sm:$0xff] }
 0x2a6   :  { %5101 = vmatprep.subr.bf16.mxu0 %v9279_v25  ;;  %5133 = vmatprep.subr.bf16.mxu1 %v9280_v47  ;;  %v9290_v25 = vld [vmem:[#allocation53_spill] sm:$0xff]  ;;  %v9291_v47 = vld [vmem:[#allocation54_spill] sm:$0xff] }
 0x2a9   :  { %5103 = vmatpush1.bf16.msra.mxu0 %v9281_v12  ;;  %5135 = vmatpush1.bf16.msra.mxu1 %v9282_v10  ;;  %v9292_v12 = vld [vmem:[#allocation55_spill] sm:$0xff]  ;;  %v9293_v10 = vld [vmem:[#allocation56_spill] sm:$0xff] }
 0x2aa   :  { %5105 = vmatprep.subr.bf16.mxu0 %v9283_v41  ;;  %5137 = vmatprep.subr.bf16.mxu1 %v9284_v42  ;;  %v9294_v41 = vld [vmem:[#allocation57_spill] sm:$0xff]  ;;  %v9295_v42 = vld [vmem:[#allocation58_spill] sm:$0xff] }
 0x2ad   :  { %5107 = vmatpush1.bf16.msra.mxu0 %v9285_v29  ;;  %5139 = vmatpush1.bf16.msra.mxu1 %v9286_v27  ;;  %v9296_v29 = vld [vmem:[#allocation59_spill] sm:$0xff] }
 0x2ae   :  { %5109 = vmatprep.subr.bf16.mxu0 %v9287_v40  ;;  %5141 = vmatprep.subr.bf16.mxu1 %v9288_v34 }
 0x2b1   :  { %5111 = vmatpush1.bf16.msra.mxu0 %v9289_v15  ;;  %5143 = vmatpush1.bf16.msra.mxu1 %v9290_v25 }
 0x2b2   :  { %5113 = vmatprep.subr.bf16.mxu0 %v9291_v47  ;;  %5145 = vmatprep.subr.bf16.mxu1 %v9292_v12 }
 0x2b5   :  { %5115 = vmatpush1.bf16.msra.mxu0 %v9293_v10  ;;  %5147 = vmatpush1.bf16.msra.mxu1 %v9294_v41  ;;  %v9299_v41 = vld [vmem:[#allocation85_spill] sm:$0xff] }
 0x2b6   :  { %5149 = vmatprep.subr.bf16.mxu0 %v9295_v42  ;;  %5181 = vmatprep.subr.bf16.mxu1 %v9296_v29 }
 0x34b   :  { %v1109_v27 = vpop.f32.mrb[6].mxu0  ;;  %v1180_v40 = vpop.f32.mrb[6].mxu1 }
 0x34c   :  { %v1185_v34 = vadd.f32 %v1109_v27, %v9297_v63  ;;  %v1111_v7 = vpop.f32.mrb[7].mxu0  ;;  %v1182_v15 = vpop.f32.mrb[7].mxu1  ;;  %v1187_v10 = vadd.f32 %v1180_v40, %v9299_v41 }
 0x34d   :  { %v1186_v25 = vadd.f32 %v1111_v7, %v9298_v58  ;;  %v1188_v12 = vadd.f32 %v1182_v15, %v7549_v28  ;;  %v9300_v7 = vld [vmem:[#allocation86_spill] sm:$0xff] }
 0x34e   :  { %v1189_v60 = vmul.f32 0.5, %v1185_v34  ;;  %v1191_v42 = vmul.f32 0.5, %v1187_v10 }
 0x34f   :  { %v1190_v47 = vmul.f32 0.5, %v1186_v25 }
 0x350   :  { %6363 = vtanh.f32 %v1189_v60  ;;  %v728_v60 = vsel %vm36_vm0, %v9300_v7, 0.0 }
 0x351   :  { %6365 = vtanh.f32 %v1190_v47 }
 0x352   :  { %6367 = vtanh.f32 %v1188_v12 }
 0x353   :  { %6369 = vtanh.f32 %v1191_v42  ;;  %v4544_v42 = vld [vmem:[%s8946_s1 + $0x58] sm:$0xff] }
 0x35a   :  { %v6364_v51 = vpop.eup %6363 }
 0x35b   :  { %v1195_v29 = vmul.f32 0.5, %v6364_v51  ;;  %v6366_v57 = vpop.eup %6365  ;;  %v4541_v51 = vld [vmem:[%s8946_s1 + $0x40] sm:$0xff] }
 0x35c   :  { %v1196_v27 = vmul.f32 0.5, %v6366_v57  ;;  %v6368_v63 = vpop.eup %6367 }
 0x35d   :  { %v1198_v46 = vadd.f32 0.5, %v1195_v29  ;;  %v6370_v10 = vpop.eup %6369 }
 0x35e   :  { %v1199_v48 = vadd.f32 0.5, %v1196_v27  ;;  %v1197_v57 = vmul.f32 0.5, %v6370_v10  ;;  %v4543_v10 = vld [vmem:[%s8946_s1 + $0x50] sm:$0xff] }
 0x35f   :  { %v1203_v36 = vmul.f32 %v6368_v63, %v1198_v46  ;;  %v4542_v46 = vld [vmem:[%s8946_s1 + $0x48] sm:$0xff] }
 0x360   :  { %v1202_v25 = vmul.f32 %v1199_v48, %v728_v60  ;;  %v1200_v47 = vadd.f32 0.5, %v1197_v57 }
 0x362   :  { %v1204_v15 = vadd.f32 %v1203_v36, %v1202_v25 }
 0x364   :  { %6371 = vtanh.f32 %v1204_v15  ;;  %v7712_v12 = vsel %vm729_vm1, %v1204_v15, %v728_v60 }
 0x365   :  { %9301 = vst [vmem:[#allocation60_spill] sm:$0xff] %v7712_v12 }
 0x36b   :  { %v1281_v63 = vpop.f32.mrb[8].mxu0  ;;  %v1352_v29 = vpop.f32.mrb[8].mxu1 }
 0x36c   :  { %v1357_v34 = vadd.f32 %v4541_v51, %v1281_v63  ;;  %v1283_v48 = vpop.f32.mrb[9].mxu0  ;;  %v1354_v36 = vpop.f32.mrb[9].mxu1  ;;  %v1359_v51 = vadd.f32 %v4543_v10, %v1352_v29 }
 0x36d   :  { %v1358_v40 = vadd.f32 %v4542_v46, %v1283_v48  ;;  %v1360_v25 = vadd.f32 %v4544_v42, %v1354_v36 }
 0x36e   :  { %v1361_v27 = vmul.f32 0.5, %v1357_v34  ;;  %v6372_v7 = vpop.eup %6371  ;;  %v1363_v46 = vmul.f32 0.5, %v1359_v51  ;;  %v9305_v51 = vld [vmem:[#allocation71_spill] sm:$0xff] }
 0x36f   :  { %v1362_v60 = vmul.f32 0.5, %v1358_v40  ;;  %v7723_v15 = vmul.f32 %v6372_v7, %v1200_v47 }
 0x370   :  { %6373 = vtanh.f32 %v1361_v27 }
 0x371   :  { %6375 = vtanh.f32 %v1362_v60 }
 0x372   :  { %6377 = vtanh.f32 %v1360_v25 }
 0x373   :  { %6379 = vtanh.f32 %v1363_v46  ;;  %v727_v46 = vsel %vm36_vm0, %v7571_v23, 0.0  ;;  %v9306_v23 = vld [vmem:[#allocation4_spill] sm:$0xff] }
 0x37a   :  { %v6374_v63 = vpop.eup %6373 }
 0x37b   :  { %v1367_v48 = vmul.f32 0.5, %v6374_v63  ;;  %v6376_v12 = vpop.eup %6375  ;;  %v7782_v63 = vsel %vm729_vm1, %v7723_v15, %v727_v46  ;;  %v9307_v15 = vld [vmem:[#allocation8_spill] sm:$0xff]  ;;  %v9320_v46 = vld [vmem:[#allocation19_spill] sm:$0xff] }
 0x37c   :  { %v1368_v57 = vmul.f32 0.5, %v6376_v12  ;;  %v6378_v34 = vpop.eup %6377  ;;  %v9304_v12 = vld [vmem:[#allocation69_spill] sm:$0xff] }
 0x37d   :  { %v1370_v41 = vadd.f32 0.5, %v1367_v48  ;;  %v6380_v47 = vpop.eup %6379  ;;  %v9308_v48 = vld [vmem:[#allocation7_spill] sm:$0xff] }
 0x37e   :  { %v1371_v40 = vadd.f32 0.5, %v1368_v57  ;;  %v1369_v7 = vmul.f32 0.5, %v6380_v47  ;;  %v9309_v57 = vld [vmem:[#allocation10_spill] sm:$0xff]  ;;  %v9315_v47 = vld [vmem:[#allocation16_spill] sm:$0xff] }
 0x37f   :  { %v1375_v27 = vmul.f32 %v6378_v34, %v1370_v41  ;;  %v9310_v34 = vld [vmem:[#allocation9_spill] sm:$0xff] }
 0x380   :  { %v1374_v36 = vmul.f32 %v1371_v40, %v7582_v45  ;;  %v1372_v60 = vadd.f32 0.5, %v1369_v7  ;;  %v9311_v40 = vld [vmem:[#allocation12_spill] sm:$0xff]  ;;  %v9316_v7 = vld [vmem:[#allocation15_spill] sm:$0xff] }
 0x382   :  { %v1376_v42 = vadd.f32 %v1375_v27, %v1374_v36  ;;  %v9312_v27 = vld [vmem:[#allocation11_spill] sm:$0xff]  ;;  %v9313_v36 = vld [vmem:[#allocation14_spill] sm:$0xff] }
 0x384   :  { %6381 = vtanh.f32 %v1376_v42  ;;  %v7733_v29 = vsel %vm1209_vm2, %v1376_v42, %v7582_v45  ;;  %v9302_v45 = vld [vmem:[#allocation67_spill] sm:$0xff]  ;;  %v9314_v42 = vld [vmem:[#allocation13_spill] sm:$0xff] }
 0x38e   :  { %v6382_v25 = vpop.eup %6381 }
 0x38f   :  { %v1378_v10 = vmul.f32 %v6382_v25, %v1372_v60  ;;  %v9317_v60 = vld [vmem:[#allocation18_spill] sm:$0xff]  ;;  %v9318_v25 = vld [vmem:[#allocation17_spill] sm:$0xff] }
 0x391   :  { %v7738_v41 = vsel %vm1209_vm2, %v1378_v10, %v7589_v61  ;;  %v9303_v61 = vld [vmem:[#allocation68_spill] sm:$0xff] }
 0x392   :  { %1446 = vmatmul.mubr.f32.vlgmr.msra.gmra.mrb[10].mxu0 %v7738_v41  ;;  %1517 = vmatmul.mubr.f32.vlgmr.msra.gmra.mrb[10].mxu1 %v7738_v41  ;;  %v9319_v10 = vld [vmem:[#allocation20_spill] sm:$0xff] }
 0x393   :  { %5151 = vmatpush1.bf16.msra.mxu0 %v9242_v49  ;;  %5183 = vmatpush1.bf16.msra.mxu1 %v9243_v33 }
 0x394   :  { %5153 = vmatprep.subr.bf16.mxu0 %v9244_v50  ;;  %5185 = vmatprep.subr.bf16.mxu1 %v9245_v21 }
 0x395   :  { %1587 = vmatprep.mubr.f32.mxu0 %v9200_v31  ;;  %1658 = vmatprep.mubr.f32.mxu1 %v9200_v31 }
 0x397   :  { %5155 = vmatpush1.bf16.msra.mxu0 %v9246_v0  ;;  %5187 = vmatpush1.bf16.msra.mxu1 %v9247_v43 }
 0x398   :  { %5157 = vmatprep.subr.bf16.mxu0 %v9302_v45  ;;  %5189 = vmatprep.subr.bf16.mxu1 %v9303_v61 }
 0x39b   :  { %5159 = vmatpush1.bf16.msra.mxu0 %v9304_v12  ;;  %5191 = vmatpush1.bf16.msra.mxu1 %v9251_v3 }
 0x39c   :  { %5161 = vmatprep.subr.bf16.mxu0 %v9305_v51  ;;  %5193 = vmatprep.subr.bf16.mxu1 %v9253_v59 }
 0x39f   :  { %5163 = vmatpush1.bf16.msra.mxu0 %v9254_v14  ;;  %5195 = vmatpush1.bf16.msra.mxu1 %v9255_v6 }
 0x3a0   :  { %5165 = vmatprep.subr.bf16.mxu0 %v9256_v37  ;;  %5197 = vmatprep.subr.bf16.mxu1 %v9257_v13 }
 0x3a3   :  { %5167 = vmatpush1.bf16.msra.mxu0 %v9258_v1  ;;  %5199 = vmatpush1.bf16.msra.mxu1 %v9259_v35 }
 0x3a4   :  { %5169 = vmatprep.subr.bf16.mxu0 %v9260_v53  ;;  %5201 = vmatprep.subr.bf16.mxu1 %v9261_v55 }
 0x3a7   :  { %5171 = vmatpush1.bf16.msra.mxu0 %v7384_v52  ;;  %5203 = vmatpush1.bf16.msra.mxu1 %v9262_v19 }
 0x3a8   :  { %5173 = vmatprep.subr.bf16.mxu0 %v7396_v20  ;;  %5205 = vmatprep.subr.bf16.mxu1 %v7398_v56 }
 0x3ab   :  { %5175 = vmatpush1.bf16.msra.mxu0 %v7420_v5  ;;  %5207 = vmatpush1.bf16.msra.mxu1 %v7422_v38 }
 0x3ac   :  { %5177 = vmatprep.subr.bf16.mxu0 %v7429_v62  ;;  %5209 = vmatprep.subr.bf16.mxu1 %v7431_v54 }
 0x3af   :  { %5179 = vmatpush1.bf16.msra.mxu0 %v7444_v2  ;;  %5211 = vmatpush1.bf16.msra.mxu1 %v7446_v11 }
 0x3b0   :  { %5213 = vmatprep.subr.bf16.mxu0 %v6562_v4  ;;  %5245 = vmatprep.subr.bf16.mxu1 %v6599_v17 }
 0x3b2   :  { %1588 = vmatmul.mubr.f32.vlgmr.msra.gmra.mrb[10].mxu0 %v7782_v63  ;;  %1659 = vmatmul.mubr.f32.vlgmr.msra.gmra.mrb[10].mxu1 %v7782_v63 }
 0x3b3   :  { %5215 = vmatpush1.bf16.msra.mxu0 %v6573_v8  ;;  %5247 = vmatpush1.bf16.msra.mxu1 %v6601_v18 }
 0x3b4   :  { %5217 = vmatprep.subr.bf16.mxu0 %v6575_v9  ;;  %5249 = vmatprep.subr.bf16.mxu1 %v6625_v26 }
 0x3b5   :  { %1759 = vmatprep.mubr.f32.mxu0 %v9200_v31  ;;  %1830 = vmatprep.mubr.f32.mxu1 %v9200_v31 }
 0x3b7   :  { %5219 = vmatpush1.bf16.msra.mxu0 %v6597_v16  ;;  %5251 = vmatpush1.bf16.msra.mxu1 %v6637_v30 }
 0x3b8   :  { %5221 = vmatprep.subr.bf16.mxu0 %v6613_v22  ;;  %5253 = vmatprep.subr.bf16.mxu1 %v6664_v39 }
 0x3bb   :  { %5223 = vmatpush1.bf16.msra.mxu0 %v6643_v32  ;;  %5255 = vmatpush1.bf16.msra.mxu1 %v6679_v44 }
 0x3bc   :  { %5225 = vmatprep.subr.bf16.mxu0 %v9306_v23  ;;  %5257 = vmatprep.subr.bf16.mxu1 %v9307_v15 }
 0x3bf   :  { %5227 = vmatpush1.bf16.msra.mxu0 %v9308_v48  ;;  %5259 = vmatpush1.bf16.msra.mxu1 %v9309_v57  ;;  %v9360_v57 = vld [vmem:[#allocation83_spill] sm:$0xff] }
 0x3c0   :  { %5229 = vmatprep.subr.bf16.mxu0 %v9310_v34  ;;  %5261 = vmatprep.subr.bf16.mxu1 %v9311_v40  ;;  %v9321_v34 = vld [vmem:[#allocation22_spill] sm:$0xff]  ;;  %v9322_v40 = vld [vmem:[#allocation21_spill] sm:$0xff] }
 0x3c3   :  { %5231 = vmatpush1.bf16.msra.mxu0 %v9312_v27  ;;  %5263 = vmatpush1.bf16.msra.mxu1 %v9313_v36  ;;  %v9323_v27 = vld [vmem:[#allocation24_spill] sm:$0xff]  ;;  %v9324_v36 = vld [vmem:[#allocation23_spill] sm:$0xff] }
 0x3c4   :  { %5233 = vmatprep.subr.bf16.mxu0 %v9314_v42  ;;  %5265 = vmatprep.subr.bf16.mxu1 %v9315_v47  ;;  %v9325_v42 = vld [vmem:[#allocation25_spill] sm:$0xff]  ;;  %v9326_v47 = vld [vmem:[#allocation26_spill] sm:$0xff] }
 0x3c7   :  { %5235 = vmatpush1.bf16.msra.mxu0 %v9316_v7  ;;  %5267 = vmatpush1.bf16.msra.mxu1 %v9317_v60  ;;  %v9327_v7 = vld [vmem:[#allocation27_spill] sm:$0xff]  ;;  %v9342_v60 = vld [vmem:[#allocation42_spill] sm:$0xff] }
 0x3c8   :  { %5237 = vmatprep.subr.bf16.mxu0 %v9318_v25  ;;  %5269 = vmatprep.subr.bf16.mxu1 %v9319_v10  ;;  %v9328_v10 = vld [vmem:[#allocation28_spill] sm:$0xff]  ;;  %v9341_v25 = vld [vmem:[#allocation41_spill] sm:$0xff] }
 0x3cb   :  { %5239 = vmatpush1.bf16.msra.mxu0 %v9320_v46  ;;  %5271 = vmatpush1.bf16.msra.mxu1 %v9321_v34  ;;  %v9329_v46 = vld [vmem:[#allocation29_spill] sm:$0xff]  ;;  %v9330_v34 = vld [vmem:[#allocation30_spill] sm:$0xff] }
 0x3cc   :  { %5241 = vmatprep.subr.bf16.mxu0 %v9322_v40  ;;  %5273 = vmatprep.subr.bf16.mxu1 %v9323_v27  ;;  %v9331_v40 = vld [vmem:[#allocation31_spill] sm:$0xff]  ;;  %v9336_v27 = vld [vmem:[#allocation36_spill] sm:$0xff] }
 0x3cf   :  { %5243 = vmatpush1.bf16.msra.mxu0 %v9324_v36  ;;  %5275 = vmatpush1.bf16.msra.mxu1 %v9325_v42  ;;  %v9332_v42 = vld [vmem:[#allocation32_spill] sm:$0xff]  ;;  %v9335_v36 = vld [vmem:[#allocation35_spill] sm:$0xff] }
 0x3d0   :  { %5277 = vmatprep.subr.bf16.mxu0 %v9326_v47  ;;  %5309 = vmatprep.subr.bf16.mxu1 %v9327_v7  ;;  %v9333_v47 = vld [vmem:[#allocation33_spill] sm:$0xff]  ;;  %v9334_v7 = vld [vmem:[#allocation34_spill] sm:$0xff] }
 0x3d2   :  { %1760 = vmatmul.mubr.f32.vlgmr.msra.gmra.mrb[12].mxu0 %v7738_v41  ;;  %1831 = vmatmul.mubr.f32.vlgmr.msra.gmra.mrb[12].mxu1 %v7738_v41 }
 0x3d3   :  { %5279 = vmatpush1.bf16.msra.mxu0 %v9328_v10  ;;  %5311 = vmatpush1.bf16.msra.mxu1 %v9329_v46  ;;  %v9337_v10 = vld [vmem:[#allocation37_spill] sm:$0xff]  ;;  %v9338_v46 = vld [vmem:[#allocation38_spill] sm:$0xff] }
 0x3d4   :  { %5281 = vmatprep.subr.bf16.mxu0 %v9330_v34  ;;  %5313 = vmatprep.subr.bf16.mxu1 %v9331_v40  ;;  %v9339_v34 = vld [vmem:[#allocation39_spill] sm:$0xff]  ;;  %v9340_v40 = vld [vmem:[#allocation40_spill] sm:$0xff] }
 0x3d5   :  { %1925 = vmatprep.mubr.f32.mxu0 %v9200_v31  ;;  %1996 = vmatprep.mubr.f32.mxu1 %v9200_v31 }
 0x3d7   :  { %5283 = vmatpush1.bf16.msra.mxu0 %v9332_v42  ;;  %5315 = vmatpush1.bf16.msra.mxu1 %v9333_v47  ;;  %v9343_v42 = vld [vmem:[#allocation43_spill] sm:$0xff]  ;;  %v9344_v47 = vld [vmem:[#allocation44_spill] sm:$0xff] }
 0x3d8   :  { %5285 = vmatprep.subr.bf16.mxu0 %v9334_v7  ;;  %5317 = vmatprep.subr.bf16.mxu1 %v9335_v36  ;;  %v9345_v7 = vld [vmem:[#allocation45_spill] sm:$0xff]  ;;  %v9346_v36 = vld [vmem:[#allocation46_spill] sm:$0xff] }
 0x3db   :  { %5287 = vmatpush1.bf16.msra.mxu0 %v9336_v27  ;;  %5319 = vmatpush1.bf16.msra.mxu1 %v9337_v10  ;;  %v9347_v27 = vld [vmem:[#allocation47_spill] sm:$0xff]  ;;  %v9348_v10 = vld [vmem:[#allocation48_spill] sm:$0xff] }
 0x3dc   :  { %5289 = vmatprep.subr.bf16.mxu0 %v9338_v46  ;;  %5321 = vmatprep.subr.bf16.mxu1 %v9339_v34  ;;  %v9349_v46 = vld [vmem:[#allocation49_spill] sm:$0xff]  ;;  %v9350_v34 = vld [vmem:[#allocation50_spill] sm:$0xff] }
 0x3df   :  { %5291 = vmatpush1.bf16.msra.mxu0 %v9340_v40  ;;  %5323 = vmatpush1.bf16.msra.mxu1 %v9341_v25  ;;  %v9351_v40 = vld [vmem:[#allocation51_spill] sm:$0xff]  ;;  %v9352_v25 = vld [vmem:[#allocation52_spill] sm:$0xff] }
 0x3e0   :  { %5293 = vmatprep.subr.bf16.mxu0 %v9342_v60  ;;  %5325 = vmatprep.subr.bf16.mxu1 %v9343_v42  ;;  %v9353_v60 = vld [vmem:[#allocation53_spill] sm:$0xff]  ;;  %v9354_v42 = vld [vmem:[#allocation54_spill] sm:$0xff] }
 0x3e3   :  { %5295 = vmatpush1.bf16.msra.mxu0 %v9344_v47  ;;  %5327 = vmatpush1.bf16.msra.mxu1 %v9345_v7  ;;  %v9355_v47 = vld [vmem:[#allocation55_spill] sm:$0xff]  ;;  %v9356_v7 = vld [vmem:[#allocation56_spill] sm:$0xff] }
 0x3e4   :  { %5297 = vmatprep.subr.bf16.mxu0 %v9346_v36  ;;  %5329 = vmatprep.subr.bf16.mxu1 %v9347_v27  ;;  %v9357_v36 = vld [vmem:[#allocation57_spill] sm:$0xff]  ;;  %v9358_v27 = vld [vmem:[#allocation58_spill] sm:$0xff] }
 0x3e7   :  { %5299 = vmatpush1.bf16.msra.mxu0 %v9348_v10  ;;  %5331 = vmatpush1.bf16.msra.mxu1 %v9349_v46  ;;  %v9359_v10 = vld [vmem:[#allocation59_spill] sm:$0xff] }
 0x3e8   :  { %5301 = vmatprep.subr.bf16.mxu0 %v9350_v34  ;;  %5333 = vmatprep.subr.bf16.mxu1 %v9351_v40 }
 0x3eb   :  { %5303 = vmatpush1.bf16.msra.mxu0 %v9352_v25  ;;  %5335 = vmatpush1.bf16.msra.mxu1 %v9353_v60 }
 0x3ec   :  { %5305 = vmatprep.subr.bf16.mxu0 %v9354_v42  ;;  %5337 = vmatprep.subr.bf16.mxu1 %v9355_v47 }
 0x3ef   :  { %5307 = vmatpush1.bf16.msra.mxu0 %v9356_v7  ;;  %5339 = vmatpush1.bf16.msra.mxu1 %v9357_v36  ;;  %v9361_v36 = vld [vmem:[#allocation85_spill] sm:$0xff] }
 0x3f0   :  { %5341 = vmatprep.subr.bf16.mxu0 %v9358_v27  ;;  %5373 = vmatprep.subr.bf16.mxu1 %v9359_v10 }
 0x485   :  { %v1589_v46 = vpop.f32.mrb[10].mxu0  ;;  %v1660_v34 = vpop.f32.mrb[10].mxu1 }
 0x486   :  { %v1665_v40 = vadd.f32 %v1589_v46, %v9360_v57  ;;  %v1591_v48 = vpop.f32.mrb[11].mxu0  ;;  %v1662_v25 = vpop.f32.mrb[11].mxu1  ;;  %v1667_v7 = vadd.f32 %v1660_v34, %v9361_v36 }
 0x487   :  { %v1666_v60 = vadd.f32 %v1591_v48, %v9298_v58  ;;  %v1668_v47 = vadd.f32 %v1662_v25, %v7549_v28  ;;  %v9362_v48 = vld [vmem:[#allocation60_spill] sm:$0xff] }
 0x488   :  { %v1669_v15 = vmul.f32 0.5, %v1665_v40  ;;  %v1671_v27 = vmul.f32 0.5, %v1667_v7  ;;  %v4548_v7 = vld [vmem:[%s8946_s1 + $0x78] sm:$0xff] }
 0x489   :  { %v1670_v42 = vmul.f32 0.5, %v1666_v60 }
 0x48a   :  { %6383 = vtanh.f32 %v1669_v15 }
 0x48b   :  { %6385 = vtanh.f32 %v1670_v42 }
 0x48c   :  { %6387 = vtanh.f32 %v1668_v47 }
 0x48d   :  { %6389 = vtanh.f32 %v1671_v27 }
 0x494   :  { %v6384_v23 = vpop.eup %6383 }
 0x495   :  { %v1675_v10 = vmul.f32 0.5, %v6384_v23  ;;  %v6386_v44 = vpop.eup %6385  ;;  %v4545_v23 = vld [vmem:[%s8946_s1 + $0x60] sm:$0xff] }
 0x496   :  { %v1676_v46 = vmul.f32 0.5, %v6386_v44  ;;  %v6388_v57 = vpop.eup %6387  ;;  %v4546_v44 = vld [vmem:[%s8946_s1 + $0x68] sm:$0xff] }
 0x497   :  { %v1678_v32 = vadd.f32 0.5, %v1675_v10  ;;  %v6390_v34 = vpop.eup %6389 }
 0x498   :  { %v1679_v39 = vadd.f32 0.5, %v1676_v46  ;;  %v1677_v42 = vmul.f32 0.5, %v6390_v34  ;;  %v4547_v34 = vld [vmem:[%s8946_s1 + $0x70] sm:$0xff] }
 0x499   :  { %v1683_v22 = vmul.f32 %v6388_v57, %v1678_v32 }
 0x49a   :  { %v1682_v40 = vmul.f32 %v1679_v39, %v9362_v48  ;;  %v1680_v25 = vadd.f32 0.5, %v1677_v42 }
 0x49c   :  { %v1684_v60 = vadd.f32 %v1683_v22, %v1682_v40 }
 0x49e   :  { %6391 = vtanh.f32 %v1684_v60  ;;  %v7864_v15 = vsel %vm1209_vm2, %v1684_v60, %v9362_v48 }
 0x49f   :  { %9363 = vst [vmem:[#allocation61_spill] sm:$0xff] %v7864_v15 }
 0x4a5   :  { %v1761_v32 = vpop.f32.mrb[12].mxu0  ;;  %v1832_v57 = vpop.f32.mrb[12].mxu1 }
 0x4a6   :  { %v1837_v39 = vadd.f32 %v4545_v23, %v1761_v32  ;;  %v1763_v22 = vpop.f32.mrb[13].mxu0  ;;  %v1834_v27 = vpop.f32.mrb[13].mxu1  ;;  %v1839_v23 = vadd.f32 %v4547_v34, %v1832_v57 }
 0x4a7   :  { %v1838_v47 = vadd.f32 %v4546_v44, %v1763_v22  ;;  %v1840_v40 = vadd.f32 %v4548_v7, %v1834_v27  ;;  %v7884_v7 = vld [vmem:[%s8947_s0] sm:$0xff] }
 0x4a8   :  { %v1841_v10 = vmul.f32 0.5, %v1837_v39  ;;  %v6392_v46 = vpop.eup %6391  ;;  %v1843_v44 = vmul.f32 0.5, %v1839_v23  ;;  %vm1689_vm3 = vcmp.gt.s32.totalorder %v7884_v7, 3  ;;  %v9368_v23 = vld [vmem:[#allocation4_spill] sm:$0xff]  ;;  %vm2169_vm4 = vcmp.gt.s32.totalorder %v7884_v7, 4 }
 0x4a9   :  { %v1842_v48 = vmul.f32 0.5, %v1838_v47  ;;  %v7875_v60 = vmul.f32 %v6392_v46, %v1680_v25  ;;  %vm2649_vm5 = vcmp.gt.s32.totalorder %v7884_v7, 5  ;;  %v9552_v7 = vld [vmem:[#allocation3_spill] sm:$0xff] }
 0x4aa   :  { %6393 = vtanh.f32 %v1841_v10 }
 0x4ab   :  { %6395 = vtanh.f32 %v1842_v48 }
 0x4ac   :  { %6397 = vtanh.f32 %v1840_v40 }
 0x4ad   :  { %6399 = vtanh.f32 %v1843_v44  ;;  %v9369_v44 = vld [vmem:[#allocation8_spill] sm:$0xff] }
 0x4b4   :  { %v6394_v32 = vpop.eup %6393 }
 0x4b5   :  { %v1847_v22 = vmul.f32 0.5, %v6394_v32  ;;  %v6396_v15 = vpop.eup %6395  ;;  %v9370_v32 = vld [vmem:[#allocation7_spill] sm:$0xff] }
 0x4b6   :  { %v1848_v42 = vmul.f32 0.5, %v6396_v15  ;;  %v6398_v39 = vpop.eup %6397 }
 0x4b7   :  { %v1850_v36 = vadd.f32 0.5, %v1847_v22  ;;  %v6400_v15 = vpop.eup %6399  ;;  %v9371_v22 = vld [vmem:[#allocation10_spill] sm:$0xff] }
 0x4b8   :  { %v1851_v47 = vadd.f32 0.5, %v1848_v42  ;;  %v1849_v46 = vmul.f32 0.5, %v6400_v15  ;;  %v9372_v42 = vld [vmem:[#allocation9_spill] sm:$0xff]  ;;  %v9378_v15 = vld [vmem:[#allocation15_spill] sm:$0xff] }
 0x4b9   :  { %v1855_v10 = vmul.f32 %v6398_v39, %v1850_v36  ;;  %v9373_v39 = vld [vmem:[#allocation12_spill] sm:$0xff] }
 0x4ba   :  { %v1854_v27 = vmul.f32 %v1851_v47, %v7733_v29  ;;  %v1852_v48 = vadd.f32 0.5, %v1849_v46  ;;  %v9374_v47 = vld [vmem:[#allocation11_spill] sm:$0xff]  ;;  %v9379_v46 = vld [vmem:[#allocation18_spill] sm:$0xff] }
 0x4bc   :  { %v1856_v57 = vadd.f32 %v1855_v10, %v1854_v27  ;;  %v9375_v10 = vld [vmem:[#allocation14_spill] sm:$0xff]  ;;  %v9376_v27 = vld [vmem:[#allocation13_spill] sm:$0xff] }
 0x4be   :  { %6401 = vtanh.f32 %v1856_v57  ;;  %v7890_v25 = vsel %vm1689_vm3, %v1856_v57, %v7733_v29  ;;  %v7937_v29 = vsel %vm1209_vm2, %v7875_v60, %v7782_v63  ;;  %v9366_v63 = vld [vmem:[#allocation3_spill] sm:$0xff]  ;;  %v9367_v60 = vld [vmem:[#allocation6_spill] sm:$0xff]  ;;  %v9377_v57 = vld [vmem:[#allocation16_spill] sm:$0xff] }
 0x4c8   :  { %v6402_v36 = vpop.eup %6401 }
 0x4c9   :  { %v1858_v40 = vmul.f32 %v6402_v36, %v1852_v48  ;;  %v9380_v48 = vld [vmem:[#allocation17_spill] sm:$0xff]  ;;  %v9381_v36 = vld [vmem:[#allocation20_spill] sm:$0xff] }
 0x4cb   :  { %v7895_v34 = vsel %vm1689_vm3, %v1858_v40, %v7738_v41  ;;  %v9365_v41 = vld [vmem:[#allocation5_spill] sm:$0xff]  ;;  %v9382_v40 = vld [vmem:[#allocation19_spill] sm:$0xff] }
 0x4cc   :  { %1926 = vmatmul.mubr.f32.vlgmr.msra.gmra.mrb[14].mxu0 %v7895_v34  ;;  %1997 = vmatmul.mubr.f32.vlgmr.msra.gmra.mrb[14].mxu1 %v7895_v34 }
 0x4cd   :  { %5343 = vmatpush1.bf16.msra.mxu0 %v9242_v49  ;;  %5375 = vmatpush1.bf16.msra.mxu1 %v9243_v33 }
 0x4ce   :  { %5345 = vmatprep.subr.bf16.mxu0 %v9244_v50  ;;  %5377 = vmatprep.subr.bf16.mxu1 %v9245_v21 }
 0x4cf   :  { %2067 = vmatprep.mubr.f32.mxu0 %v9200_v31  ;;  %2138 = vmatprep.mubr.f32.mxu1 %v9200_v31 }
 0x4d1   :  { %5347 = vmatpush1.bf16.msra.mxu0 %v9246_v0  ;;  %5379 = vmatpush1.bf16.msra.mxu1 %v9247_v43 }
 0x4d2   :  { %5349 = vmatprep.subr.bf16.mxu0 %v9302_v45  ;;  %5381 = vmatprep.subr.bf16.mxu1 %v9303_v61 }
 0x4d5   :  { %5351 = vmatpush1.bf16.msra.mxu0 %v9304_v12  ;;  %5383 = vmatpush1.bf16.msra.mxu1 %v9251_v3 }
 0x4d6   :  { %5353 = vmatprep.subr.bf16.mxu0 %v9305_v51  ;;  %5385 = vmatprep.subr.bf16.mxu1 %v9253_v59 }
 0x4d9   :  { %5355 = vmatpush1.bf16.msra.mxu0 %v9254_v14  ;;  %5387 = vmatpush1.bf16.msra.mxu1 %v9255_v6 }
 0x4da   :  { %5357 = vmatprep.subr.bf16.mxu0 %v9256_v37  ;;  %5389 = vmatprep.subr.bf16.mxu1 %v9257_v13 }
 0x4dd   :  { %5359 = vmatpush1.bf16.msra.mxu0 %v9258_v1  ;;  %5391 = vmatpush1.bf16.msra.mxu1 %v9259_v35 }
 0x4de   :  { %5361 = vmatprep.subr.bf16.mxu0 %v9260_v53  ;;  %5393 = vmatprep.subr.bf16.mxu1 %v9261_v55 }
 0x4e1   :  { %5363 = vmatpush1.bf16.msra.mxu0 %v7384_v52  ;;  %5395 = vmatpush1.bf16.msra.mxu1 %v9262_v19 }
 0x4e2   :  { %5365 = vmatprep.subr.bf16.mxu0 %v7396_v20  ;;  %5397 = vmatprep.subr.bf16.mxu1 %v7398_v56 }
 0x4e5   :  { %5367 = vmatpush1.bf16.msra.mxu0 %v7420_v5  ;;  %5399 = vmatpush1.bf16.msra.mxu1 %v7422_v38 }
 0x4e6   :  { %5369 = vmatprep.subr.bf16.mxu0 %v7429_v62  ;;  %5401 = vmatprep.subr.bf16.mxu1 %v7431_v54 }
 0x4e9   :  { %5371 = vmatpush1.bf16.msra.mxu0 %v7444_v2  ;;  %5403 = vmatpush1.bf16.msra.mxu1 %v7446_v11 }
 0x4ea   :  { %5405 = vmatprep.subr.bf16.mxu0 %v6562_v4  ;;  %5437 = vmatprep.subr.bf16.mxu1 %v6599_v17 }
 0x4ec   :  { %2068 = vmatmul.mubr.f32.vlgmr.msra.gmra.mrb[14].mxu0 %v7937_v29  ;;  %2139 = vmatmul.mubr.f32.vlgmr.msra.gmra.mrb[14].mxu1 %v7937_v29 }
 0x4ed   :  { %5407 = vmatpush1.bf16.msra.mxu0 %v6573_v8  ;;  %5439 = vmatpush1.bf16.msra.mxu1 %v6601_v18 }
 0x4ee   :  { %5409 = vmatprep.subr.bf16.mxu0 %v6575_v9  ;;  %5441 = vmatprep.subr.bf16.mxu1 %v6625_v26 }
 0x4ef   :  { %2239 = vmatprep.mubr.f32.mxu0 %v9200_v31  ;;  %2310 = vmatprep.mubr.f32.mxu1 %v9200_v31 }
 0x4f1   :  { %5411 = vmatpush1.bf16.msra.mxu0 %v6597_v16  ;;  %5443 = vmatpush1.bf16.msra.mxu1 %v6637_v30 }
 0x4f2   :  { %5413 = vmatprep.subr.bf16.mxu0 %v9364_v24  ;;  %5445 = vmatprep.subr.bf16.mxu1 %v9365_v41 }
 0x4f5   :  { %5415 = vmatpush1.bf16.msra.mxu0 %v9366_v63  ;;  %5447 = vmatpush1.bf16.msra.mxu1 %v9367_v60 }
 0x4f6   :  { %5417 = vmatprep.subr.bf16.mxu0 %v9368_v23  ;;  %5449 = vmatprep.subr.bf16.mxu1 %v9369_v44 }
 0x4f9   :  { %5419 = vmatpush1.bf16.msra.mxu0 %v9370_v32  ;;  %5451 = vmatpush1.bf16.msra.mxu1 %v9371_v22  ;;  %v9422_v22 = vld [vmem:[#allocation83_spill] sm:$0xff] }
 0x4fa   :  { %5421 = vmatprep.subr.bf16.mxu0 %v9372_v42  ;;  %5453 = vmatprep.subr.bf16.mxu1 %v9373_v39  ;;  %v9383_v42 = vld [vmem:[#allocation22_spill] sm:$0xff]  ;;  %v9384_v39 = vld [vmem:[#allocation21_spill] sm:$0xff] }
 0x4fd   :  { %5423 = vmatpush1.bf16.msra.mxu0 %v9374_v47  ;;  %5455 = vmatpush1.bf16.msra.mxu1 %v9375_v10  ;;  %v9385_v47 = vld [vmem:[#allocation24_spill] sm:$0xff]  ;;  %v9386_v10 = vld [vmem:[#allocation23_spill] sm:$0xff] }
 0x4fe   :  { %5425 = vmatprep.subr.bf16.mxu0 %v9376_v27  ;;  %5457 = vmatprep.subr.bf16.mxu1 %v9377_v57  ;;  %v9387_v27 = vld [vmem:[#allocation25_spill] sm:$0xff]  ;;  %v9388_v57 = vld [vmem:[#allocation26_spill] sm:$0xff] }
 0x501   :  { %5427 = vmatpush1.bf16.msra.mxu0 %v9378_v15  ;;  %5459 = vmatpush1.bf16.msra.mxu1 %v9379_v46  ;;  %v9389_v15 = vld [vmem:[#allocation27_spill] sm:$0xff]  ;;  %v9404_v46 = vld [vmem:[#allocation42_spill] sm:$0xff] }
 0x502   :  { %5429 = vmatprep.subr.bf16.mxu0 %v9380_v48  ;;  %5461 = vmatprep.subr.bf16.mxu1 %v9381_v36  ;;  %v9390_v36 = vld [vmem:[#allocation28_spill] sm:$0xff]  ;;  %v9403_v48 = vld [vmem:[#allocation41_spill] sm:$0xff] }
 0x505   :  { %5431 = vmatpush1.bf16.msra.mxu0 %v9382_v40  ;;  %5463 = vmatpush1.bf16.msra.mxu1 %v9383_v42  ;;  %v9391_v40 = vld [vmem:[#allocation29_spill] sm:$0xff]  ;;  %v9392_v42 = vld [vmem:[#allocation30_spill] sm:$0xff] }
 0x506   :  { %5433 = vmatprep.subr.bf16.mxu0 %v9384_v39  ;;  %5465 = vmatprep.subr.bf16.mxu1 %v9385_v47  ;;  %v9393_v39 = vld [vmem:[#allocation31_spill] sm:$0xff]  ;;  %v9398_v47 = vld [vmem:[#allocation36_spill] sm:$0xff] }
 0x509   :  { %5435 = vmatpush1.bf16.msra.mxu0 %v9386_v10  ;;  %5467 = vmatpush1.bf16.msra.mxu1 %v9387_v27  ;;  %v9394_v27 = vld [vmem:[#allocation32_spill] sm:$0xff]  ;;  %v9397_v10 = vld [vmem:[#allocation35_spill] sm:$0xff] }
 0x50a   :  { %5469 = vmatprep.subr.bf16.mxu0 %v9388_v57  ;;  %5501 = vmatprep.subr.bf16.mxu1 %v9389_v15  ;;  %v9395_v57 = vld [vmem:[#allocation33_spill] sm:$0xff]  ;;  %v9396_v15 = vld [vmem:[#allocation34_spill] sm:$0xff] }
 0x50c   :  { %2240 = vmatmul.mubr.f32.vlgmr.msra.gmra.mrb[16].mxu0 %v7895_v34  ;;  %2311 = vmatmul.mubr.f32.vlgmr.msra.gmra.mrb[16].mxu1 %v7895_v34 }
 0x50d   :  { %5471 = vmatpush1.bf16.msra.mxu0 %v9390_v36  ;;  %5503 = vmatpush1.bf16.msra.mxu1 %v9391_v40  ;;  %v9399_v36 = vld [vmem:[#allocation37_spill] sm:$0xff]  ;;  %v9400_v40 = vld [vmem:[#allocation38_spill] sm:$0xff] }
 0x50e   :  { %5473 = vmatprep.subr.bf16.mxu0 %v9392_v42  ;;  %5505 = vmatprep.subr.bf16.mxu1 %v9393_v39  ;;  %v9401_v42 = vld [vmem:[#allocation39_spill] sm:$0xff]  ;;  %v9402_v39 = vld [vmem:[#allocation40_spill] sm:$0xff] }
 0x50f   :  { %2405 = vmatprep.mubr.f32.mxu0 %v9200_v31  ;;  %2476 = vmatprep.mubr.f32.mxu1 %v9200_v31 }
 0x511   :  { %5475 = vmatpush1.bf16.msra.mxu0 %v9394_v27  ;;  %5507 = vmatpush1.bf16.msra.mxu1 %v9395_v57  ;;  %v9405_v27 = vld [vmem:[#allocation43_spill] sm:$0xff]  ;;  %v9406_v57 = vld [vmem:[#allocation44_spill] sm:$0xff] }
 0x512   :  { %5477 = vmatprep.subr.bf16.mxu0 %v9396_v15  ;;  %5509 = vmatprep.subr.bf16.mxu1 %v9397_v10  ;;  %v9407_v15 = vld [vmem:[#allocation45_spill] sm:$0xff]  ;;  %v9408_v10 = vld [vmem:[#allocation46_spill] sm:$0xff] }
 0x515   :  { %5479 = vmatpush1.bf16.msra.mxu0 %v9398_v47  ;;  %5511 = vmatpush1.bf16.msra.mxu1 %v9399_v36  ;;  %v9409_v47 = vld [vmem:[#allocation47_spill] sm:$0xff]  ;;  %v9410_v36 = vld [vmem:[#allocation48_spill] sm:$0xff] }
 0x516   :  { %5481 = vmatprep.subr.bf16.mxu0 %v9400_v40  ;;  %5513 = vmatprep.subr.bf16.mxu1 %v9401_v42  ;;  %v9411_v40 = vld [vmem:[#allocation49_spill] sm:$0xff]  ;;  %v9412_v42 = vld [vmem:[#allocation50_spill] sm:$0xff] }
 0x519   :  { %5483 = vmatpush1.bf16.msra.mxu0 %v9402_v39  ;;  %5515 = vmatpush1.bf16.msra.mxu1 %v9403_v48  ;;  %v9413_v39 = vld [vmem:[#allocation51_spill] sm:$0xff]  ;;  %v9414_v48 = vld [vmem:[#allocation52_spill] sm:$0xff] }
 0x51a   :  { %5485 = vmatprep.subr.bf16.mxu0 %v9404_v46  ;;  %5517 = vmatprep.subr.bf16.mxu1 %v9405_v27  ;;  %v9415_v46 = vld [vmem:[#allocation53_spill] sm:$0xff]  ;;  %v9416_v27 = vld [vmem:[#allocation54_spill] sm:$0xff] }
 0x51d   :  { %5487 = vmatpush1.bf16.msra.mxu0 %v9406_v57  ;;  %5519 = vmatpush1.bf16.msra.mxu1 %v9407_v15  ;;  %v9417_v57 = vld [vmem:[#allocation55_spill] sm:$0xff]  ;;  %v9418_v15 = vld [vmem:[#allocation56_spill] sm:$0xff] }
 0x51e   :  { %5489 = vmatprep.subr.bf16.mxu0 %v9408_v10  ;;  %5521 = vmatprep.subr.bf16.mxu1 %v9409_v47  ;;  %v9419_v10 = vld [vmem:[#allocation57_spill] sm:$0xff]  ;;  %v9420_v47 = vld [vmem:[#allocation58_spill] sm:$0xff] }
 0x521   :  { %5491 = vmatpush1.bf16.msra.mxu0 %v9410_v36  ;;  %5523 = vmatpush1.bf16.msra.mxu1 %v9411_v40  ;;  %v9421_v36 = vld [vmem:[#allocation59_spill] sm:$0xff] }
 0x522   :  { %5493 = vmatprep.subr.bf16.mxu0 %v9412_v42  ;;  %5525 = vmatprep.subr.bf16.mxu1 %v9413_v39 }
 0x525   :  { %5495 = vmatpush1.bf16.msra.mxu0 %v9414_v48  ;;  %5527 = vmatpush1.bf16.msra.mxu1 %v9415_v46 }
 0x526   :  { %5497 = vmatprep.subr.bf16.mxu0 %v9416_v27  ;;  %5529 = vmatprep.subr.bf16.mxu1 %v9417_v57 }
 0x529   :  { %5499 = vmatpush1.bf16.msra.mxu0 %v9418_v15  ;;  %5531 = vmatpush1.bf16.msra.mxu1 %v9419_v10  ;;  %v9423_v10 = vld [vmem:[#allocation85_spill] sm:$0xff] }
 0x52a   :  { %5533 = vmatprep.subr.bf16.mxu0 %v9420_v47  ;;  %5565 = vmatprep.subr.bf16.mxu1 %v9421_v36 }
 0x5bf   :  { %v2069_v40 = vpop.f32.mrb[14].mxu0  ;;  %v2140_v42 = vpop.f32.mrb[14].mxu1 }
 0x5c0   :  { %v2145_v39 = vadd.f32 %v2069_v40, %v9422_v22  ;;  %v2071_v32 = vpop.f32.mrb[15].mxu0  ;;  %v2142_v48 = vpop.f32.mrb[15].mxu1  ;;  %v2147_v15 = vadd.f32 %v2140_v42, %v9423_v10 }
 0x5c1   :  { %v2146_v46 = vadd.f32 %v2071_v32, %v9298_v58  ;;  %v2148_v57 = vadd.f32 %v2142_v48, %v7549_v28  ;;  %v9424_v32 = vld [vmem:[#allocation61_spill] sm:$0xff] }
 0x5c2   :  { %v2149_v44 = vmul.f32 0.5, %v2145_v39  ;;  %v2151_v47 = vmul.f32 0.5, %v2147_v15  ;;  %v4552_v15 = vld [vmem:[%s8946_s1 + $0x98] sm:$0xff] }
 0x5c3   :  { %v2150_v27 = vmul.f32 0.5, %v2146_v46 }
 0x5c4   :  { %6403 = vtanh.f32 %v2149_v44 }
 0x5c5   :  { %6405 = vtanh.f32 %v2150_v27 }
 0x5c6   :  { %6407 = vtanh.f32 %v2148_v57 }
 0x5c7   :  { %6409 = vtanh.f32 %v2151_v47 }
 0x5ce   :  { %v6404_v23 = vpop.eup %6403 }
 0x5cf   :  { %v2155_v36 = vmul.f32 0.5, %v6404_v23  ;;  %v6406_v60 = vpop.eup %6405  ;;  %v4549_v23 = vld [vmem:[%s8946_s1 + $0x80] sm:$0xff] }
 0x5d0   :  { %v2156_v40 = vmul.f32 0.5, %v6406_v60  ;;  %v6408_v22 = vpop.eup %6407  ;;  %v4550_v60 = vld [vmem:[%s8946_s1 + $0x88] sm:$0xff] }
 0x5d1   :  { %v2158_v63 = vadd.f32 0.5, %v2155_v36  ;;  %v6410_v42 = vpop.eup %6409 }
 0x5d2   :  { %v2159_v41 = vadd.f32 0.5, %v2156_v40  ;;  %v2157_v27 = vmul.f32 0.5, %v6410_v42  ;;  %v4551_v42 = vld [vmem:[%s8946_s1 + $0x90] sm:$0xff] }
 0x5d3   :  { %v2163_v24 = vmul.f32 %v6408_v22, %v2158_v63 }
 0x5d4   :  { %v2162_v39 = vmul.f32 %v2159_v41, %v9424_v32  ;;  %v2160_v48 = vadd.f32 0.5, %v2157_v27 }
 0x5d6   :  { %v2164_v46 = vadd.f32 %v2163_v24, %v2162_v39 }
 0x5d8   :  { %6411 = vtanh.f32 %v2164_v46  ;;  %v8019_v44 = vsel %vm1689_vm3, %v2164_v46, %v9424_v32 }
 0x5d9   :  { %9425 = vst [vmem:[#allocation62_spill] sm:$0xff] %v8019_v44 }
 0x5df   :  { %v2241_v63 = vpop.f32.mrb[16].mxu0  ;;  %v2312_v22 = vpop.f32.mrb[16].mxu1 }
 0x5e0   :  { %v2317_v41 = vadd.f32 %v4549_v23, %v2241_v63  ;;  %v2243_v24 = vpop.f32.mrb[17].mxu0  ;;  %v2314_v47 = vpop.f32.mrb[17].mxu1  ;;  %v2319_v23 = vadd.f32 %v4551_v42, %v2312_v22 }
 0x5e1   :  { %v2318_v57 = vadd.f32 %v4550_v60, %v2243_v24  ;;  %v2320_v39 = vadd.f32 %v4552_v15, %v2314_v47 }
 0x5e2   :  { %v2321_v36 = vmul.f32 0.5, %v2317_v41  ;;  %v6412_v40 = vpop.eup %6411  ;;  %v2323_v60 = vmul.f32 0.5, %v2319_v23  ;;  %v9430_v23 = vld [vmem:[#allocation4_spill] sm:$0xff] }
 0x5e3   :  { %v2322_v32 = vmul.f32 0.5, %v2318_v57  ;;  %v8030_v46 = vmul.f32 %v6412_v40, %v2160_v48 }
 0x5e4   :  { %6413 = vtanh.f32 %v2321_v36 }
 0x5e5   :  { %6415 = vtanh.f32 %v2322_v32 }
 0x5e6   :  { %6417 = vtanh.f32 %v2320_v39 }
 0x5e7   :  { %6419 = vtanh.f32 %v2323_v60  ;;  %v9431_v60 = vld [vmem:[#allocation8_spill] sm:$0xff] }
 0x5ee   :  { %v6414_v63 = vpop.eup %6413 }
 0x5ef   :  { %v2327_v24 = vmul.f32 0.5, %v6414_v63  ;;  %v6416_v44 = vpop.eup %6415  ;;  %v9432_v63 = vld [vmem:[#allocation7_spill] sm:$0xff] }
 0x5f0   :  { %v2328_v27 = vmul.f32 0.5, %v6416_v44  ;;  %v6418_v41 = vpop.eup %6417  ;;  %v9428_v44 = vld [vmem:[#allocation3_spill] sm:$0xff] }
 0x5f1   :  { %v2330_v10 = vadd.f32 0.5, %v2327_v24  ;;  %v6420_v48 = vpop.eup %6419  ;;  %v9433_v24 = vld [vmem:[#allocation10_spill] sm:$0xff] }
 0x5f2   :  { %v2331_v57 = vadd.f32 0.5, %v2328_v27  ;;  %v2329_v40 = vmul.f32 0.5, %v6420_v48  ;;  %v9434_v27 = vld [vmem:[#allocation9_spill] sm:$0xff]  ;;  %v9440_v48 = vld [vmem:[#allocation15_spill] sm:$0xff] }
 0x5f3   :  { %v2335_v36 = vmul.f32 %v6418_v41, %v2330_v10  ;;  %v9435_v41 = vld [vmem:[#allocation12_spill] sm:$0xff] }
 0x5f4   :  { %v2334_v47 = vmul.f32 %v2331_v57, %v7890_v25  ;;  %v2332_v32 = vadd.f32 0.5, %v2329_v40  ;;  %v9436_v57 = vld [vmem:[#allocation11_spill] sm:$0xff]  ;;  %v9441_v40 = vld [vmem:[#allocation18_spill] sm:$0xff] }
 0x5f6   :  { %v2336_v15 = vadd.f32 %v2335_v36, %v2334_v47  ;;  %v9437_v36 = vld [vmem:[#allocation14_spill] sm:$0xff]  ;;  %v9438_v47 = vld [vmem:[#allocation13_spill] sm:$0xff] }
 0x5f8   :  { %6421 = vtanh.f32 %v2336_v15  ;;  %v8040_v22 = vsel %vm2169_vm4, %v2336_v15, %v7890_v25  ;;  %v8087_v25 = vsel %vm1689_vm3, %v8030_v46, %v7937_v29  ;;  %v9427_v29 = vld [vmem:[#allocation5_spill] sm:$0xff]  ;;  %v9429_v46 = vld [vmem:[#allocation6_spill] sm:$0xff]  ;;  %v9439_v15 = vld [vmem:[#allocation16_spill] sm:$0xff] }
 0x602   :  { %v6422_v39 = vpop.eup %6421 }
 0x603   :  { %v2338_v42 = vmul.f32 %v6422_v39, %v2332_v32  ;;  %v9442_v32 = vld [vmem:[#allocation17_spill] sm:$0xff]  ;;  %v9443_v39 = vld [vmem:[#allocation20_spill] sm:$0xff] }
 0x605   :  { %v8045_v10 = vsel %vm2169_vm4, %v2338_v42, %v7895_v34  ;;  %v9426_v34 = vld [vmem:[#allocation2_spill] sm:$0xff]  ;;  %v9444_v42 = vld [vmem:[#allocation19_spill] sm:$0xff] }
 0x606   :  { %2406 = vmatmul.mubr.f32.vlgmr.msra.gmra.mrb[18].mxu0 %v8045_v10  ;;  %2477 = vmatmul.mubr.f32.vlgmr.msra.gmra.mrb[18].mxu1 %v8045_v10 }
 0x607   :  { %5535 = vmatpush1.bf16.msra.mxu0 %v9242_v49  ;;  %5567 = vmatpush1.bf16.msra.mxu1 %v9243_v33 }
 0x608   :  { %5537 = vmatprep.subr.bf16.mxu0 %v9244_v50  ;;  %5569 = vmatprep.subr.bf16.mxu1 %v9245_v21 }
 0x609   :  { %2547 = vmatprep.mubr.f32.mxu0 %v9200_v31  ;;  %2618 = vmatprep.mubr.f32.mxu1 %v9200_v31 }
 0x60b   :  { %5539 = vmatpush1.bf16.msra.mxu0 %v9246_v0  ;;  %5571 = vmatpush1.bf16.msra.mxu1 %v9247_v43 }
 0x60c   :  { %5541 = vmatprep.subr.bf16.mxu0 %v9302_v45  ;;  %5573 = vmatprep.subr.bf16.mxu1 %v9303_v61 }
 0x60f   :  { %5543 = vmatpush1.bf16.msra.mxu0 %v9304_v12  ;;  %5575 = vmatpush1.bf16.msra.mxu1 %v9251_v3 }
 0x610   :  { %5545 = vmatprep.subr.bf16.mxu0 %v9305_v51  ;;  %5577 = vmatprep.subr.bf16.mxu1 %v9253_v59 }
 0x613   :  { %5547 = vmatpush1.bf16.msra.mxu0 %v9254_v14  ;;  %5579 = vmatpush1.bf16.msra.mxu1 %v9255_v6 }
 0x614   :  { %5549 = vmatprep.subr.bf16.mxu0 %v9256_v37  ;;  %5581 = vmatprep.subr.bf16.mxu1 %v9257_v13 }
 0x617   :  { %5551 = vmatpush1.bf16.msra.mxu0 %v9258_v1  ;;  %5583 = vmatpush1.bf16.msra.mxu1 %v9259_v35 }
 0x618   :  { %5553 = vmatprep.subr.bf16.mxu0 %v9260_v53  ;;  %5585 = vmatprep.subr.bf16.mxu1 %v9261_v55 }
 0x61b   :  { %5555 = vmatpush1.bf16.msra.mxu0 %v7384_v52  ;;  %5587 = vmatpush1.bf16.msra.mxu1 %v9262_v19 }
 0x61c   :  { %5557 = vmatprep.subr.bf16.mxu0 %v7396_v20  ;;  %5589 = vmatprep.subr.bf16.mxu1 %v7398_v56 }
 0x61f   :  { %5559 = vmatpush1.bf16.msra.mxu0 %v7420_v5  ;;  %5591 = vmatpush1.bf16.msra.mxu1 %v7422_v38 }
 0x620   :  { %5561 = vmatprep.subr.bf16.mxu0 %v7429_v62  ;;  %5593 = vmatprep.subr.bf16.mxu1 %v7431_v54 }
 0x623   :  { %5563 = vmatpush1.bf16.msra.mxu0 %v7444_v2  ;;  %5595 = vmatpush1.bf16.msra.mxu1 %v7446_v11 }
 0x624   :  { %5597 = vmatprep.subr.bf16.mxu0 %v6562_v4  ;;  %5629 = vmatprep.subr.bf16.mxu1 %v6599_v17 }
 0x626   :  { %2548 = vmatmul.mubr.f32.vlgmr.msra.gmra.mrb[18].mxu0 %v8087_v25  ;;  %2619 = vmatmul.mubr.f32.vlgmr.msra.gmra.mrb[18].mxu1 %v8087_v25 }
 0x627   :  { %5599 = vmatpush1.bf16.msra.mxu0 %v6573_v8  ;;  %5631 = vmatpush1.bf16.msra.mxu1 %v6601_v18 }
 0x628   :  { %5601 = vmatprep.subr.bf16.mxu0 %v6575_v9  ;;  %5633 = vmatprep.subr.bf16.mxu1 %v6625_v26 }
 0x629   :  { %2719 = vmatprep.mubr.f32.mxu0 %v9200_v31  ;;  %2790 = vmatprep.mubr.f32.mxu1 %v9200_v31 }
 0x62b   :  { %5603 = vmatpush1.bf16.msra.mxu0 %v6597_v16  ;;  %5635 = vmatpush1.bf16.msra.mxu1 %v6637_v30 }
 0x62c   :  { %5605 = vmatprep.subr.bf16.mxu0 %v9426_v34  ;;  %5637 = vmatprep.subr.bf16.mxu1 %v9427_v29 }
 0x62f   :  { %5607 = vmatpush1.bf16.msra.mxu0 %v9428_v44  ;;  %5639 = vmatpush1.bf16.msra.mxu1 %v9429_v46 }
 0x630   :  { %5609 = vmatprep.subr.bf16.mxu0 %v9430_v23  ;;  %5641 = vmatprep.subr.bf16.mxu1 %v9431_v60 }
 0x633   :  { %5611 = vmatpush1.bf16.msra.mxu0 %v9432_v63  ;;  %5643 = vmatpush1.bf16.msra.mxu1 %v9433_v24  ;;  %v9484_v24 = vld [vmem:[#allocation83_spill] sm:$0xff] }
 0x634   :  { %5613 = vmatprep.subr.bf16.mxu0 %v9434_v27  ;;  %5645 = vmatprep.subr.bf16.mxu1 %v9435_v41  ;;  %v9445_v27 = vld [vmem:[#allocation22_spill] sm:$0xff]  ;;  %v9446_v41 = vld [vmem:[#allocation21_spill] sm:$0xff] }
 0x637   :  { %5615 = vmatpush1.bf16.msra.mxu0 %v9436_v57  ;;  %5647 = vmatpush1.bf16.msra.mxu1 %v9437_v36  ;;  %v9447_v57 = vld [vmem:[#allocation24_spill] sm:$0xff]  ;;  %v9448_v36 = vld [vmem:[#allocation23_spill] sm:$0xff] }
 0x638   :  { %5617 = vmatprep.subr.bf16.mxu0 %v9438_v47  ;;  %5649 = vmatprep.subr.bf16.mxu1 %v9439_v15  ;;  %v9449_v47 = vld [vmem:[#allocation25_spill] sm:$0xff]  ;;  %v9450_v15 = vld [vmem:[#allocation26_spill] sm:$0xff] }
 0x63b   :  { %5619 = vmatpush1.bf16.msra.mxu0 %v9440_v48  ;;  %5651 = vmatpush1.bf16.msra.mxu1 %v9441_v40  ;;  %v9451_v48 = vld [vmem:[#allocation27_spill] sm:$0xff]  ;;  %v9466_v40 = vld [vmem:[#allocation42_spill] sm:$0xff] }
 0x63c   :  { %5621 = vmatprep.subr.bf16.mxu0 %v9442_v32  ;;  %5653 = vmatprep.subr.bf16.mxu1 %v9443_v39  ;;  %v9452_v39 = vld [vmem:[#allocation28_spill] sm:$0xff]  ;;  %v9465_v32 = vld [vmem:[#allocation41_spill] sm:$0xff] }
 0x63f   :  { %5623 = vmatpush1.bf16.msra.mxu0 %v9444_v42  ;;  %5655 = vmatpush1.bf16.msra.mxu1 %v9445_v27  ;;  %v9453_v42 = vld [vmem:[#allocation29_spill] sm:$0xff]  ;;  %v9454_v27 = vld [vmem:[#allocation30_spill] sm:$0xff] }
 0x640   :  { %5625 = vmatprep.subr.bf16.mxu0 %v9446_v41  ;;  %5657 = vmatprep.subr.bf16.mxu1 %v9447_v57  ;;  %v9455_v41 = vld [vmem:[#allocation31_spill] sm:$0xff]  ;;  %v9460_v57 = vld [vmem:[#allocation36_spill] sm:$0xff] }
 0x643   :  { %5627 = vmatpush1.bf16.msra.mxu0 %v9448_v36  ;;  %5659 = vmatpush1.bf16.msra.mxu1 %v9449_v47  ;;  %v9456_v47 = vld [vmem:[#allocation32_spill] sm:$0xff]  ;;  %v9459_v36 = vld [vmem:[#allocation35_spill] sm:$0xff] }
 0x644   :  { %5661 = vmatprep.subr.bf16.mxu0 %v9450_v15  ;;  %5693 = vmatprep.subr.bf16.mxu1 %v9451_v48  ;;  %v9457_v15 = vld [vmem:[#allocation33_spill] sm:$0xff]  ;;  %v9458_v48 = vld [vmem:[#allocation34_spill] sm:$0xff] }
 0x646   :  { %2720 = vmatmul.mubr.f32.vlgmr.msra.gmra.mrb[20].mxu0 %v8045_v10  ;;  %2791 = vmatmul.mubr.f32.vlgmr.msra.gmra.mrb[20].mxu1 %v8045_v10 }
 0x647   :  { %5663 = vmatpush1.bf16.msra.mxu0 %v9452_v39  ;;  %5695 = vmatpush1.bf16.msra.mxu1 %v9453_v42  ;;  %v9461_v39 = vld [vmem:[#allocation37_spill] sm:$0xff]  ;;  %v9462_v42 = vld [vmem:[#allocation38_spill] sm:$0xff] }
 0x648   :  { %5665 = vmatprep.subr.bf16.mxu0 %v9454_v27  ;;  %5697 = vmatprep.subr.bf16.mxu1 %v9455_v41  ;;  %v9463_v27 = vld [vmem:[#allocation39_spill] sm:$0xff]  ;;  %v9464_v41 = vld [vmem:[#allocation40_spill] sm:$0xff] }
 0x649   :  { %2885 = vmatprep.mubr.f32.mxu0 %v9200_v31  ;;  %2956 = vmatprep.mubr.f32.mxu1 %v9200_v31 }
 0x64b   :  { %5667 = vmatpush1.bf16.msra.mxu0 %v9456_v47  ;;  %5699 = vmatpush1.bf16.msra.mxu1 %v9457_v15  ;;  %v9467_v47 = vld [vmem:[#allocation43_spill] sm:$0xff]  ;;  %v9468_v15 = vld [vmem:[#allocation44_spill] sm:$0xff] }
 0x64c   :  { %5669 = vmatprep.subr.bf16.mxu0 %v9458_v48  ;;  %5701 = vmatprep.subr.bf16.mxu1 %v9459_v36  ;;  %v9469_v48 = vld [vmem:[#allocation45_spill] sm:$0xff]  ;;  %v9470_v36 = vld [vmem:[#allocation46_spill] sm:$0xff] }
 0x64f   :  { %5671 = vmatpush1.bf16.msra.mxu0 %v9460_v57  ;;  %5703 = vmatpush1.bf16.msra.mxu1 %v9461_v39  ;;  %v9471_v57 = vld [vmem:[#allocation47_spill] sm:$0xff]  ;;  %v9472_v39 = vld [vmem:[#allocation48_spill] sm:$0xff] }
 0x650   :  { %5673 = vmatprep.subr.bf16.mxu0 %v9462_v42  ;;  %5705 = vmatprep.subr.bf16.mxu1 %v9463_v27  ;;  %v9473_v42 = vld [vmem:[#allocation49_spill] sm:$0xff]  ;;  %v9474_v27 = vld [vmem:[#allocation50_spill] sm:$0xff] }
 0x653   :  { %5675 = vmatpush1.bf16.msra.mxu0 %v9464_v41  ;;  %5707 = vmatpush1.bf16.msra.mxu1 %v9465_v32  ;;  %v9475_v41 = vld [vmem:[#allocation51_spill] sm:$0xff]  ;;  %v9476_v32 = vld [vmem:[#allocation52_spill] sm:$0xff] }
 0x654   :  { %5677 = vmatprep.subr.bf16.mxu0 %v9466_v40  ;;  %5709 = vmatprep.subr.bf16.mxu1 %v9467_v47  ;;  %v9477_v40 = vld [vmem:[#allocation53_spill] sm:$0xff]  ;;  %v9478_v47 = vld [vmem:[#allocation54_spill] sm:$0xff] }
 0x657   :  { %5679 = vmatpush1.bf16.msra.mxu0 %v9468_v15  ;;  %5711 = vmatpush1.bf16.msra.mxu1 %v9469_v48  ;;  %v9479_v15 = vld [vmem:[#allocation55_spill] sm:$0xff]  ;;  %v9480_v48 = vld [vmem:[#allocation56_spill] sm:$0xff] }
 0x658   :  { %5681 = vmatprep.subr.bf16.mxu0 %v9470_v36  ;;  %5713 = vmatprep.subr.bf16.mxu1 %v9471_v57  ;;  %v9481_v36 = vld [vmem:[#allocation57_spill] sm:$0xff]  ;;  %v9482_v57 = vld [vmem:[#allocation58_spill] sm:$0xff] }
 0x65b   :  { %5683 = vmatpush1.bf16.msra.mxu0 %v9472_v39  ;;  %5715 = vmatpush1.bf16.msra.mxu1 %v9473_v42  ;;  %v9483_v39 = vld [vmem:[#allocation59_spill] sm:$0xff] }
 0x65c   :  { %5685 = vmatprep.subr.bf16.mxu0 %v9474_v27  ;;  %5717 = vmatprep.subr.bf16.mxu1 %v9475_v41 }
 0x65f   :  { %5687 = vmatpush1.bf16.msra.mxu0 %v9476_v32  ;;  %5719 = vmatpush1.bf16.msra.mxu1 %v9477_v40 }
 0x660   :  { %5689 = vmatprep.subr.bf16.mxu0 %v9478_v47  ;;  %5721 = vmatprep.subr.bf16.mxu1 %v9479_v15 }
 0x663   :  { %5691 = vmatpush1.bf16.msra.mxu0 %v9480_v48  ;;  %5723 = vmatpush1.bf16.msra.mxu1 %v9481_v36  ;;  %v9485_v36 = vld [vmem:[#allocation85_spill] sm:$0xff] }
 0x664   :  { %5725 = vmatprep.subr.bf16.mxu0 %v9482_v57  ;;  %5757 = vmatprep.subr.bf16.mxu1 %v9483_v39 }
 0x6f9   :  { %v2549_v42 = vpop.f32.mrb[18].mxu0  ;;  %v2620_v27 = vpop.f32.mrb[18].mxu1 }
 0x6fa   :  { %v2625_v41 = vadd.f32 %v2549_v42, %v9484_v24  ;;  %v2551_v63 = vpop.f32.mrb[19].mxu0  ;;  %v2622_v32 = vpop.f32.mrb[19].mxu1  ;;  %v2627_v48 = vadd.f32 %v2620_v27, %v9485_v36 }
 0x6fb   :  { %v2626_v40 = vadd.f32 %v2551_v63, %v9298_v58  ;;  %v2628_v15 = vadd.f32 %v2622_v32, %v7549_v28  ;;  %v9486_v63 = vld [vmem:[#allocation62_spill] sm:$0xff] }
 0x6fc   :  { %v2629_v60 = vmul.f32 0.5, %v2625_v41  ;;  %v2631_v57 = vmul.f32 0.5, %v2627_v48  ;;  %v4556_v48 = vld [vmem:[%s8946_s1 + $0xb8] sm:$0xff] }
 0x6fd   :  { %v2630_v47 = vmul.f32 0.5, %v2626_v40 }
 0x6fe   :  { %6423 = vtanh.f32 %v2629_v60 }
 0x6ff   :  { %6425 = vtanh.f32 %v2630_v47 }
 0x700   :  { %6427 = vtanh.f32 %v2628_v15 }
 0x701   :  { %6429 = vtanh.f32 %v2631_v57 }
 0x708   :  { %v6424_v23 = vpop.eup %6423 }
 0x709   :  { %v2635_v39 = vmul.f32 0.5, %v6424_v23  ;;  %v6426_v46 = vpop.eup %6425  ;;  %v4553_v23 = vld [vmem:[%s8946_s1 + $0xa0] sm:$0xff] }
 0x70a   :  { %v2636_v42 = vmul.f32 0.5, %v6426_v46  ;;  %v6428_v24 = vpop.eup %6427  ;;  %v4554_v46 = vld [vmem:[%s8946_s1 + $0xa8] sm:$0xff] }
 0x70b   :  { %v2638_v44 = vadd.f32 0.5, %v2635_v39  ;;  %v6430_v27 = vpop.eup %6429 }
 0x70c   :  { %v2639_v29 = vadd.f32 0.5, %v2636_v42  ;;  %v2637_v47 = vmul.f32 0.5, %v6430_v27  ;;  %v4555_v27 = vld [vmem:[%s8946_s1 + $0xb0] sm:$0xff] }
 0x70d   :  { %v2643_v34 = vmul.f32 %v6428_v24, %v2638_v44 }
 0x70e   :  { %v2642_v41 = vmul.f32 %v2639_v29, %v9486_v63  ;;  %v2640_v32 = vadd.f32 0.5, %v2637_v47 }
 0x710   :  { %v2644_v40 = vadd.f32 %v2643_v34, %v2642_v41 }
 0x712   :  { %6431 = vtanh.f32 %v2644_v40  ;;  %v8169_v60 = vsel %vm2169_vm4, %v2644_v40, %v9486_v63 }
 0x713   :  { %9487 = vst [vmem:[#allocation63_spill] sm:$0xff] %v8169_v60 }
 0x719   :  { %v2721_v44 = vpop.f32.mrb[20].mxu0  ;;  %v2792_v24 = vpop.f32.mrb[20].mxu1 }
 0x71a   :  { %v2797_v29 = vadd.f32 %v4553_v23, %v2721_v44  ;;  %v2723_v34 = vpop.f32.mrb[21].mxu0  ;;  %v2794_v57 = vpop.f32.mrb[21].mxu1  ;;  %v2799_v23 = vadd.f32 %v4555_v27, %v2792_v24 }
 0x71b   :  { %v2798_v15 = vadd.f32 %v4554_v46, %v2723_v34  ;;  %v2800_v41 = vadd.f32 %v4556_v48, %v2794_v57 }
 0x71c   :  { %v2801_v39 = vmul.f32 0.5, %v2797_v29  ;;  %v6432_v42 = vpop.eup %6431  ;;  %v2803_v46 = vmul.f32 0.5, %v2799_v23  ;;  %v9492_v23 = vld [vmem:[#allocation4_spill] sm:$0xff] }
 0x71d   :  { %v2802_v63 = vmul.f32 0.5, %v2798_v15  ;;  %v8180_v40 = vmul.f32 %v6432_v42, %v2640_v32 }
 0x71e   :  { %6433 = vtanh.f32 %v2801_v39 }
 0x71f   :  { %6435 = vtanh.f32 %v2802_v63 }
 0x720   :  { %6437 = vtanh.f32 %v2800_v41 }
 0x721   :  { %6439 = vtanh.f32 %v2803_v46  ;;  %v9493_v46 = vld [vmem:[#allocation8_spill] sm:$0xff] }
 0x728   :  { %v6434_v44 = vpop.eup %6433 }
 0x729   :  { %v2807_v34 = vmul.f32 0.5, %v6434_v44  ;;  %v6436_v60 = vpop.eup %6435  ;;  %v9494_v44 = vld [vmem:[#allocation7_spill] sm:$0xff] }
 0x72a   :  { %v2808_v47 = vmul.f32 0.5, %v6436_v60  ;;  %v6438_v29 = vpop.eup %6437  ;;  %v9490_v60 = vld [vmem:[#allocation3_spill] sm:$0xff] }
 0x72b   :  { %v2810_v36 = vadd.f32 0.5, %v2807_v34  ;;  %v6440_v32 = vpop.eup %6439  ;;  %v9495_v34 = vld [vmem:[#allocation10_spill] sm:$0xff] }
 0x72c   :  { %v2811_v15 = vadd.f32 0.5, %v2808_v47  ;;  %v2809_v42 = vmul.f32 0.5, %v6440_v32  ;;  %v9496_v47 = vld [vmem:[#allocation9_spill] sm:$0xff]  ;;  %v9502_v32 = vld [vmem:[#allocation15_spill] sm:$0xff] }
 0x72d   :  { %v2815_v39 = vmul.f32 %v6438_v29, %v2810_v36  ;;  %v9497_v29 = vld [vmem:[#allocation12_spill] sm:$0xff] }
 0x72e   :  { %v2814_v57 = vmul.f32 %v2811_v15, %v8040_v22  ;;  %v2812_v63 = vadd.f32 0.5, %v2809_v42  ;;  %v9498_v15 = vld [vmem:[#allocation11_spill] sm:$0xff]  ;;  %v9503_v42 = vld [vmem:[#allocation18_spill] sm:$0xff] }
 0x730   :  { %v2816_v48 = vadd.f32 %v2815_v39, %v2814_v57  ;;  %v9499_v39 = vld [vmem:[#allocation14_spill] sm:$0xff]  ;;  %v9500_v57 = vld [vmem:[#allocation13_spill] sm:$0xff] }
 0x732   :  { %6441 = vtanh.f32 %v2816_v48  ;;  %v8190_v24 = vsel %vm2649_vm5, %v2816_v48, %v8040_v22  ;;  %v8237_v22 = vsel %vm2169_vm4, %v8180_v40, %v8087_v25  ;;  %v9489_v25 = vld [vmem:[#allocation5_spill] sm:$0xff]  ;;  %v9491_v40 = vld [vmem:[#allocation6_spill] sm:$0xff]  ;;  %v9501_v48 = vld [vmem:[#allocation16_spill] sm:$0xff] }
 0x73c   :  { %v6442_v41 = vpop.eup %6441 }
 0x73d   :  { %v2818_v27 = vmul.f32 %v6442_v41, %v2812_v63  ;;  %v9504_v63 = vld [vmem:[#allocation17_spill] sm:$0xff]  ;;  %v9505_v41 = vld [vmem:[#allocation20_spill] sm:$0xff] }
 0x73f   :  { %v8195_v36 = vsel %vm2649_vm5, %v2818_v27, %v8045_v10  ;;  %v9488_v10 = vld [vmem:[#allocation2_spill] sm:$0xff]  ;;  %v9506_v27 = vld [vmem:[#allocation19_spill] sm:$0xff] }
 0x740   :  { %2886 = vmatmul.mubr.f32.vlgmr.msra.gmra.mrb[22].mxu0 %v8195_v36  ;;  %2957 = vmatmul.mubr.f32.vlgmr.msra.gmra.mrb[22].mxu1 %v8195_v36 }
 0x741   :  { %5727 = vmatpush1.bf16.msra.mxu0 %v9242_v49  ;;  %5759 = vmatpush1.bf16.msra.mxu1 %v9243_v33 }
 0x742   :  { %5729 = vmatprep.subr.bf16.mxu0 %v9244_v50  ;;  %5761 = vmatprep.subr.bf16.mxu1 %v9245_v21 }
 0x743   :  { %3027 = vmatprep.mubr.f32.mxu0 %v9200_v31  ;;  %3098 = vmatprep.mubr.f32.mxu1 %v9200_v31 }
 0x745   :  { %5731 = vmatpush1.bf16.msra.mxu0 %v9246_v0  ;;  %5763 = vmatpush1.bf16.msra.mxu1 %v9247_v43 }
 0x746   :  { %5733 = vmatprep.subr.bf16.mxu0 %v9302_v45  ;;  %5765 = vmatprep.subr.bf16.mxu1 %v9303_v61 }
 0x749   :  { %5735 = vmatpush1.bf16.msra.mxu0 %v9304_v12  ;;  %5767 = vmatpush1.bf16.msra.mxu1 %v9251_v3 }
 0x74a   :  { %5737 = vmatprep.subr.bf16.mxu0 %v9305_v51  ;;  %5769 = vmatprep.subr.bf16.mxu1 %v9253_v59 }
 0x74d   :  { %5739 = vmatpush1.bf16.msra.mxu0 %v9254_v14  ;;  %5771 = vmatpush1.bf16.msra.mxu1 %v9255_v6 }
 0x74e   :  { %5741 = vmatprep.subr.bf16.mxu0 %v9256_v37  ;;  %5773 = vmatprep.subr.bf16.mxu1 %v9257_v13 }
 0x751   :  { %5743 = vmatpush1.bf16.msra.mxu0 %v9258_v1  ;;  %5775 = vmatpush1.bf16.msra.mxu1 %v9259_v35 }
 0x752   :  { %5745 = vmatprep.subr.bf16.mxu0 %v9260_v53  ;;  %5777 = vmatprep.subr.bf16.mxu1 %v9261_v55 }
 0x755   :  { %5747 = vmatpush1.bf16.msra.mxu0 %v7384_v52  ;;  %5779 = vmatpush1.bf16.msra.mxu1 %v9262_v19 }
 0x756   :  { %5749 = vmatprep.subr.bf16.mxu0 %v7396_v20  ;;  %5781 = vmatprep.subr.bf16.mxu1 %v7398_v56 }
 0x759   :  { %5751 = vmatpush1.bf16.msra.mxu0 %v7420_v5  ;;  %5783 = vmatpush1.bf16.msra.mxu1 %v7422_v38 }
 0x75a   :  { %5753 = vmatprep.subr.bf16.mxu0 %v7429_v62  ;;  %5785 = vmatprep.subr.bf16.mxu1 %v7431_v54 }
 0x75d   :  { %5755 = vmatpush1.bf16.msra.mxu0 %v7444_v2  ;;  %5787 = vmatpush1.bf16.msra.mxu1 %v7446_v11 }
 0x75e   :  { %5789 = vmatprep.subr.bf16.mxu0 %v6562_v4  ;;  %5821 = vmatprep.subr.bf16.mxu1 %v6599_v17 }
 0x760   :  { %3028 = vmatmul.mubr.f32.vlgmr.msra.gmra.mrb[22].mxu0 %v8237_v22  ;;  %3099 = vmatmul.mubr.f32.vlgmr.msra.gmra.mrb[22].mxu1 %v8237_v22 }
 0x761   :  { %5791 = vmatpush1.bf16.msra.mxu0 %v6573_v8  ;;  %5823 = vmatpush1.bf16.msra.mxu1 %v6601_v18 }
 0x762   :  { %5793 = vmatprep.subr.bf16.mxu0 %v6575_v9  ;;  %5825 = vmatprep.subr.bf16.mxu1 %v6625_v26 }
 0x763   :  { %3199 = vmatprep.mubr.f32.mxu0 %v9200_v31  ;;  %3270 = vmatprep.mubr.f32.mxu1 %v9200_v31 }
 0x765   :  { %5795 = vmatpush1.bf16.msra.mxu0 %v6597_v16  ;;  %5827 = vmatpush1.bf16.msra.mxu1 %v6637_v30 }
 0x766   :  { %5797 = vmatprep.subr.bf16.mxu0 %v9488_v10  ;;  %5829 = vmatprep.subr.bf16.mxu1 %v9489_v25 }
 0x769   :  { %5799 = vmatpush1.bf16.msra.mxu0 %v9490_v60  ;;  %5831 = vmatpush1.bf16.msra.mxu1 %v9491_v40 }
 0x76a   :  { %5801 = vmatprep.subr.bf16.mxu0 %v9492_v23  ;;  %5833 = vmatprep.subr.bf16.mxu1 %v9493_v46 }
 0x76d   :  { %5803 = vmatpush1.bf16.msra.mxu0 %v9494_v44  ;;  %5835 = vmatpush1.bf16.msra.mxu1 %v9495_v34  ;;  %v9546_v34 = vld [vmem:[#allocation83_spill] sm:$0xff] }
 0x76e   :  { %5805 = vmatprep.subr.bf16.mxu0 %v9496_v47  ;;  %5837 = vmatprep.subr.bf16.mxu1 %v9497_v29  ;;  %v9507_v47 = vld [vmem:[#allocation22_spill] sm:$0xff]  ;;  %v9508_v29 = vld [vmem:[#allocation21_spill] sm:$0xff] }
 0x771   :  { %5807 = vmatpush1.bf16.msra.mxu0 %v9498_v15  ;;  %5839 = vmatpush1.bf16.msra.mxu1 %v9499_v39  ;;  %v9509_v15 = vld [vmem:[#allocation24_spill] sm:$0xff]  ;;  %v9510_v39 = vld [vmem:[#allocation23_spill] sm:$0xff] }
 0x772   :  { %5809 = vmatprep.subr.bf16.mxu0 %v9500_v57  ;;  %5841 = vmatprep.subr.bf16.mxu1 %v9501_v48  ;;  %v9511_v57 = vld [vmem:[#allocation25_spill] sm:$0xff]  ;;  %v9512_v48 = vld [vmem:[#allocation26_spill] sm:$0xff] }
 0x775   :  { %5811 = vmatpush1.bf16.msra.mxu0 %v9502_v32  ;;  %5843 = vmatpush1.bf16.msra.mxu1 %v9503_v42  ;;  %v9513_v32 = vld [vmem:[#allocation27_spill] sm:$0xff]  ;;  %v9528_v42 = vld [vmem:[#allocation42_spill] sm:$0xff] }
 0x776   :  { %5813 = vmatprep.subr.bf16.mxu0 %v9504_v63  ;;  %5845 = vmatprep.subr.bf16.mxu1 %v9505_v41  ;;  %v9514_v41 = vld [vmem:[#allocation28_spill] sm:$0xff]  ;;  %v9527_v63 = vld [vmem:[#allocation41_spill] sm:$0xff] }
 0x779   :  { %5815 = vmatpush1.bf16.msra.mxu0 %v9506_v27  ;;  %5847 = vmatpush1.bf16.msra.mxu1 %v9507_v47  ;;  %v9515_v27 = vld [vmem:[#allocation29_spill] sm:$0xff]  ;;  %v9516_v47 = vld [vmem:[#allocation30_spill] sm:$0xff] }
 0x77a   :  { %5817 = vmatprep.subr.bf16.mxu0 %v9508_v29  ;;  %5849 = vmatprep.subr.bf16.mxu1 %v9509_v15  ;;  %v9517_v29 = vld [vmem:[#allocation31_spill] sm:$0xff]  ;;  %v9522_v15 = vld [vmem:[#allocation36_spill] sm:$0xff] }
 0x77d   :  { %5819 = vmatpush1.bf16.msra.mxu0 %v9510_v39  ;;  %5851 = vmatpush1.bf16.msra.mxu1 %v9511_v57  ;;  %v9518_v57 = vld [vmem:[#allocation32_spill] sm:$0xff]  ;;  %v9521_v39 = vld [vmem:[#allocation35_spill] sm:$0xff] }
 0x77e   :  { %5853 = vmatprep.subr.bf16.mxu0 %v9512_v48  ;;  %5885 = vmatprep.subr.bf16.mxu1 %v9513_v32  ;;  %v9519_v48 = vld [vmem:[#allocation33_spill] sm:$0xff]  ;;  %v9520_v32 = vld [vmem:[#allocation34_spill] sm:$0xff] }
 0x780   :  { %3200 = vmatmul.mubr.f32.vlgmr.msra.gmra.mrb[24].mxu0 %v8195_v36  ;;  %3271 = vmatmul.mubr.f32.vlgmr.msra.gmra.mrb[24].mxu1 %v8195_v36 }
 0x781   :  { %5855 = vmatpush1.bf16.msra.mxu0 %v9514_v41  ;;  %5887 = vmatpush1.bf16.msra.mxu1 %v9515_v27  ;;  %v9523_v41 = vld [vmem:[#allocation37_spill] sm:$0xff]  ;;  %v9524_v27 = vld [vmem:[#allocation38_spill] sm:$0xff] }
 0x782   :  { %5857 = vmatprep.subr.bf16.mxu0 %v9516_v47  ;;  %5889 = vmatprep.subr.bf16.mxu1 %v9517_v29  ;;  %v9525_v47 = vld [vmem:[#allocation39_spill] sm:$0xff]  ;;  %v9526_v29 = vld [vmem:[#allocation40_spill] sm:$0xff] }
 0x783   :  { %3365 = vmatprep.mubr.f32.mxu0 %v9200_v31  ;;  %3436 = vmatprep.mubr.f32.mxu1 %v9200_v31 }
 0x785   :  { %5859 = vmatpush1.bf16.msra.mxu0 %v9518_v57  ;;  %5891 = vmatpush1.bf16.msra.mxu1 %v9519_v48  ;;  %v9529_v57 = vld [vmem:[#allocation43_spill] sm:$0xff]  ;;  %v9530_v48 = vld [vmem:[#allocation44_spill] sm:$0xff] }
 0x786   :  { %5861 = vmatprep.subr.bf16.mxu0 %v9520_v32  ;;  %5893 = vmatprep.subr.bf16.mxu1 %v9521_v39  ;;  %v9531_v32 = vld [vmem:[#allocation45_spill] sm:$0xff]  ;;  %v9532_v39 = vld [vmem:[#allocation46_spill] sm:$0xff] }
 0x789   :  { %5863 = vmatpush1.bf16.msra.mxu0 %v9522_v15  ;;  %5895 = vmatpush1.bf16.msra.mxu1 %v9523_v41  ;;  %v9533_v15 = vld [vmem:[#allocation47_spill] sm:$0xff]  ;;  %v9534_v41 = vld [vmem:[#allocation48_spill] sm:$0xff] }
 0x78a   :  { %5865 = vmatprep.subr.bf16.mxu0 %v9524_v27  ;;  %5897 = vmatprep.subr.bf16.mxu1 %v9525_v47  ;;  %v9535_v27 = vld [vmem:[#allocation49_spill] sm:$0xff]  ;;  %v9536_v47 = vld [vmem:[#allocation50_spill] sm:$0xff] }
 0x78d   :  { %5867 = vmatpush1.bf16.msra.mxu0 %v9526_v29  ;;  %5899 = vmatpush1.bf16.msra.mxu1 %v9527_v63  ;;  %v9537_v29 = vld [vmem:[#allocation51_spill] sm:$0xff]  ;;  %v9538_v63 = vld [vmem:[#allocation52_spill] sm:$0xff] }
 0x78e   :  { %5869 = vmatprep.subr.bf16.mxu0 %v9528_v42  ;;  %5901 = vmatprep.subr.bf16.mxu1 %v9529_v57  ;;  %v9539_v42 = vld [vmem:[#allocation53_spill] sm:$0xff]  ;;  %v9540_v57 = vld [vmem:[#allocation54_spill] sm:$0xff] }
 0x791   :  { %5871 = vmatpush1.bf16.msra.mxu0 %v9530_v48  ;;  %5903 = vmatpush1.bf16.msra.mxu1 %v9531_v32  ;;  %v9541_v48 = vld [vmem:[#allocation55_spill] sm:$0xff]  ;;  %v9542_v32 = vld [vmem:[#allocation56_spill] sm:$0xff] }
 0x792   :  { %5873 = vmatprep.subr.bf16.mxu0 %v9532_v39  ;;  %5905 = vmatprep.subr.bf16.mxu1 %v9533_v15  ;;  %v9543_v39 = vld [vmem:[#allocation57_spill] sm:$0xff]  ;;  %v9544_v15 = vld [vmem:[#allocation58_spill] sm:$0xff] }
 0x795   :  { %5875 = vmatpush1.bf16.msra.mxu0 %v9534_v41  ;;  %5907 = vmatpush1.bf16.msra.mxu1 %v9535_v27  ;;  %v9545_v41 = vld [vmem:[#allocation59_spill] sm:$0xff] }
 0x796   :  { %5877 = vmatprep.subr.bf16.mxu0 %v9536_v47  ;;  %5909 = vmatprep.subr.bf16.mxu1 %v9537_v29 }
 0x799   :  { %5879 = vmatpush1.bf16.msra.mxu0 %v9538_v63  ;;  %5911 = vmatpush1.bf16.msra.mxu1 %v9539_v42 }
 0x79a   :  { %5881 = vmatprep.subr.bf16.mxu0 %v9540_v57  ;;  %5913 = vmatprep.subr.bf16.mxu1 %v9541_v48 }
 0x79d   :  { %5883 = vmatpush1.bf16.msra.mxu0 %v9542_v32  ;;  %5915 = vmatpush1.bf16.msra.mxu1 %v9543_v39  ;;  %v9547_v39 = vld [vmem:[#allocation85_spill] sm:$0xff] }
 0x79e   :  { %5917 = vmatprep.subr.bf16.mxu0 %v9544_v15  ;;  %5949 = vmatprep.subr.bf16.mxu1 %v9545_v41 }
 0x833   :  { %v3029_v27 = vpop.f32.mrb[22].mxu0  ;;  %v3100_v47 = vpop.f32.mrb[22].mxu1 }
 0x834   :  { %v3105_v29 = vadd.f32 %v3029_v27, %v9546_v34  ;;  %v3031_v44 = vpop.f32.mrb[23].mxu0  ;;  %v3102_v63 = vpop.f32.mrb[23].mxu1  ;;  %v3107_v32 = vadd.f32 %v3100_v47, %v9547_v39 }
 0x835   :  { %v3106_v42 = vadd.f32 %v3031_v44, %v9298_v58  ;;  %v3108_v48 = vadd.f32 %v3102_v63, %v7549_v28  ;;  %v9548_v44 = vld [vmem:[#allocation63_spill] sm:$0xff] }
 0x836   :  { %v3109_v46 = vmul.f32 0.5, %v3105_v29  ;;  %v3111_v15 = vmul.f32 0.5, %v3107_v32  ;;  %v4560_v32 = vld [vmem:[%s8946_s1 + $0xd8] sm:$0xff] }
 0x837   :  { %v3110_v57 = vmul.f32 0.5, %v3106_v42 }
 0x838   :  { %6443 = vtanh.f32 %v3109_v46 }
 0x839   :  { %6445 = vtanh.f32 %v3110_v57 }
 0x83a   :  { %6447 = vtanh.f32 %v3108_v48 }
 0x83b   :  { %6449 = vtanh.f32 %v3111_v15 }
 0x842   :  { %v6444_v23 = vpop.eup %6443 }
 0x843   :  { %v3115_v41 = vmul.f32 0.5, %v6444_v23  ;;  %v6446_v40 = vpop.eup %6445  ;;  %v4557_v23 = vld [vmem:[%s8946_s1 + $0xc0] sm:$0xff] }
 0x844   :  { %v3116_v27 = vmul.f32 0.5, %v6446_v40  ;;  %v6448_v34 = vpop.eup %6447  ;;  %v4558_v40 = vld [vmem:[%s8946_s1 + $0xc8] sm:$0xff] }
 0x845   :  { %v3118_v60 = vadd.f32 0.5, %v3115_v41  ;;  %v6450_v47 = vpop.eup %6449 }
 0x846   :  { %v3119_v25 = vadd.f32 0.5, %v3116_v27  ;;  %v3117_v57 = vmul.f32 0.5, %v6450_v47  ;;  %v4559_v47 = vld [vmem:[%s8946_s1 + $0xd0] sm:$0xff] }
 0x847   :  { %v3123_v10 = vmul.f32 %v6448_v34, %v3118_v60 }
 0x848   :  { %v3122_v29 = vmul.f32 %v3119_v25, %v9548_v44  ;;  %v3120_v63 = vadd.f32 0.5, %v3117_v57 }
 0x84a   :  { %v3124_v42 = vadd.f32 %v3123_v10, %v3122_v29 }
 0x84c   :  { %6451 = vtanh.f32 %v3124_v42  ;;  %v8319_v46 = vsel %vm2649_vm5, %v3124_v42, %v9548_v44 }
 0x84d   :  { %9549 = vst [vmem:[#allocation64_spill] sm:$0xff] %v8319_v46 }
 0x853   :  { %v3201_v60 = vpop.f32.mrb[24].mxu0  ;;  %v3272_v34 = vpop.f32.mrb[24].mxu1 }
 0x854   :  { %v3277_v25 = vadd.f32 %v4557_v23, %v3201_v60  ;;  %v3203_v10 = vpop.f32.mrb[25].mxu0  ;;  %v3274_v15 = vpop.f32.mrb[25].mxu1  ;;  %v3279_v23 = vadd.f32 %v4559_v47, %v3272_v34 }
 0x855   :  { %v3278_v48 = vadd.f32 %v4558_v40, %v3203_v10  ;;  %v3280_v29 = vadd.f32 %v4560_v32, %v3274_v15  ;;  %v8339_v32 = vld [vmem:[%s8947_s0] sm:$0xff] }
 0x856   :  { %v3281_v41 = vmul.f32 0.5, %v3277_v25  ;;  %v6452_v27 = vpop.eup %6451  ;;  %v3283_v40 = vmul.f32 0.5, %v3279_v23  ;;  %vm3129_vm6 = vcmp.gt.s32.totalorder %v8339_v32, 6  ;;  %v9562_v23 = vld [vmem:[#allocation13_spill] sm:$0xff]  ;;  %vm3609_vm7 = vcmp.gt.s32.totalorder %v8339_v32, 7  ;;  %v4319_v32 = vld [vmem:[%s8950_s8 + $0x20] sm:$0xff] }
 0x857   :  { %v3282_v44 = vmul.f32 0.5, %v3278_v48  ;;  %v8330_v42 = vmul.f32 %v6452_v27, %v3120_v63 }
 0x858   :  { %6453 = vtanh.f32 %v3281_v41 }
 0x859   :  { %6455 = vtanh.f32 %v3282_v44 }
 0x85a   :  { %6457 = vtanh.f32 %v3280_v29 }
 0x85b   :  { %6459 = vtanh.f32 %v3283_v40  ;;  %v9563_v40 = vld [vmem:[#allocation16_spill] sm:$0xff] }
 0x862   :  { %v6454_v60 = vpop.eup %6453 }
 0x863   :  { %v3287_v10 = vmul.f32 0.5, %v6454_v60  ;;  %v6456_v46 = vpop.eup %6455  ;;  %v9564_v60 = vld [vmem:[#allocation15_spill] sm:$0xff] }
 0x864   :  { %v3288_v57 = vmul.f32 0.5, %v6456_v46  ;;  %v6458_v25 = vpop.eup %6457 }
 0x865   :  { %v3290_v39 = vadd.f32 0.5, %v3287_v10  ;;  %v6460_v46 = vpop.eup %6459  ;;  %v9565_v10 = vld [vmem:[#allocation18_spill] sm:$0xff] }
 0x866   :  { %v3291_v48 = vadd.f32 0.5, %v3288_v57  ;;  %v3289_v27 = vmul.f32 0.5, %v6460_v46  ;;  %v9566_v57 = vld [vmem:[#allocation17_spill] sm:$0xff]  ;;  %v9572_v46 = vld [vmem:[#allocation23_spill] sm:$0xff] }
 0x867   :  { %v3295_v41 = vmul.f32 %v6458_v25, %v3290_v39  ;;  %v9567_v25 = vld [vmem:[#allocation20_spill] sm:$0xff] }
 0x868   :  { %v3294_v15 = vmul.f32 %v3291_v48, %v8190_v24  ;;  %v3292_v44 = vadd.f32 0.5, %v3289_v27  ;;  %v9568_v48 = vld [vmem:[#allocation19_spill] sm:$0xff]  ;;  %v9573_v27 = vld [vmem:[#allocation25_spill] sm:$0xff] }
 0x86a   :  { %v3296_v34 = vadd.f32 %v3295_v41, %v3294_v15  ;;  %v9569_v41 = vld [vmem:[#allocation22_spill] sm:$0xff]  ;;  %v9570_v15 = vld [vmem:[#allocation21_spill] sm:$0xff] }
 0x86c   :  { %6461 = vtanh.f32 %v3296_v34  ;;  %v8345_v63 = vsel %vm3129_vm6, %v3296_v34, %v8190_v24  ;;  %v8392_v24 = vsel %vm2649_vm5, %v8330_v42, %v8237_v22  ;;  %v9558_v22 = vld [vmem:[#allocation9_spill] sm:$0xff]  ;;  %v9561_v42 = vld [vmem:[#allocation14_spill] sm:$0xff]  ;;  %v9571_v34 = vld [vmem:[#allocation24_spill] sm:$0xff] }
 0x876   :  { %v6462_v39 = vpop.eup %6461 }
 0x877   :  { %v3298_v29 = vmul.f32 %v6462_v39, %v3292_v44  ;;  %v9574_v44 = vld [vmem:[#allocation26_spill] sm:$0xff]  ;;  %v9575_v39 = vld [vmem:[#allocation27_spill] sm:$0xff] }
 0x879   :  { %v8350_v47 = vsel %vm3129_vm6, %v3298_v29, %v8195_v36  ;;  %v9557_v36 = vld [vmem:[#allocation10_spill] sm:$0xff]  ;;  %v9576_v29 = vld [vmem:[#allocation28_spill] sm:$0xff] }
 0x87a   :  { %3366 = vmatmul.mubr.f32.vlgmr.msra.gmra.mrb[26].mxu0 %v8350_v47  ;;  %3437 = vmatmul.mubr.f32.vlgmr.msra.gmra.mrb[26].mxu1 %v8350_v47 }
 0x87b   :  { %5919 = vmatpush1.bf16.msra.mxu0 %v9242_v49  ;;  %5951 = vmatpush1.bf16.msra.mxu1 %v9243_v33 }
 0x87c   :  { %5921 = vmatprep.subr.bf16.mxu0 %v9244_v50  ;;  %5953 = vmatprep.subr.bf16.mxu1 %v9245_v21 }
 0x87d   :  { %3507 = vmatprep.mubr.f32.mxu0 %v9200_v31  ;;  %3578 = vmatprep.mubr.f32.mxu1 %v9200_v31 }
 0x87f   :  { %5923 = vmatpush1.bf16.msra.mxu0 %v9246_v0  ;;  %5955 = vmatpush1.bf16.msra.mxu1 %v9247_v43 }
 0x880   :  { %5925 = vmatprep.subr.bf16.mxu0 %v9302_v45  ;;  %5957 = vmatprep.subr.bf16.mxu1 %v9303_v61 }
 0x883   :  { %5927 = vmatpush1.bf16.msra.mxu0 %v9304_v12  ;;  %5959 = vmatpush1.bf16.msra.mxu1 %v9251_v3 }
 0x884   :  { %5929 = vmatprep.subr.bf16.mxu0 %v9305_v51  ;;  %5961 = vmatprep.subr.bf16.mxu1 %v9253_v59 }
 0x887   :  { %5931 = vmatpush1.bf16.msra.mxu0 %v9254_v14  ;;  %5963 = vmatpush1.bf16.msra.mxu1 %v9255_v6 }
 0x888   :  { %5933 = vmatprep.subr.bf16.mxu0 %v9256_v37  ;;  %5965 = vmatprep.subr.bf16.mxu1 %v9257_v13 }
 0x88b   :  { %5935 = vmatpush1.bf16.msra.mxu0 %v9258_v1  ;;  %5967 = vmatpush1.bf16.msra.mxu1 %v9259_v35 }
 0x88c   :  { %5937 = vmatprep.subr.bf16.mxu0 %v9260_v53  ;;  %5969 = vmatprep.subr.bf16.mxu1 %v9261_v55 }
 0x88f   :  { %5939 = vmatpush1.bf16.msra.mxu0 %v7384_v52  ;;  %5971 = vmatpush1.bf16.msra.mxu1 %v9262_v19 }
 0x890   :  { %5941 = vmatprep.subr.bf16.mxu0 %v7396_v20  ;;  %5973 = vmatprep.subr.bf16.mxu1 %v7398_v56 }
 0x893   :  { %5943 = vmatpush1.bf16.msra.mxu0 %v7420_v5  ;;  %5975 = vmatpush1.bf16.msra.mxu1 %v7422_v38 }
 0x894   :  { %5945 = vmatprep.subr.bf16.mxu0 %v7429_v62  ;;  %5977 = vmatprep.subr.bf16.mxu1 %v7431_v54 }
 0x897   :  { %5947 = vmatpush1.bf16.msra.mxu0 %v7444_v2  ;;  %5979 = vmatpush1.bf16.msra.mxu1 %v7446_v11 }
 0x898   :  { %5981 = vmatprep.subr.bf16.mxu0 %v6562_v4  ;;  %6013 = vmatprep.subr.bf16.mxu1 %v6599_v17  ;;  %v9550_v4 = vld [vmem:[#allocation2_spill] sm:$0xff]  ;;  %v9551_v17 = vld [vmem:[#allocation5_spill] sm:$0xff] }
 0x89a   :  { %3508 = vmatmul.mubr.f32.vlgmr.msra.gmra.mrb[26].mxu0 %v8392_v24  ;;  %3579 = vmatmul.mubr.f32.vlgmr.msra.gmra.mrb[26].mxu1 %v8392_v24 }
 0x89b   :  { %5983 = vmatpush1.bf16.msra.mxu0 %v6573_v8  ;;  %6015 = vmatpush1.bf16.msra.mxu1 %v6601_v18  ;;  %v9553_v8 = vld [vmem:[#allocation6_spill] sm:$0xff]  ;;  %v9554_v18 = vld [vmem:[#allocation4_spill] sm:$0xff] }
 0x89c   :  { %5985 = vmatprep.subr.bf16.mxu0 %v6575_v9  ;;  %6017 = vmatprep.subr.bf16.mxu1 %v6625_v26  ;;  %v9555_v9 = vld [vmem:[#allocation8_spill] sm:$0xff]  ;;  %v9556_v26 = vld [vmem:[#allocation7_spill] sm:$0xff] }
 0x89d   :  { %3679 = vmatprep.mubr.f32.mxu0 %v9200_v31  ;;  %3750 = vmatprep.mubr.f32.mxu1 %v9200_v31 }
 0x89f   :  { %5987 = vmatpush1.bf16.msra.mxu0 %v6597_v16  ;;  %6019 = vmatpush1.bf16.msra.mxu1 %v6637_v30  ;;  %v9559_v16 = vld [vmem:[#allocation12_spill] sm:$0xff]  ;;  %v9560_v30 = vld [vmem:[#allocation11_spill] sm:$0xff] }
 0x8a0   :  { %5989 = vmatprep.subr.bf16.mxu0 %v9550_v4  ;;  %6021 = vmatprep.subr.bf16.mxu1 %v9551_v17  ;;  %v9577_v4 = vld [vmem:[#allocation29_spill] sm:$0xff]  ;;  %v9578_v17 = vld [vmem:[#allocation30_spill] sm:$0xff] }
 0x8a3   :  { %5991 = vmatpush1.bf16.msra.mxu0 %v9552_v7  ;;  %6023 = vmatpush1.bf16.msra.mxu1 %v9553_v8  ;;  %v9579_v7 = vld [vmem:[#allocation31_spill] sm:$0xff]  ;;  %v9580_v8 = vld [vmem:[#allocation32_spill] sm:$0xff] }
 0x8a4   :  { %5993 = vmatprep.subr.bf16.mxu0 %v9554_v18  ;;  %6025 = vmatprep.subr.bf16.mxu1 %v9555_v9  ;;  %v9581_v18 = vld [vmem:[#allocation33_spill] sm:$0xff]  ;;  %v9582_v9 = vld [vmem:[#allocation34_spill] sm:$0xff] }
 0x8a7   :  { %5995 = vmatpush1.bf16.msra.mxu0 %v9556_v26  ;;  %6027 = vmatpush1.bf16.msra.mxu1 %v9557_v36  ;;  %v9583_v26 = vld [vmem:[#allocation35_spill] sm:$0xff]  ;;  %v9584_v36 = vld [vmem:[#allocation36_spill] sm:$0xff] }
 0x8a8   :  { %5997 = vmatprep.subr.bf16.mxu0 %v9558_v22  ;;  %6029 = vmatprep.subr.bf16.mxu1 %v9559_v16  ;;  %v9585_v22 = vld [vmem:[#allocation37_spill] sm:$0xff]  ;;  %v9586_v16 = vld [vmem:[#allocation38_spill] sm:$0xff] }
 0x8ab   :  { %5999 = vmatpush1.bf16.msra.mxu0 %v9560_v30  ;;  %6031 = vmatpush1.bf16.msra.mxu1 %v9561_v42  ;;  %v9587_v30 = vld [vmem:[#allocation39_spill] sm:$0xff]  ;;  %v9588_v42 = vld [vmem:[#allocation40_spill] sm:$0xff] }
 0x8ac   :  { %6001 = vmatprep.subr.bf16.mxu0 %v9562_v23  ;;  %6033 = vmatprep.subr.bf16.mxu1 %v9563_v40  ;;  %v9589_v23 = vld [vmem:[#allocation41_spill] sm:$0xff]  ;;  %v9590_v40 = vld [vmem:[#allocation42_spill] sm:$0xff] }
 0x8af   :  { %6003 = vmatpush1.bf16.msra.mxu0 %v9564_v60  ;;  %6035 = vmatpush1.bf16.msra.mxu1 %v9565_v10  ;;  %v9591_v60 = vld [vmem:[#allocation43_spill] sm:$0xff]  ;;  %v9592_v10 = vld [vmem:[#allocation44_spill] sm:$0xff] }
 0x8b0   :  { %6005 = vmatprep.subr.bf16.mxu0 %v9566_v57  ;;  %6037 = vmatprep.subr.bf16.mxu1 %v9567_v25  ;;  %v9593_v57 = vld [vmem:[#allocation45_spill] sm:$0xff]  ;;  %v9594_v25 = vld [vmem:[#allocation46_spill] sm:$0xff] }
 0x8b3   :  { %6007 = vmatpush1.bf16.msra.mxu0 %v9568_v48  ;;  %6039 = vmatpush1.bf16.msra.mxu1 %v9569_v41  ;;  %v9595_v48 = vld [vmem:[#allocation47_spill] sm:$0xff]  ;;  %v9596_v41 = vld [vmem:[#allocation48_spill] sm:$0xff] }
 0x8b4   :  { %6009 = vmatprep.subr.bf16.mxu0 %v9570_v15  ;;  %6041 = vmatprep.subr.bf16.mxu1 %v9571_v34  ;;  %v9597_v15 = vld [vmem:[#allocation49_spill] sm:$0xff]  ;;  %v9598_v34 = vld [vmem:[#allocation50_spill] sm:$0xff] }
 0x8b7   :  { %6011 = vmatpush1.bf16.msra.mxu0 %v9572_v46  ;;  %6043 = vmatpush1.bf16.msra.mxu1 %v9573_v27  ;;  %v9599_v46 = vld [vmem:[#allocation51_spill] sm:$0xff]  ;;  %v9600_v27 = vld [vmem:[#allocation52_spill] sm:$0xff] }
 0x8b8   :  { %6045 = vmatprep.subr.bf16.mxu0 %v9574_v44  ;;  %6077 = vmatprep.subr.bf16.mxu1 %v9575_v39  ;;  %v9601_v44 = vld [vmem:[#allocation53_spill] sm:$0xff]  ;;  %v9602_v39 = vld [vmem:[#allocation54_spill] sm:$0xff] }
 0x8ba   :  { %3680 = vmatmul.mubr.f32.vlgmr.msra.gmra.mrb[28].mxu0 %v8350_v47  ;;  %3751 = vmatmul.mubr.f32.vlgmr.msra.gmra.mrb[28].mxu1 %v8350_v47 }
 0x8bb   :  { %6047 = vmatpush1.bf16.msra.mxu0 %v9576_v29  ;;  %6079 = vmatpush1.bf16.msra.mxu1 %v9577_v4  ;;  %v9603_v29 = vld [vmem:[#allocation55_spill] sm:$0xff]  ;;  %v9604_v4 = vld [vmem:[#allocation56_spill] sm:$0xff] }
 0x8bc   :  { %6049 = vmatprep.subr.bf16.mxu0 %v9578_v17  ;;  %6081 = vmatprep.subr.bf16.mxu1 %v9579_v7  ;;  %v9605_v17 = vld [vmem:[#allocation57_spill] sm:$0xff]  ;;  %v9606_v7 = vld [vmem:[#allocation58_spill] sm:$0xff] }
 0x8bd   :  { %3844 = vmatprep.mubr.f32.mxu0 %v9200_v31  ;;  %3915 = vmatprep.mubr.f32.mxu1 %v9200_v31 }
 0x8bf   :  { %6051 = vmatpush1.bf16.msra.mxu0 %v9580_v8  ;;  %6083 = vmatpush1.bf16.msra.mxu1 %v9581_v18  ;;  %v9607_v8 = vld [vmem:[#allocation59_spill] sm:$0xff] }
 0x8c0   :  { %6053 = vmatprep.subr.bf16.mxu0 %v9582_v9  ;;  %6085 = vmatprep.subr.bf16.mxu1 %v9583_v26  ;;  %v9608_v26 = vld [vmem:[#allocation83_spill] sm:$0xff] }
 0x8c3   :  { %6055 = vmatpush1.bf16.msra.mxu0 %v9584_v36  ;;  %6087 = vmatpush1.bf16.msra.mxu1 %v9585_v22 }
 0x8c4   :  { %6057 = vmatprep.subr.bf16.mxu0 %v9586_v16  ;;  %6089 = vmatprep.subr.bf16.mxu1 %v9587_v30 }
 0x8c7   :  { %6059 = vmatpush1.bf16.msra.mxu0 %v9588_v42  ;;  %6091 = vmatpush1.bf16.msra.mxu1 %v9589_v23 }
 0x8c8   :  { %6061 = vmatprep.subr.bf16.mxu0 %v9590_v40  ;;  %6093 = vmatprep.subr.bf16.mxu1 %v9591_v60  ;;  %v9609_v60 = vld [vmem:[#allocation85_spill] sm:$0xff] }
 0x8cb   :  { %6063 = vmatpush1.bf16.msra.mxu0 %v9592_v10  ;;  %6095 = vmatpush1.bf16.msra.mxu1 %v9593_v57 }
 0x8cc   :  { %6065 = vmatprep.subr.bf16.mxu0 %v9594_v25  ;;  %6097 = vmatprep.subr.bf16.mxu1 %v9595_v48 }
 0x8cf   :  { %6067 = vmatpush1.bf16.msra.mxu0 %v9596_v41  ;;  %6099 = vmatpush1.bf16.msra.mxu1 %v9597_v15 }
 0x8d0   :  { %6069 = vmatprep.subr.bf16.mxu0 %v9598_v34  ;;  %6101 = vmatprep.subr.bf16.mxu1 %v9599_v46 }
 0x8d3   :  { %6071 = vmatpush1.bf16.msra.mxu0 %v9600_v27  ;;  %6103 = vmatpush1.bf16.msra.mxu1 %v9601_v44 }
 0x8d4   :  { %6073 = vmatprep.subr.bf16.mxu0 %v9602_v39  ;;  %6105 = vmatprep.subr.bf16.mxu1 %v9603_v29  ;;  %v9610_v39 = vld [vmem:[#allocation64_spill] sm:$0xff] }
 0x8d7   :  { %6075 = vmatpush1.bf16.msra.mxu0 %v9604_v4  ;;  %6107 = vmatpush1.bf16.msra.mxu1 %v9605_v17 }
 0x8d8   :  { %6109 = vmatprep.subr.bf16.mxu0 %v9606_v7  ;;  %6141 = vmatprep.subr.bf16.mxu1 %v9607_v8  ;;  %v4561_v8 = vld [vmem:[%s8946_s1 + $0xe0] sm:$0xff] }
 0x96d   :  { %v3509_v18 = vpop.f32.mrb[26].mxu0  ;;  %v3580_v9 = vpop.f32.mrb[26].mxu1 }
 0x96e   :  { %v3585_v36 = vadd.f32 %v3509_v18, %v9608_v26  ;;  %v3511_v22 = vpop.f32.mrb[27].mxu0  ;;  %v3582_v16 = vpop.f32.mrb[27].mxu1  ;;  %v3587_v10 = vadd.f32 %v3580_v9, %v9609_v60  ;;  %v4562_v9 = vld [vmem:[%s8946_s1 + $0xe8] sm:$0xff] }
 0x96f   :  { %v3586_v30 = vadd.f32 %v3511_v22, %v9298_v58  ;;  %v3588_v40 = vadd.f32 %v3582_v16, %v7549_v28 }
 0x970   :  { %v3589_v42 = vmul.f32 0.5, %v3585_v36  ;;  %v3591_v57 = vmul.f32 0.5, %v3587_v10 }
 0x971   :  { %v3590_v23 = vmul.f32 0.5, %v3586_v30 }
 0x972   :  { %6463 = vtanh.f32 %v3589_v42 }
 0x973   :  { %6465 = vtanh.f32 %v3590_v23 }
 0x974   :  { %6467 = vtanh.f32 %v3588_v40  ;;  %v4564_v40 = vld [vmem:[%s8946_s1 + $0xf8] sm:$0xff] }
 0x975   :  { %6469 = vtanh.f32 %v3591_v57 }
 0x97c   :  { %v6464_v25 = vpop.eup %6463 }
 0x97d   :  { %v3595_v48 = vmul.f32 0.5, %v6464_v25  ;;  %v6466_v41 = vpop.eup %6465 }
 0x97e   :  { %v3596_v34 = vmul.f32 0.5, %v6466_v41  ;;  %v6468_v46 = vpop.eup %6467 }
 0x97f   :  { %v3598_v15 = vadd.f32 0.5, %v3595_v48  ;;  %v6470_v7 = vpop.eup %6469 }
 0x980   :  { %v3599_v27 = vadd.f32 0.5, %v3596_v34  ;;  %v3597_v18 = vmul.f32 0.5, %v6470_v7  ;;  %v4563_v34 = vld [vmem:[%s8946_s1 + $0xf0] sm:$0xff] }
 0x981   :  { %v3603_v44 = vmul.f32 %v6468_v46, %v3598_v15 }
 0x982   :  { %v3602_v29 = vmul.f32 %v3599_v27, %v9610_v39  ;;  %v3600_v10 = vadd.f32 0.5, %v3597_v18 }
 0x984   :  { %v3604_v4 = vadd.f32 %v3603_v44, %v3602_v29 }
 0x986   :  { %6471 = vtanh.f32 %v3604_v4  ;;  %v8474_v17 = vsel %vm3129_vm6, %v3604_v4, %v9610_v39 }
 0x98d   :  { %v3681_v36 = vpop.f32.mrb[28].mxu0  ;;  %v3752_v22 = vpop.f32.mrb[28].mxu1 }
 0x98e   :  { %v3757_v16 = vadd.f32 %v4561_v8, %v3681_v36  ;;  %v3683_v30 = vpop.f32.mrb[29].mxu0  ;;  %v3754_v42 = vpop.f32.mrb[29].mxu1  ;;  %v3759_v46 = vadd.f32 %v4563_v34, %v3752_v22  ;;  %v4114_v34 = vld [vmem:[%s8949_s6 + $0xd8] sm:$0xff] }
 0x98f   :  { %v3758_v23 = vadd.f32 %v4562_v9, %v3683_v30  ;;  %v3760_v41 = vadd.f32 %v4564_v40, %v3754_v42 }
 0x990   :  { %v3761_v57 = vmul.f32 0.5, %v3757_v16  ;;  %v6472_v25 = vpop.eup %6471  ;;  %v3763_v27 = vmul.f32 0.5, %v3759_v46 }
 0x991   :  { %v3762_v48 = vmul.f32 0.5, %v3758_v23  ;;  %v3606_v15 = vmul.f32 %v6472_v25, %v3600_v10  ;;  %v4109_v25 = vld [vmem:[%s8949_s6 + $0xb0] sm:$0xff] }
 0x992   :  { %6473 = vtanh.f32 %v3761_v57  ;;  %v4105_v57 = vld [vmem:[%s8949_s6 + $0x90] sm:$0xff] }
 0x993   :  { %6475 = vtanh.f32 %v3762_v48  ;;  %v6214_v48 = vpack.c.bf16 %v4109_v25, %v4105_v57  ;;  %v4147_v25 = vld [vmem:[%s8949_s6 + $0x1e0] sm:$0xff] }
 0x994   :  { %6477 = vtanh.f32 %v3760_v41  ;;  %v4112_v41 = vld [vmem:[%s8949_s6 + $0xc8] sm:$0xff] }
 0x995   :  { %6479 = vtanh.f32 %v3763_v27  ;;  %v4118_v27 = vld [vmem:[%s8949_s6 + $0xf8] sm:$0xff] }
 0x99c   :  { %v6474_v44 = vpop.eup %6473 }
 0x99d   :  { %v3767_v39 = vmul.f32 0.5, %v6474_v44  ;;  %v6476_v29 = vpop.eup %6475  ;;  %v4111_v44 = vld [vmem:[%s8949_s6 + $0xc0] sm:$0xff] }
 0x99e   :  { %v3768_v7 = vmul.f32 0.5, %v6476_v29  ;;  %v6478_v8 = vpop.eup %6477  ;;  %v6216_v29 = vpack.c.bf16 %v4118_v27, %v4114_v34  ;;  %v4332_v27 = vld [vmem:[%s8950_s8 + $0x88] sm:$0xff] }
 0x99f   :  { %v3770_v4 = vadd.f32 0.5, %v3767_v39  ;;  %v6480_v30 = vpop.eup %6479  ;;  %v4115_v39 = vld [vmem:[%s8949_s6 + $0xe0] sm:$0xff] }
 0x9a0   :  { %v3771_v18 = vadd.f32 0.5, %v3768_v7  ;;  %v3769_v42 = vmul.f32 0.5, %v6480_v30  ;;  %v4113_v7 = vld [vmem:[%s8949_s6 + $0xd0] sm:$0xff] }
 0x9a1   :  { %v3775_v9 = vmul.f32 %v6478_v8, %v3770_v4  ;;  %v6186_v4 = vpack.c.bf16 %v4115_v39, %v4111_v44  ;;  %v4117_v8 = vld [vmem:[%s8949_s6 + $0xf0] sm:$0xff]  ;;  %v4363_v44 = vld [vmem:[%s8950_s8 + $0x180] sm:$0xff] }
 0x9a2   :  { %v3774_v36 = vmul.f32 %v3771_v18, %v8345_v63  ;;  %v3772_v23 = vadd.f32 0.5, %v3769_v42  ;;  %v4107_v63 = vld [vmem:[%s8949_s6 + $0xa0] sm:$0xff]  ;;  %v6218_v18 = vpack.c.bf16 %v4117_v8, %v4113_v7  ;;  %v4126_v42 = vld [vmem:[%s8949_s6 + $0x138] sm:$0xff] }
 0x9a4   :  { %v3776_v16 = vadd.f32 %v3775_v9, %v3774_v36  ;;  %v4120_v9 = vld [vmem:[%s8949_s6 + $0x108] sm:$0xff] }
 0x9a5   :  { %v4124_v36 = vld [vmem:[%s8949_s6 + $0x128] sm:$0xff] }
 0x9a6   :  { %6481 = vtanh.f32 %v3776_v16  ;;  %v4122_v16 = vld [vmem:[%s8949_s6 + $0x118] sm:$0xff]  ;;  %v6188_v30 = vpack.c.bf16 %v4124_v36, %v4120_v9 }
 0x9b0   :  { %v6482_v40 = vpop.eup %6481 }
 0x9b1   :  { %v3778_v22 = vmul.f32 %v6482_v40, %v3772_v23  ;;  %v4119_v23 = vld [vmem:[%s8949_s6 + $0x100] sm:$0xff] }
 0x9b2   :  { %v4123_v40 = vld [vmem:[%s8949_s6 + $0x120] sm:$0xff] }
 0x9b3   :  { %v3779_v10 = vsel %vm3609_vm7, %v3778_v22, %v8350_v47  ;;  %v6220_v22 = vpack.c.bf16 %v4126_v42, %v4122_v16 }
 0x9b4   :  { %3845 = vmatmul.mubr.f32.vlgmr.msra.gmra.mrb[30].mxu0 %v3779_v10  ;;  %3916 = vmatmul.mubr.f32.vlgmr.msra.gmra.mrb[30].mxu1 %v3779_v10  ;;  %v6190_v10 = vpack.c.bf16 %v4123_v40, %v4119_v23 }
 0x9b5   :  { %6111 = vmatpush1.bf16.msra.mxu0 %v9242_v49  ;;  %6143 = vmatpush1.bf16.msra.mxu1 %v9243_v33  ;;  %v4089_v49 = vld [vmem:[%s8949_s6 + $0x10] sm:$0xff] }
 0x9b6   :  { %6113 = vmatprep.subr.bf16.mxu0 %v9244_v50  ;;  %6145 = vmatprep.subr.bf16.mxu1 %v9245_v21  ;;  %v4093_v33 = vld [vmem:[%s8949_s6 + $0x30] sm:$0xff]  ;;  %v4096_v21 = vld [vmem:[%s8949_s6 + $0x48] sm:$0xff] }
 0x9b7   :  { %3986 = vmatprep.mubr.f32.mxu0 %v9200_v31  ;;  %4057 = vmatprep.mubr.f32.mxu1 %v9200_v31  ;;  %v6206_v50 = vpack.c.bf16 %v4093_v33, %v4089_v49  ;;  %v4131_v49 = vld [vmem:[%s8949_s6 + $0x160] sm:$0xff] }
 0x9b9   :  { %6115 = vmatpush1.bf16.msra.mxu0 %v9246_v0  ;;  %6147 = vmatpush1.bf16.msra.mxu1 %v9247_v43  ;;  %v4100_v0 = vld [vmem:[%s8949_s6 + $0x68] sm:$0xff]  ;;  %v4098_v43 = vld [vmem:[%s8949_s6 + $0x58] sm:$0xff] }
 0x9ba   :  { %6117 = vmatprep.subr.bf16.mxu0 %v9302_v45  ;;  %6149 = vmatprep.subr.bf16.mxu1 %v9303_v61  ;;  %v4106_v45 = vld [vmem:[%s8949_s6 + $0x98] sm:$0xff] }
 0x9bd   :  { %6119 = vmatpush1.bf16.msra.mxu0 %v9304_v12  ;;  %6151 = vmatpush1.bf16.msra.mxu1 %v9251_v3  ;;  %v4099_v3 = vld [vmem:[%s8949_s6 + $0x60] sm:$0xff]  ;;  %v4110_v12 = vld [vmem:[%s8949_s6 + $0xb8] sm:$0xff] }
 0x9be   :  { %6121 = vmatprep.subr.bf16.mxu0 %v9305_v51  ;;  %6153 = vmatprep.subr.bf16.mxu1 %v9253_v59  ;;  %v4103_v51 = vld [vmem:[%s8949_s6 + $0x80] sm:$0xff]  ;;  %v6212_v47 = vpack.c.bf16 %v4110_v12, %v4106_v45  ;;  %v4144_v45 = vld [vmem:[%s8949_s6 + $0x1c8] sm:$0xff] }
 0x9c1   :  { %6123 = vmatpush1.bf16.msra.mxu0 %v9254_v14  ;;  %6155 = vmatpush1.bf16.msra.mxu1 %v9255_v6  ;;  %v4097_v14 = vld [vmem:[%s8949_s6 + $0x50] sm:$0xff] }
 0x9c2   :  { %6125 = vmatprep.subr.bf16.mxu0 %v9256_v37  ;;  %6157 = vmatprep.subr.bf16.mxu1 %v9257_v13  ;;  %v4101_v6 = vld [vmem:[%s8949_s6 + $0x70] sm:$0xff]  ;;  %v4104_v13 = vld [vmem:[%s8949_s6 + $0x88] sm:$0xff] }
 0x9c3   :  { %v6210_v37 = vpack.c.bf16 %v4101_v6, %v4097_v14  ;;  %v4135_v14 = vld [vmem:[%s8949_s6 + $0x180] sm:$0xff] }
 0x9c4   :  { %v4139_v6 = vld [vmem:[%s8949_s6 + $0x1a0] sm:$0xff] }
 0x9c5   :  { %6127 = vmatpush1.bf16.msra.mxu0 %v9258_v1  ;;  %6159 = vmatpush1.bf16.msra.mxu1 %v9259_v35  ;;  %v6176_v35 = vpack.c.bf16 %v4100_v0, %v4096_v21  ;;  %v4108_v1 = vld [vmem:[%s8949_s6 + $0xa8] sm:$0xff]  ;;  %v4129_v21 = vld [vmem:[%s8949_s6 + $0x150] sm:$0xff] }
 0x9c6   :  { %6129 = vmatprep.subr.bf16.mxu0 %v9260_v53  ;;  %6161 = vmatprep.subr.bf16.mxu1 %v9261_v55  ;;  %v4102_v53 = vld [vmem:[%s8949_s6 + $0x78] sm:$0xff]  ;;  %v4095_v55 = vld [vmem:[%s8949_s6 + $0x40] sm:$0xff]  ;;  %v6180_v61 = vpack.c.bf16 %v4108_v1, %v4104_v13  ;;  %v4133_v0 = vld [vmem:[%s8949_s6 + $0x170] sm:$0xff]  ;;  %v6198_v13 = vpack.c.bf16 %v4139_v6, %v4135_v14 }
 0x9c7   :  { %v6178_v59 = vpack.c.bf16 %v4099_v3, %v4095_v55  ;;  %v4138_v55 = vld [vmem:[%s8949_s6 + $0x198] sm:$0xff]  ;;  %v4141_v1 = vld [vmem:[%s8949_s6 + $0x1b0] sm:$0xff] }
 0x9c8   :  { %v4142_v3 = vld [vmem:[%s8949_s6 + $0x1b8] sm:$0xff] }
 0x9c9   :  { %6131 = vmatpush1.bf16.msra.mxu0 %v7384_v52  ;;  %6163 = vmatpush1.bf16.msra.mxu1 %v9262_v19  ;;  %v8528_v52 = vsel %vm3129_vm6, %v3606_v15, %v8392_v24  ;;  %v6208_v19 = vpack.c.bf16 %v4102_v53, %v4098_v43  ;;  %v6182_v24 = vpack.c.bf16 %v4107_v63, %v4103_v51  ;;  %v4116_v15 = vld [vmem:[%s8949_s6 + $0xe8] sm:$0xff]  ;;  %v4146_v63 = vld [vmem:[%s8949_s6 + $0x1d8] sm:$0xff] }
 0x9ca   :  { %6133 = vmatprep.subr.bf16.mxu0 %v7396_v20  ;;  %6165 = vmatprep.subr.bf16.mxu1 %v7398_v56  ;;  %v4092_v20 = vld [vmem:[%s8949_s6 + $0x28] sm:$0xff]  ;;  %v4090_v56 = vld [vmem:[%s8949_s6 + $0x18] sm:$0xff]  ;;  %v6184_v46 = vpack.c.bf16 %v4116_v15, %v4112_v41  ;;  %v4149_v41 = vld [vmem:[%s8949_s6 + $0x1f0] sm:$0xff] }
 0x9cb   :  { %v4136_v43 = vld [vmem:[%s8949_s6 + $0x188] sm:$0xff] }
 0x9cc   :  { %v4140_v53 = vld [vmem:[%s8949_s6 + $0x1a8] sm:$0xff] }
 0x9cd   :  { %6135 = vmatpush1.bf16.msra.mxu0 %v7420_v5  ;;  %6167 = vmatpush1.bf16.msra.mxu1 %v7422_v38  ;;  %v4094_v5 = vld [vmem:[%s8949_s6 + $0x38] sm:$0xff]  ;;  %v4091_v38 = vld [vmem:[%s8949_s6 + $0x20] sm:$0xff] }
 0x9ce   :  { %6137 = vmatprep.subr.bf16.mxu0 %v7429_v62  ;;  %6169 = vmatprep.subr.bf16.mxu1 %v7431_v54  ;;  %v4088_v62 = vld [vmem:[%s8949_s6 + $0x8] sm:$0xff] }
 0x9cf   :  { %v6172_v54 = vpack.c.bf16 %v4092_v20, %v4088_v62  ;;  %v4121_v62 = vld [vmem:[%s8949_s6 + $0x110] sm:$0xff] }
 0x9d0   :  { %v4125_v20 = vld [vmem:[%s8949_s6 + $0x130] sm:$0xff] }
 0x9d1   :  { %6139 = vmatpush1.bf16.msra.mxu0 %v7444_v2  ;;  %6171 = vmatpush1.bf16.msra.mxu1 %v7446_v11  ;;  %v6204_v2 = vpack.c.bf16 %v4094_v5, %v4090_v56  ;;  %v6222_v56 = vpack.c.bf16 %v4125_v20, %v4121_v62  ;;  %v4132_v5 = vld [vmem:[%s8949_s6 + $0x168] sm:$0xff] }
 0x9d2   :  { %6173 = vmatprep.subr.bf16.mxu0 %v6172_v54  ;;  %v4128_v54 = vld [vmem:[%s8949_s6 + $0x148] sm:$0xff] }
 0x9d3   :  { %6205 = vmatprep.subr.bf16.mxu1 %v6204_v2  ;;  %v4134_v2 = vld [vmem:[%s8949_s6 + $0x178] sm:$0xff] }
 0x9d4   :  { %3987 = vmatmul.mubr.f32.vlgmr.msra.gmra.mrb[30].mxu0 %v8528_v52  ;;  %4058 = vmatmul.mubr.f32.vlgmr.msra.gmra.mrb[30].mxu1 %v8528_v52 }
 0x9d5   :  { %4237 = vmatprep.mubr.f32.mxu0 %v9200_v31  ;;  %4308 = vmatprep.mubr.f32.mxu1 %v9200_v31  ;;  %v4087_v31 = vld [vmem:[%s8949_s6] sm:$0xff] }
 0x9d6   :  { %v6174_v11 = vpack.c.bf16 %v4091_v38, %v4087_v31  ;;  %6207 = vmatpush1.bf16.msra.mxu1 %v6206_v50  ;;  %v4130_v31 = vld [vmem:[%s8949_s6 + $0x158] sm:$0xff]  ;;  %v6192_v38 = vpack.c.bf16 %v4132_v5, %v4128_v54 }
 0x9d7   :  { %6209 = vmatprep.subr.bf16.mxu1 %v6208_v19  ;;  %v6224_v33 = vpack.c.bf16 %v4134_v2, %v4130_v31  ;;  %v6196_v19 = vpack.c.bf16 %v4140_v53, %v4136_v43  ;;  %v4366_v43 = vld [vmem:[%s8950_s8 + $0x198] sm:$0xff] }
 0x9d8   :  { %6175 = vmatpush1.bf16.msra.mxu0 %v6174_v11  ;;  %v4127_v11 = vld [vmem:[%s8949_s6 + $0x140] sm:$0xff] }
 0x9d9   :  { %6177 = vmatprep.subr.bf16.mxu0 %v6176_v35  ;;  %v6194_v50 = vpack.c.bf16 %v4131_v49, %v4127_v11  ;;  %v6226_v35 = vpack.c.bf16 %v4133_v0, %v4129_v21  ;;  %v4316_v11 = vld [vmem:[%s8950_s8 + $0x8] sm:$0xff]  ;;  %v4347_v49 = vld [vmem:[%s8950_s8 + $0x100] sm:$0xff]  ;;  %v4334_v21 = vld [vmem:[%s8950_s8 + $0x98] sm:$0xff] }
 0x9da   :  { %6211 = vmatpush1.bf16.msra.mxu1 %v6210_v37  ;;  %v4137_v37 = vld [vmem:[%s8949_s6 + $0x190] sm:$0xff] }
 0x9db   :  { %6213 = vmatprep.subr.bf16.mxu1 %v6212_v47  ;;  %v6230_v12 = vpack.c.bf16 %v4141_v1, %v4137_v37  ;;  %v4150_v47 = vld [vmem:[%s8949_s6 + $0x1f8] sm:$0xff]  ;;  %v4365_v0 = vld [vmem:[%s8950_s8 + $0x190] sm:$0xff]  ;;  %v4335_v1 = vld [vmem:[%s8950_s8 + $0xa0] sm:$0xff] }
 0x9dc   :  { %6179 = vmatpush1.bf16.msra.mxu0 %v6178_v59  ;;  %v6228_v59 = vpack.c.bf16 %v4142_v3, %v4138_v55  ;;  %v6232_v57 = vpack.c.bf16 %v4150_v47, %v4146_v63  ;;  %v6272_v6 = vpack.c.bf16 %v4366_v43, %v4365_v0  ;;  %v4349_v37 = vld [vmem:[%s8950_s8 + $0x110] sm:$0xff]  ;;  %v4376_v0 = vld [vmem:[%s8950_s8 + $0x1e8] sm:$0xff] }
 0x9dd   :  { %6181 = vmatprep.subr.bf16.mxu0 %v6180_v61  ;;  %v4148_v61 = vld [vmem:[%s8949_s6 + $0x1e8] sm:$0xff] }
 0x9de   :  { %6215 = vmatpush1.bf16.msra.mxu1 %v6214_v48  ;;  %v6200_v51 = vpack.c.bf16 %v4148_v61, %v4144_v45  ;;  %v4145_v48 = vld [vmem:[%s8949_s6 + $0x1d0] sm:$0xff]  ;;  %v4336_v61 = vld [vmem:[%s8950_s8 + $0xa8] sm:$0xff] }
 0x9df   :  { %6217 = vmatprep.subr.bf16.mxu1 %v6216_v29  ;;  %v6234_v34 = vpack.c.bf16 %v4149_v41, %v4145_v48  ;;  %v4364_v29 = vld [vmem:[%s8950_s8 + $0x188] sm:$0xff]  ;;  %v4337_v41 = vld [vmem:[%s8950_s8 + $0xb0] sm:$0xff] }
 0x9e0   :  { %6183 = vmatpush1.bf16.msra.mxu0 %v6182_v24  ;;  %v4143_v24 = vld [vmem:[%s8949_s6 + $0x1c0] sm:$0xff]  ;;  %v4352_v48 = vld [vmem:[%s8950_s8 + $0x128] sm:$0xff] }
 0x9e1   :  { %6185 = vmatprep.subr.bf16.mxu0 %v6184_v46  ;;  %v6202_v15 = vpack.c.bf16 %v4147_v25, %v4143_v24  ;;  %v4331_v46 = vld [vmem:[%s8950_s8 + $0x80] sm:$0xff]  ;;  %v6244_v24 = vpack.c.bf16 %v4336_v61, %v4335_v1  ;;  %v4346_v1 = vld [vmem:[%s8950_s8 + $0xf8] sm:$0xff] }
 0x9e2   :  { %6219 = vmatpush1.bf16.msra.mxu1 %v6218_v18  ;;  %v6236_v39 = vpack.c.bf16 %v4332_v27, %v4331_v46  ;;  %v4351_v25 = vld [vmem:[%s8950_s8 + $0x120] sm:$0xff]  ;;  %v4370_v46 = vld [vmem:[%s8950_s8 + $0x1b8] sm:$0xff] }
 0x9e3   :  { %6221 = vmatprep.subr.bf16.mxu1 %v6220_v22 }
 0x9e4   :  { %6187 = vmatpush1.bf16.msra.mxu0 %v6186_v4  ;;  %v6268_v4 = vpack.c.bf16 %v4364_v29, %v4363_v44  ;;  %v6278_v44 = vpack.c.bf16 %v4352_v48, %v4351_v25  ;;  %v4322_v29 = vld [vmem:[%s8950_s8 + $0x38] sm:$0xff]  ;;  %v4151_v25 = vld [vmem:[%s8951_s7] sm:$0xf] }
 0x9e5   :  { %6189 = vmatprep.subr.bf16.mxu0 %v6188_v30  ;;  %v9611_v48 = vld [vmem:[#allocation82_spill] sm:$0xff] }
 0x9e6   :  { %6223 = vmatpush1.bf16.msra.mxu1 %v6222_v56 }
 0x9e7   :  { %6225 = vmatprep.subr.bf16.mxu1 %v6224_v33  ;;  %v4333_v33 = vld [vmem:[%s8950_s8 + $0x90] sm:$0xff] }
 0x9e8   :  { %6191 = vmatpush1.bf16.msra.mxu0 %v6190_v10  ;;  %v6240_v14 = vpack.c.bf16 %v4334_v21, %v4333_v33  ;;  %v4343_v33 = vld [vmem:[%s8950_s8 + $0xe0] sm:$0xff] }
 0x9e9   :  { %6193 = vmatprep.subr.bf16.mxu0 %v6192_v38  ;;  %v4375_v21 = vld [vmem:[%s8950_s8 + $0x1e0] sm:$0xff] }
 0x9ea   :  { %6227 = vmatpush1.bf16.msra.mxu1 %v6226_v35 }
 0x9eb   :  { %6229 = vmatprep.subr.bf16.mxu1 %v6228_v59  ;;  %v4318_v59 = vld [vmem:[%s8950_s8 + $0x18] sm:$0xff] }
 0x9ec   :  { %6195 = vmatpush1.bf16.msra.mxu0 %v6194_v50 }
 0x9ed   :  { %6197 = vmatprep.subr.bf16.mxu0 %v6196_v19  ;;  %v4317_v19 = vld [vmem:[%s8950_s8 + $0x10] sm:$0xff] }
 0x9ee   :  { %6231 = vmatpush1.bf16.msra.mxu1 %v6230_v12  ;;  %v4367_v12 = vld [vmem:[%s8950_s8 + $0x1a0] sm:$0xff]  ;;  %v6242_v63 = vpack.c.bf16 %v4318_v59, %v4317_v19  ;;  %v4328_v19 = vld [vmem:[%s8950_s8 + $0x68] sm:$0xff] }
 0x9ef   :  { %6233 = vmatprep.subr.bf16.mxu1 %v6232_v57  ;;  %v4359_v59 = vld [vmem:[%s8950_s8 + $0x160] sm:$0xff] }
 0x9f0   :  { %6199 = vmatpush1.bf16.msra.mxu0 %v6198_v13  ;;  %v4350_v13 = vld [vmem:[%s8950_s8 + $0x118] sm:$0xff] }
 0x9f1   :  { %6201 = vmatprep.subr.bf16.mxu0 %v6200_v51  ;;  %v4368_v51 = vld [vmem:[%s8950_s8 + $0x1a8] sm:$0xff]  ;;  %v6274_v47 = vpack.c.bf16 %v4350_v13, %v4349_v37  ;;  %v4345_v13 = vld [vmem:[%s8950_s8 + $0xf0] sm:$0xff] }
 0x9f2   :  { %6235 = vmatpush1.bf16.msra.mxu1 %v6234_v34  ;;  %v6276_v57 = vpack.c.bf16 %v4368_v51, %v4367_v12  ;;  %v4369_v34 = vld [vmem:[%s8950_s8 + $0x1b0] sm:$0xff]  ;;  %v6264_v61 = vpack.c.bf16 %v4346_v1, %v4345_v13  ;;  %v4378_v12 = vld [vmem:[%s8950_s8 + $0x1f8] sm:$0xff] }
 0x9f3   :  { %6269 = vmatprep.subr.bf16.mxu1 %v6268_v4  ;;  %v4329_v51 = vld [vmem:[%s8950_s8 + $0x70] sm:$0xff] }
 0x9f4   :  { %6203 = vmatpush1.bf16.msra.mxu0 %v6202_v15  ;;  %v4338_v15 = vld [vmem:[%s8950_s8 + $0xb8] sm:$0xff] }
 0x9f5   :  { %6237 = vmatprep.subr.bf16.mxu0 %v6236_v39  ;;  %v4321_v39 = vld [vmem:[%s8950_s8 + $0x30] sm:$0xff]  ;;  %v6248_v4 = vpack.c.bf16 %v4338_v15, %v4337_v41  ;;  %v9612_v41 = vsub.s32 1, %v9611_v48 }
 0x9f7   :  { %v4160_v15 = vrot.slane %v4151_v25, %v9612_v41 }
 0xaa7   :  { %v3988_v7 = vpop.f32.mrb[30].mxu0  ;;  %v4059_v8 = vpop.f32.mrb[30].mxu1 }
 0xaa8   :  { %v4064_v18 = vadd.f32 %v3988_v7, %v9608_v26  ;;  %v3990_v9 = vpop.f32.mrb[31].mxu0  ;;  %v4061_v36 = vpop.f32.mrb[31].mxu1  ;;  %v4066_v40 = vadd.f32 %v4059_v8, %v9609_v60  ;;  %v4315_v60 = vld [vmem:[%s8950_s8] sm:$0xff]  ;;  %v6280_v7 = vpack.c.bf16 %v4370_v46, %v4369_v34  ;;  %v4353_v8 = vld [vmem:[%s8950_s8 + $0x130] sm:$0xff]  ;;  %v9613_v34 = vsub.s32 3, %v9611_v48 }
 0xaa9   :  { %v4065_v16 = vadd.f32 %v3990_v9, %v9298_v58  ;;  %v4067_v23 = vadd.f32 %v4061_v36, %v7549_v28  ;;  %v6238_v55 = vpack.c.bf16 %v4316_v11, %v4315_v60  ;;  %v4339_v9 = vld [vmem:[%s8950_s8 + $0xc0] sm:$0xff]  ;;  %v4340_v36 = vld [vmem:[%s8950_s8 + $0xc8] sm:$0xff] }
 0xaaa   :  { %v4068_v30 = vmul.f32 0.5, %v4064_v18  ;;  %v4070_v22 = vmul.f32 0.5, %v4066_v40  ;;  %v4354_v18 = vld [vmem:[%s8950_s8 + $0x138] sm:$0xff]  ;;  %v4323_v40 = vld [vmem:[%s8950_s8 + $0x40] sm:$0xff]  ;;  %v4168_v46 = vrot.slane %v4151_v25, %v9613_v34 }
 0xaab   :  { %v4069_v42 = vmul.f32 0.5, %v4065_v16  ;;  %v4371_v16 = vld [vmem:[%s8950_s8 + $0x1c0] sm:$0xff] }
 0xaac   :  { %6483 = vtanh.f32 %v4068_v30  ;;  %v4372_v30 = vld [vmem:[%s8950_s8 + $0x1c8] sm:$0xff] }
 0xaad   :  { %6485 = vtanh.f32 %v4069_v42  ;;  %v6250_v42 = vpack.c.bf16 %v4322_v29, %v4321_v39  ;;  %v9615_v39 = vsub.s32 2, %v9611_v48 }
 0xaae   :  { %6487 = vtanh.f32 %v4067_v23  ;;  %v6282_v23 = vpack.c.bf16 %v4354_v18, %v4353_v8 }
 0xaaf   :  { %6489 = vtanh.f32 %v4070_v22  ;;  %v4324_v22 = vld [vmem:[%s8950_s8 + $0x48] sm:$0xff]  ;;  %v4164_v29 = vrot.slane %v4151_v25, %v9615_v39 }
 0xab6   :  { %v6484_v10 = vpop.eup %6483 }
 0xab7   :  { %v4074_v62 = vmul.f32 0.5, %v6484_v10  ;;  %v6486_v20 = vpop.eup %6485  ;;  %v6252_v10 = vpack.c.bf16 %v4340_v36, %v4339_v9 }
 0xab8   :  { %v4075_v26 = vmul.f32 0.5, %v6486_v20  ;;  %v6488_v54 = vpop.eup %6487  ;;  %v4355_v20 = vld [vmem:[%s8950_s8 + $0x140] sm:$0xff] }
 0xab9   :  { %v4077_v56 = vadd.f32 0.5, %v4074_v62  ;;  %v6490_v2 = vpop.eup %6489  ;;  %v6284_v62 = vpack.c.bf16 %v4372_v30, %v4371_v16 }
 0xaba   :  { %v4078_v5 = vadd.f32 0.5, %v4075_v26  ;;  %v4076_v28 = vmul.f32 0.5, %v6490_v2  ;;  %v4341_v26 = vld [vmem:[%s8950_s8 + $0xd0] sm:$0xff] }
 0xabb   :  { %v4082_v31 = vmul.f32 %v6488_v54, %v4077_v56  ;;  %v4356_v56 = vld [vmem:[%s8950_s8 + $0x148] sm:$0xff]  ;;  %v4342_v54 = vld [vmem:[%s8950_s8 + $0xd8] sm:$0xff]  ;;  %v4325_v2 = vld [vmem:[%s8950_s8 + $0x50] sm:$0xff] }
 0xabc   :  { %v4081_v58 = vmul.f32 %v4078_v5, %v8474_v17  ;;  %v4348_v17 = vld [vmem:[%s8950_s8 + $0x108] sm:$0xff]  ;;  %v4079_v50 = vadd.f32 0.5, %v4076_v28  ;;  %v4373_v5 = vld [vmem:[%s8950_s8 + $0x1d0] sm:$0xff]  ;;  %v4326_v28 = vld [vmem:[%s8950_s8 + $0x58] sm:$0xff]  ;;  %v6256_v60 = vpack.c.bf16 %v4342_v54, %v4341_v26 }
 0xabd   :  { %v6270_v3 = vpack.c.bf16 %v4348_v17, %v4347_v49  ;;  %v4357_v49 = vld [vmem:[%s8950_s8 + $0x150] sm:$0xff]  ;;  %v4358_v17 = vld [vmem:[%s8950_s8 + $0x158] sm:$0xff]  ;;  %v6258_v43 = vpack.c.bf16 %v4326_v28, %v4325_v2 }
 0xabe   :  { %v4083_v38 = vadd.f32 %v4082_v31, %v4081_v58  ;;  %v4374_v31 = vld [vmem:[%s8950_s8 + $0x1d8] sm:$0xff]  ;;  %v6254_v58 = vpack.c.bf16 %v4324_v22, %v4323_v40  ;;  %v4565_v40 = vld [vmem:[%s8952_s9] ss:$0 sm:$0xff] }
 0xabf   :  { %v6288_v11 = vpack.c.bf16 %v4374_v31, %v4373_v5 }
 0xac0   :  { %6491 = vtanh.f32 %v4083_v38  ;;  %v6286_v38 = vpack.c.bf16 %v4356_v56, %v4355_v20 }
 0xaca   :  { %v6492_v35 = vpop.eup %6491 }
 0xacb   :  { %v4085_v53 = vmul.f32 %v6492_v35, %v4079_v50  ;;  %v4344_v50 = vld [vmem:[%s8950_s8 + $0xe8] sm:$0xff]  ;;  %v6290_v35 = vpack.c.bf16 %v4358_v17, %v4357_v49 }
 0xacd   :  { %v4086_v45 = vsel %vm3609_vm7, %v4085_v53, %v8528_v52  ;;  %v4320_v52 = vld [vmem:[%s8950_s8 + $0x28] sm:$0xff]  ;;  %v4327_v53 = vld [vmem:[%s8950_s8 + $0x60] sm:$0xff] }
 0xace   :  { %4238 = vmatmul.mubr.f32.vlgmr.msra.gmra.mrb[32].mxu0 %v4086_v45  ;;  %4309 = vmatmul.mubr.f32.vlgmr.msra.gmra.mrb[32].mxu1 %v4086_v45  ;;  %v6246_v27 = vpack.c.bf16 %v4320_v52, %v4319_v32  ;;  %v4377_v45 = vld [vmem:[%s8950_s8 + $0x1f0] sm:$0xff] }
 0xacf   :  { %6239 = vmatpush3.bf16.msra.mxu0 %v6238_v55  ;;  %6271 = vmatpush3.bf16.msra.mxu1 %v6270_v3  ;;  %v6260_v55 = vpack.c.bf16 %v4344_v50, %v4343_v33  ;;  %v6292_v3 = vpack.c.bf16 %v4376_v0, %v4375_v21  ;;  %v4361_v52 = vld [vmem:[%s8950_s8 + $0x170] sm:$0xff] }
 0xad0   :  { %6241 = vmatprep.subr.bf16.mxu0 %v6240_v14  ;;  %6273 = vmatprep.subr.bf16.mxu1 %v6272_v6  ;;  %v4360_v14 = vld [vmem:[%s8950_s8 + $0x168] sm:$0xff]  ;;  %v6262_v6 = vpack.c.bf16 %v4328_v19, %v4327_v53 }
 0xad1   :  { %v6294_v37 = vpack.c.bf16 %v4360_v14, %v4359_v59 }
 0xad3   :  { %6243 = vmatpush3.bf16.msra.mxu0 %v6242_v63  ;;  %6275 = vmatpush3.bf16.msra.mxu1 %v6274_v47  ;;  %v4330_v63 = vld [vmem:[%s8950_s8 + $0x78] sm:$0xff]  ;;  %v6296_v47 = vpack.c.bf16 %v4378_v12, %v4377_v45 }
 0xad4   :  { %6245 = vmatprep.subr.bf16.mxu0 %v6244_v24  ;;  %6277 = vmatprep.subr.bf16.mxu1 %v6276_v57  ;;  %v6266_v32 = vpack.c.bf16 %v4330_v63, %v4329_v51  ;;  %v4362_v24 = vld [vmem:[%s8950_s8 + $0x178] sm:$0xff] }
 0xad5   :  { %v6298_v57 = vpack.c.bf16 %v4362_v24, %v4361_v52 }
 0xad7   :  { %6247 = vmatpush3.bf16.msra.mxu0 %v6246_v27  ;;  %6279 = vmatpush3.bf16.msra.mxu1 %v6278_v44  ;;  %v9614_v27 = vsub.s32 0, %v9611_v48 }
 0xad8   :  { %6249 = vmatprep.subr.bf16.mxu0 %v6248_v4  ;;  %6281 = vmatprep.subr.bf16.mxu1 %v6280_v7 }
 0xad9   :  { %v4156_v44 = vrot.slane %v4151_v25, %v9614_v27 }
 0xadb   :  { %6251 = vmatpush3.bf16.msra.mxu0 %v6250_v42  ;;  %6283 = vmatpush3.bf16.msra.mxu1 %v6282_v23 }
 0xadc   :  { %6253 = vmatprep.subr.bf16.mxu0 %v6252_v10  ;;  %6285 = vmatprep.subr.bf16.mxu1 %v6284_v62 }
 0xadf   :  { %6255 = vmatpush3.bf16.msra.mxu0 %v6254_v58  ;;  %6287 = vmatpush3.bf16.msra.mxu1 %v6286_v38 }
 0xae0   :  { %6257 = vmatprep.subr.bf16.mxu0 %v6256_v60  ;;  %6289 = vmatprep.subr.bf16.mxu1 %v6288_v11 }
 0xae3   :  { %6259 = vmatpush3.bf16.msra.mxu0 %v6258_v43  ;;  %6291 = vmatpush3.bf16.msra.mxu1 %v6290_v35 }
 0xae4   :  { %6261 = vmatprep.subr.bf16.mxu0 %v6260_v55  ;;  %6293 = vmatprep.subr.bf16.mxu1 %v6292_v3 }
 0xae7   :  { %6263 = vmatpush3.bf16.msra.mxu0 %v6262_v6  ;;  %6295 = vmatpush3.bf16.msra.mxu1 %v6294_v37 }
 0xae8   :  { %6265 = vmatprep.subr.bf16.mxu0 %v6264_v61  ;;  %6297 = vmatprep.subr.bf16.mxu1 %v6296_v47 }
 0xaeb   :  { %6267 = vmatpush3.bf16.msra.mxu0 %v6266_v32  ;;  %6299 = vmatpush3.bf16.msra.mxu1 %v6298_v57 }
 0xba1   :  { %v4239_v4 = vpop.f32.mrb[32].mxu0  ;;  %v4310_v7 = vpop.f32.mrb[32].mxu1 }
 0xba2   :  { %v4241_v8 = vpop.f32.mrb[33].mxu0  ;;  %v4312_v18 = vpop.f32.mrb[33].mxu1  ;;  %v4240_v16 = vadd.f32 %v4239_v4, %v4156_v44  ;;  %v4311_v30 = vadd.f32 %v4310_v7, %v4164_v29 }
 0xba3   :  { %v4242_v9 = vadd.f32 %v4241_v8, %v4160_v15  ;;  %v4313_v36 = vadd.f32 %v4312_v18, %v4168_v46 }
 0xba5   :  { %4450 = vmatprep.mubr.f32.mxu0 %v4242_v9  ;;  %4520 = vmatprep.mubr.f32.mxu1 %v4313_v36 }
 0xba6   :  { %4451 = vmatmul.mubr.f32.vlgmr.msra.gmra.mrb[34].mxu0 %v4240_v16  ;;  %4521 = vmatmul.mubr.f32.vlgmr.msra.gmra.mrb[34].mxu1 %v4311_v30 }
 0xc79   :  { %v4598_v42 = vpop.f32.mrb[34].mxu0  ;;  %v4633_v23 = vpop.f32.mrb[34].mxu1 }
 0xc7a   :  { %v4599_v22 = vpop.f32.mrb[35].mxu0  ;;  %v4634_v10 = vpop.f32.mrb[35].mxu1 }
 0xc7b   :  { %v4600_v62 = vadd.f32 %v4599_v22, %v4598_v42  ;;  %v4635_v20 = vadd.f32 %v4634_v10, %v4633_v23 }
 0xc7d   :  { %v4453_v56 = vadd.f32 %v4600_v62, %v4565_v40 }
 0xc7f   :  { %v4523_v26 = vadd.f32 %v4635_v20, %v4453_v56 }
 0xc81   :  { %4526 = vst [vmem:[%s8953_s10] sm:$0xff] %v4523_v26 }

</bundles_post_ra>
